<compile_context>
chip_gen: v7x
topology: tpu7x:2x2x1
jax: 0.10.0
libtpu: 0.0.40
codegen_flags: <defaults>
</compile_context>

<pallas_src>
import jax
import jax.numpy as jnp
from jax import lax
from jax.experimental import pallas as pl
from jax.experimental.pallas import tpu as pltpu


def _nonlocal_kernel(xf_ref, x1f_ref, xp_ref, x1p_ref,
                     wth_ref, bth_ref, wph_ref, bph_ref,
                     wg_ref, bg_ref, ww_ref, bw_ref,
                     z_ref, z1_ref):
    f32 = jnp.float32

    xf = xf_ref[...]          # (C, N)   modality 0, raster spatial order
    x1f = x1f_ref[...]        # (C, N)   modality 1

    wth = wth_ref[...]        # (Ci, C)
    wph = wph_ref[...]        # (Ci, C)
    wg = wg_ref[...]          # (Ci, C)
    ww = ww_ref[...]          # (C, Ci)  BN already folded in

    # theta projections (1x1 conv == channel matmul), spatial on lanes.
    theta_x = jnp.dot(wth, xf, preferred_element_type=f32) + bth_ref[...]    # (Ci, N)
    theta_x1 = jnp.dot(wth, x1f, preferred_element_type=f32) + bth_ref[...]  # (Ci, N)

    def pooled_proj(w, b, xp_r):
        # 1x1 conv followed by 2x2 max-pool.  The wrapper pre-grouped the four
        # pool taps on the leading axis: xp_r is (4, C, Ns).  Project each tap
        # (MXU) and take the elementwise max (VPU).
        acc = jnp.dot(w, xp_r[0], preferred_element_type=f32)
        for p in range(1, 4):
            acc = jnp.maximum(acc, jnp.dot(w, xp_r[p], preferred_element_type=f32))
        return acc + b                                   # (Ci, Ns)

    phi_x = pooled_proj(wph, bph_ref[...], xp_ref)       # (Ci, Ns)
    phi_x1 = pooled_proj(wph, bph_ref[...], x1p_ref)
    g_x = pooled_proj(wg, bg_ref[...], xp_ref)           # (Ci, Ns)
    g_x1 = pooled_proj(wg, bg_ref[...], x1p_ref)

    def branch(theta_q, phi_kv, g_kv, x_res):
        # f[n, ns] = sum_ci theta_q[ci, n] * phi_kv[ci, ns]
        f = lax.dot_general(theta_q, phi_kv, (((0,), (0,)), ((), ())),
                            preferred_element_type=f32)              # (N, Ns)
        # softmax over the key axis
        f = f - jnp.max(f, axis=-1, keepdims=True)
        p = jnp.exp(f)
        f_sm = p / jnp.sum(p, axis=-1, keepdims=True)
        # yT[ci, n] = sum_ns g_kv[ci, ns] * f_sm[n, ns]
        yT = lax.dot_general(g_kv, f_sm, (((1,), (1,)), ((), ())),
                             preferred_element_type=f32)             # (Ci, N)
        wy = jnp.dot(ww, yT, preferred_element_type=f32) + bw_ref[...]   # (C, N)
        return wy + x_res

    # z1: queries from x, keys/values from x1, residual x1.
    z1 = branch(theta_x, phi_x1, g_x1, x1f)
    # z : queries from x1, keys/values from x, residual x.
    z = branch(theta_x1, phi_x, g_x, xf)

    z_ref[...] = z.astype(z_ref.dtype)
    z1_ref[...] = z1.astype(z1_ref.dtype)


def non_single_modal_block(x, x1, params):
    """x, x1: (B, C, H, W) float32.  Returns (z, z1) like the PyTorch module."""
    B, C, H, W = x.shape
    Ci = params["w_theta"].shape[0]
    N = H * W
    Hs, Ws = H // 2, W // 2          # MaxPool2d(2, 2); assumes even H, W
    Ns = Hs * Ws

    def flat(v):                      # (B, C, H, W) -> (B, C, N), raster order
        return v.reshape(B, C, N)

    def pool_group(v):
        # (B, C, H, W) -> (B, 4, C, Ns); axis 1 enumerates the 2x2 pool taps,
        # Ns is the pooled raster order.
        v = v.reshape(B, C, Hs, 2, Ws, 2)
        v = v.transpose(0, 3, 5, 1, 2, 4)        # (B, 2, 2, C, Hs, Ws)
        return v.reshape(B, 4, C, Ns)

    xf, x1f = flat(x), flat(x1)
    xp, x1p = pool_group(x), pool_group(x1)

    # Fold eval-mode BatchNorm of self.W into the 1x1 conv.
    # TODO(synk): training-mode BN (batch statistics) is not implemented.
    scale = params["bn_gamma"] / jnp.sqrt(params["bn_var"] + params["bn_eps"])
    ww = scale[:, None] * params["w_w"]                                  # (C, Ci)
    bw = scale * (params["b_w"] - params["bn_mean"]) + params["bn_beta"]  # (C,)

    def wspec(shape):
        return pl.BlockSpec(shape, lambda b: (0, 0))

    in_specs = [
        pl.BlockSpec((None, C, N), lambda b: (b, 0, 0)),        # xf
        pl.BlockSpec((None, C, N), lambda b: (b, 0, 0)),        # x1f
        pl.BlockSpec((None, 4, C, Ns), lambda b: (b, 0, 0, 0)),  # xp
        pl.BlockSpec((None, 4, C, Ns), lambda b: (b, 0, 0, 0)),  # x1p
        wspec((Ci, C)), wspec((Ci, 1)),                          # theta
        wspec((Ci, C)), wspec((Ci, 1)),                          # phi
        wspec((Ci, C)), wspec((Ci, 1)),                          # g
        wspec((C, Ci)), wspec((C, 1)),                           # W (BN folded)
    ]
    out_specs = [
        pl.BlockSpec((None, C, N), lambda b: (b, 0, 0)),
        pl.BlockSpec((None, C, N), lambda b: (b, 0, 0)),
    ]
    out_shape = (jax.ShapeDtypeStruct((B, C, N), x.dtype),
                 jax.ShapeDtypeStruct((B, C, N), x.dtype))

    z_flat, z1_flat = pl.pallas_call(
        _nonlocal_kernel,
        out_shape=out_shape,
        grid_spec=pltpu.PrefetchScalarGridSpec(
            num_scalar_prefetch=0,
            grid=(B,),
            in_specs=in_specs,
            out_specs=out_specs,
        ),
        compiler_params=pltpu.CompilerParams(
            dimension_semantics=("parallel",)),
    )(xf, x1f, xp, x1p,
      params["w_theta"], params["b_theta"][:, None],
      params["w_phi"], params["b_phi"][:, None],
      params["w_g"], params["b_g"][:, None],
      ww, bw[:, None])

    return z_flat.reshape(B, C, H, W), z1_flat.reshape(B, C, H, W)


def non_single_modal_block_ref(x, x1, params):
    """Pure-JAX reference matching the PyTorch forward (BN in eval mode)."""
    B, C, H, W = x.shape
    Ci = params["w_theta"].shape[0]

    def conv1x1(v, w, b):
        return jnp.einsum("oc,bchw->bohw", w, v,
                          precision=lax.Precision.HIGHEST) + b[None, :, None, None]

    def maxpool2(v):
        b, c, h, w = v.shape
        return jnp.max(v.reshape(b, c, h // 2, 2, w // 2, 2), axis=(3, 5))

    def bn_eval(v):
        g = params["bn_gamma"][None, :, None, None]
        bt = params["bn_beta"][None, :, None, None]
        m = params["bn_mean"][None, :, None, None]
        var = params["bn_var"][None, :, None, None]
        return g * (v - m) / jnp.sqrt(var + params["bn_eps"]) + bt

    g_x = maxpool2(conv1x1(x, params["w_g"], params["b_g"])).reshape(B, Ci, -1).transpose(0, 2, 1)
    g_x1 = maxpool2(conv1x1(x1, params["w_g"], params["b_g"])).reshape(B, Ci, -1).transpose(0, 2, 1)
    theta_x = conv1x1(x, params["w_theta"], params["b_theta"]).reshape(B, Ci, -1).transpose(0, 2, 1)
    theta_x1 = conv1x1(x1, params["w_theta"], params["b_theta"]).reshape(B, Ci, -1).transpose(0, 2, 1)
    phi_x = maxpool2(conv1x1(x, params["w_phi"], params["b_phi"])).reshape(B, Ci, -1)
    phi_x1 = maxpool2(conv1x1(x1, params["w_phi"], params["b_phi"])).reshape(B, Ci, -1)

    hi = lax.Precision.HIGHEST
    f = jax.nn.softmax(jnp.einsum("bnc,bcs->bns", theta_x, phi_x1, precision=hi), axis=-1)
    f1 = jax.nn.softmax(jnp.einsum("bnc,bcs->bns", theta_x1, phi_x, precision=hi), axis=-1)
    y1 = jnp.einsum("bns,bsc->bnc", f, g_x1, precision=hi)
    y = jnp.einsum("bns,bsc->bnc", f1, g_x, precision=hi)
    y = y.transpose(0, 2, 1).reshape(B, Ci, H, W)
    y1 = y1.transpose(0, 2, 1).reshape(B, Ci, H, W)
    w_y = bn_eval(conv1x1(y, params["w_w"], params["b_w"]))
    w_y1 = bn_eval(conv1x1(y1, params["w_w"], params["b_w"]))
    return w_y + x, w_y1 + x1


if __name__ == "__main__":
    # Module config: in_channels=32 (as in the docstring), inter_channels=16,
    # dimension=2, sub_sample=True, bn_layer=True.
    B, C, H, W = 2, 32, 16, 16
    Ci = C // 2

    key = jax.random.PRNGKey(0)
    ks = jax.random.split(key, 14)
    x = jax.random.normal(ks[0], (B, C, H, W), dtype=jnp.float32)
    x1 = jax.random.normal(ks[1], (B, C, H, W), dtype=jnp.float32)

    params = dict(
        w_g=0.1 * jax.random.normal(ks[2], (Ci, C), dtype=jnp.float32),
        b_g=0.1 * jax.random.normal(ks[3], (Ci,), dtype=jnp.float32),
        w_theta=0.1 * jax.random.normal(ks[4], (Ci, C), dtype=jnp.float32),
        b_theta=0.1 * jax.random.normal(ks[5], (Ci,), dtype=jnp.float32),
        w_phi=0.1 * jax.random.normal(ks[6], (Ci, C), dtype=jnp.float32),
        b_phi=0.1 * jax.random.normal(ks[7], (Ci,), dtype=jnp.float32),
        w_w=0.1 * jax.random.normal(ks[8], (C, Ci), dtype=jnp.float32),
        b_w=0.1 * jax.random.normal(ks[9], (C,), dtype=jnp.float32),
        # Non-trivial BN params (the PyTorch init zeros gamma/beta, which would
        # make W(y) vanish and hide bugs).
        bn_gamma=1.0 + 0.1 * jax.random.normal(ks[10], (C,), dtype=jnp.float32),
        bn_beta=0.1 * jax.random.normal(ks[11], (C,), dtype=jnp.float32),
        bn_mean=0.1 * jax.random.normal(ks[12], (C,), dtype=jnp.float32),
        bn_var=0.5 + jnp.abs(jax.random.normal(ks[13], (C,), dtype=jnp.float32)),
        bn_eps=1e-5,
    )

    z, z1 = non_single_modal_block(x, x1, params)
    z = jax.block_until_ready(z)
    z1 = jax.block_until_ready(z1)

    z_ref, z1_ref = non_single_modal_block_ref(x, x1, params)
    assert z.shape == (B, C, H, W) and z1.shape == (B, C, H, W)
    assert jnp.allclose(z, z_ref, atol=1e-4, rtol=1e-4), "z mismatch vs reference"
    assert jnp.allclose(z1, z1_ref, atol=1e-4, rtol=1e-4), "z1 mismatch vs reference"

    print("KERNEL_OK")
</pallas_src>

<mosaic_0001>
module attributes {stable_mosaic.version = 11 : i64} {
  func.func @_nonlocal_kernel(%arg0: i32, %arg1: memref<1x32x256xf32, #tpu.memory_space<vmem>>, %arg2: memref<1x32x256xf32, #tpu.memory_space<vmem>>, %arg3: memref<1x4x32x64xf32, #tpu.memory_space<vmem>>, %arg4: memref<1x4x32x64xf32, #tpu.memory_space<vmem>>, %arg5: memref<16x32xf32, #tpu.memory_space<vmem>>, %arg6: memref<16x1xf32, #tpu.memory_space<vmem>>, %arg7: memref<16x32xf32, #tpu.memory_space<vmem>>, %arg8: memref<16x1xf32, #tpu.memory_space<vmem>>, %arg9: memref<16x32xf32, #tpu.memory_space<vmem>>, %arg10: memref<16x1xf32, #tpu.memory_space<vmem>>, %arg11: memref<32x16xf32, #tpu.memory_space<vmem>>, %arg12: memref<32x1xf32, #tpu.memory_space<vmem>>, %arg13: memref<1x32x256xf32, #tpu.memory_space<vmem>>, %arg14: memref<1x32x256xf32, #tpu.memory_space<vmem>>) attributes {dimension_semantics = [#tpu.dimension_semantics<parallel>], iteration_bounds = array<i64: 2>, scalar_prefetch = 0 : i64, scratch_operands = 0 : i64, tpu.core_type = #tpu.core_type<tc>, window_params = [{transform_indices = @transform_0, window_bounds = array<i64: 1, 32, 256>}, {transform_indices = @transform_1, window_bounds = array<i64: 1, 32, 256>}, {transform_indices = @transform_2, window_bounds = array<i64: 1, 4, 32, 64>}, {transform_indices = @transform_3, window_bounds = array<i64: 1, 4, 32, 64>}, {pipeline_mode = #tpu.pipeline_mode<synchronous>, transform_indices = @transform_4, window_bounds = array<i64: 16, 32>}, {pipeline_mode = #tpu.pipeline_mode<synchronous>, transform_indices = @transform_5, window_bounds = array<i64: 16, 1>}, {pipeline_mode = #tpu.pipeline_mode<synchronous>, transform_indices = @transform_6, window_bounds = array<i64: 16, 32>}, {pipeline_mode = #tpu.pipeline_mode<synchronous>, transform_indices = @transform_7, window_bounds = array<i64: 16, 1>}, {pipeline_mode = #tpu.pipeline_mode<synchronous>, transform_indices = @transform_8, window_bounds = array<i64: 16, 32>}, {pipeline_mode = #tpu.pipeline_mode<synchronous>, transform_indices = @transform_9, window_bounds = array<i64: 16, 1>}, {pipeline_mode = #tpu.pipeline_mode<synchronous>, transform_indices = @transform_10, window_bounds = array<i64: 32, 16>}, {pipeline_mode = #tpu.pipeline_mode<synchronous>, transform_indices = @transform_11, window_bounds = array<i64: 32, 1>}, {transform_indices = @transform_12, window_bounds = array<i64: 1, 32, 256>}, {transform_indices = @transform_13, window_bounds = array<i64: 1, 32, 256>}]} {
    %c0 = arith.constant 0 : index
    %c0_0 = arith.constant 0 : index
    %c0_1 = arith.constant 0 : index
    %0 = vector.load %arg1[%c0, %c0_0, %c0_1] : memref<1x32x256xf32, #tpu.memory_space<vmem>>, vector<1x32x256xf32>
    %1 = vector.shape_cast %0 : vector<1x32x256xf32> to vector<32x256xf32>
    %c0_2 = arith.constant 0 : index
    %c0_3 = arith.constant 0 : index
    %c0_4 = arith.constant 0 : index
    %2 = vector.load %arg2[%c0_2, %c0_3, %c0_4] : memref<1x32x256xf32, #tpu.memory_space<vmem>>, vector<1x32x256xf32>
    %3 = vector.shape_cast %2 : vector<1x32x256xf32> to vector<32x256xf32>
    %c0_5 = arith.constant 0 : index
    %c0_6 = arith.constant 0 : index
    %4 = vector.load %arg5[%c0_5, %c0_6] : memref<16x32xf32, #tpu.memory_space<vmem>>, vector<16x32xf32>
    %c0_7 = arith.constant 0 : index
    %c0_8 = arith.constant 0 : index
    %5 = vector.load %arg7[%c0_7, %c0_8] : memref<16x32xf32, #tpu.memory_space<vmem>>, vector<16x32xf32>
    %c0_9 = arith.constant 0 : index
    %c0_10 = arith.constant 0 : index
    %6 = vector.load %arg9[%c0_9, %c0_10] : memref<16x32xf32, #tpu.memory_space<vmem>>, vector<16x32xf32>
    %c0_11 = arith.constant 0 : index
    %c0_12 = arith.constant 0 : index
    %7 = vector.load %arg11[%c0_11, %c0_12] : memref<32x16xf32, #tpu.memory_space<vmem>>, vector<32x16xf32>
    %cst = arith.constant dense<0.000000e+00> : vector<16x256xf32>
    %8 = tpu.matmul %4, %1, %cst {dimension_numbers = #tpu.dot_dimension_numbers<[1], [0], [0], [1], [0, 0, 1, 1], [], []>} : vector<16x32xf32>, vector<32x256xf32>, vector<16x256xf32> -> vector<16x256xf32>
    %c0_13 = arith.constant 0 : index
    %c0_14 = arith.constant 0 : index
    %9 = vector.load %arg6[%c0_13, %c0_14] : memref<16x1xf32, #tpu.memory_space<vmem>>, vector<16x1xf32>
    %10 = vector.broadcast %9 : vector<16x1xf32> to vector<16x256xf32>
    %11 = arith.addf %8, %10 : vector<16x256xf32>
    %cst_15 = arith.constant dense<0.000000e+00> : vector<16x256xf32>
    %12 = tpu.matmul %4, %3, %cst_15 {dimension_numbers = #tpu.dot_dimension_numbers<[1], [0], [0], [1], [0, 0, 1, 1], [], []>} : vector<16x32xf32>, vector<32x256xf32>, vector<16x256xf32> -> vector<16x256xf32>
    %c0_16 = arith.constant 0 : index
    %c0_17 = arith.constant 0 : index
    %13 = vector.load %arg6[%c0_16, %c0_17] : memref<16x1xf32, #tpu.memory_space<vmem>>, vector<16x1xf32>
    %14 = vector.broadcast %13 : vector<16x1xf32> to vector<16x256xf32>
    %15 = arith.addf %12, %14 : vector<16x256xf32>
    %c0_18 = arith.constant 0 : index
    %c0_19 = arith.constant 0 : index
    %16 = vector.load %arg8[%c0_18, %c0_19] : memref<16x1xf32, #tpu.memory_space<vmem>>, vector<16x1xf32>
    %c0_20 = arith.constant 0 : index
    %c0_21 = arith.constant 0 : index
    %c0_22 = arith.constant 0 : index
    %c0_23 = arith.constant 0 : index
    %17 = vector.load %arg3[%c0_20, %c0_21, %c0_22, %c0_23] : memref<1x4x32x64xf32, #tpu.memory_space<vmem>>, vector<1x1x32x64xf32>
    %18 = vector.shape_cast %17 : vector<1x1x32x64xf32> to vector<32x64xf32>
    %cst_24 = arith.constant dense<0.000000e+00> : vector<16x64xf32>
    %19 = tpu.matmul %5, %18, %cst_24 {dimension_numbers = #tpu.dot_dimension_numbers<[1], [0], [0], [1], [0, 0, 1, 1], [], []>} : vector<16x32xf32>, vector<32x64xf32>, vector<16x64xf32> -> vector<16x64xf32>
    %c0_25 = arith.constant 0 : index
    %c1 = arith.constant 1 : index
    %c0_26 = arith.constant 0 : index
    %c0_27 = arith.constant 0 : index
    %20 = vector.load %arg3[%c0_25, %c1, %c0_26, %c0_27] : memref<1x4x32x64xf32, #tpu.memory_space<vmem>>, vector<1x1x32x64xf32>
    %21 = vector.shape_cast %20 : vector<1x1x32x64xf32> to vector<32x64xf32>
    %cst_28 = arith.constant dense<0.000000e+00> : vector<16x64xf32>
    %22 = tpu.matmul %5, %21, %cst_28 {dimension_numbers = #tpu.dot_dimension_numbers<[1], [0], [0], [1], [0, 0, 1, 1], [], []>} : vector<16x32xf32>, vector<32x64xf32>, vector<16x64xf32> -> vector<16x64xf32>
    %23 = arith.maximumf %19, %22 : vector<16x64xf32>
    %c0_29 = arith.constant 0 : index
    %c2 = arith.constant 2 : index
    %c0_30 = arith.constant 0 : index
    %c0_31 = arith.constant 0 : index
    %24 = vector.load %arg3[%c0_29, %c2, %c0_30, %c0_31] : memref<1x4x32x64xf32, #tpu.memory_space<vmem>>, vector<1x1x32x64xf32>
    %25 = vector.shape_cast %24 : vector<1x1x32x64xf32> to vector<32x64xf32>
    %cst_32 = arith.constant dense<0.000000e+00> : vector<16x64xf32>
    %26 = tpu.matmul %5, %25, %cst_32 {dimension_numbers = #tpu.dot_dimension_numbers<[1], [0], [0], [1], [0, 0, 1, 1], [], []>} : vector<16x32xf32>, vector<32x64xf32>, vector<16x64xf32> -> vector<16x64xf32>
    %27 = arith.maximumf %23, %26 : vector<16x64xf32>
    %c0_33 = arith.constant 0 : index
    %c3 = arith.constant 3 : index
    %c0_34 = arith.constant 0 : index
    %c0_35 = arith.constant 0 : index
    %28 = vector.load %arg3[%c0_33, %c3, %c0_34, %c0_35] : memref<1x4x32x64xf32, #tpu.memory_space<vmem>>, vector<1x1x32x64xf32>
    %29 = vector.shape_cast %28 : vector<1x1x32x64xf32> to vector<32x64xf32>
    %cst_36 = arith.constant dense<0.000000e+00> : vector<16x64xf32>
    %30 = tpu.matmul %5, %29, %cst_36 {dimension_numbers = #tpu.dot_dimension_numbers<[1], [0], [0], [1], [0, 0, 1, 1], [], []>} : vector<16x32xf32>, vector<32x64xf32>, vector<16x64xf32> -> vector<16x64xf32>
    %31 = arith.maximumf %27, %30 : vector<16x64xf32>
    %32 = vector.broadcast %16 : vector<16x1xf32> to vector<16x64xf32>
    %33 = arith.addf %31, %32 : vector<16x64xf32>
    %c0_37 = arith.constant 0 : index
    %c0_38 = arith.constant 0 : index
    %34 = vector.load %arg8[%c0_37, %c0_38] : memref<16x1xf32, #tpu.memory_space<vmem>>, vector<16x1xf32>
    %c0_39 = arith.constant 0 : index
    %c0_40 = arith.constant 0 : index
    %c0_41 = arith.constant 0 : index
    %c0_42 = arith.constant 0 : index
    %35 = vector.load %arg4[%c0_39, %c0_40, %c0_41, %c0_42] : memref<1x4x32x64xf32, #tpu.memory_space<vmem>>, vector<1x1x32x64xf32>
    %36 = vector.shape_cast %35 : vector<1x1x32x64xf32> to vector<32x64xf32>
    %cst_43 = arith.constant dense<0.000000e+00> : vector<16x64xf32>
    %37 = tpu.matmul %5, %36, %cst_43 {dimension_numbers = #tpu.dot_dimension_numbers<[1], [0], [0], [1], [0, 0, 1, 1], [], []>} : vector<16x32xf32>, vector<32x64xf32>, vector<16x64xf32> -> vector<16x64xf32>
    %c0_44 = arith.constant 0 : index
    %c1_45 = arith.constant 1 : index
    %c0_46 = arith.constant 0 : index
    %c0_47 = arith.constant 0 : index
    %38 = vector.load %arg4[%c0_44, %c1_45, %c0_46, %c0_47] : memref<1x4x32x64xf32, #tpu.memory_space<vmem>>, vector<1x1x32x64xf32>
    %39 = vector.shape_cast %38 : vector<1x1x32x64xf32> to vector<32x64xf32>
    %cst_48 = arith.constant dense<0.000000e+00> : vector<16x64xf32>
    %40 = tpu.matmul %5, %39, %cst_48 {dimension_numbers = #tpu.dot_dimension_numbers<[1], [0], [0], [1], [0, 0, 1, 1], [], []>} : vector<16x32xf32>, vector<32x64xf32>, vector<16x64xf32> -> vector<16x64xf32>
    %41 = arith.maximumf %37, %40 : vector<16x64xf32>
    %c0_49 = arith.constant 0 : index
    %c2_50 = arith.constant 2 : index
    %c0_51 = arith.constant 0 : index
    %c0_52 = arith.constant 0 : index
    %42 = vector.load %arg4[%c0_49, %c2_50, %c0_51, %c0_52] : memref<1x4x32x64xf32, #tpu.memory_space<vmem>>, vector<1x1x32x64xf32>
    %43 = vector.shape_cast %42 : vector<1x1x32x64xf32> to vector<32x64xf32>
    %cst_53 = arith.constant dense<0.000000e+00> : vector<16x64xf32>
    %44 = tpu.matmul %5, %43, %cst_53 {dimension_numbers = #tpu.dot_dimension_numbers<[1], [0], [0], [1], [0, 0, 1, 1], [], []>} : vector<16x32xf32>, vector<32x64xf32>, vector<16x64xf32> -> vector<16x64xf32>
    %45 = arith.maximumf %41, %44 : vector<16x64xf32>
    %c0_54 = arith.constant 0 : index
    %c3_55 = arith.constant 3 : index
    %c0_56 = arith.constant 0 : index
    %c0_57 = arith.constant 0 : index
    %46 = vector.load %arg4[%c0_54, %c3_55, %c0_56, %c0_57] : memref<1x4x32x64xf32, #tpu.memory_space<vmem>>, vector<1x1x32x64xf32>
    %47 = vector.shape_cast %46 : vector<1x1x32x64xf32> to vector<32x64xf32>
    %cst_58 = arith.constant dense<0.000000e+00> : vector<16x64xf32>
    %48 = tpu.matmul %5, %47, %cst_58 {dimension_numbers = #tpu.dot_dimension_numbers<[1], [0], [0], [1], [0, 0, 1, 1], [], []>} : vector<16x32xf32>, vector<32x64xf32>, vector<16x64xf32> -> vector<16x64xf32>
    %49 = arith.maximumf %45, %48 : vector<16x64xf32>
    %50 = vector.broadcast %34 : vector<16x1xf32> to vector<16x64xf32>
    %51 = arith.addf %49, %50 : vector<16x64xf32>
    %c0_59 = arith.constant 0 : index
    %c0_60 = arith.constant 0 : index
    %52 = vector.load %arg10[%c0_59, %c0_60] : memref<16x1xf32, #tpu.memory_space<vmem>>, vector<16x1xf32>
    %c0_61 = arith.constant 0 : index
    %c0_62 = arith.constant 0 : index
    %c0_63 = arith.constant 0 : index
    %c0_64 = arith.constant 0 : index
    %53 = vector.load %arg3[%c0_61, %c0_62, %c0_63, %c0_64] : memref<1x4x32x64xf32, #tpu.memory_space<vmem>>, vector<1x1x32x64xf32>
    %54 = vector.shape_cast %53 : vector<1x1x32x64xf32> to vector<32x64xf32>
    %cst_65 = arith.constant dense<0.000000e+00> : vector<16x64xf32>
    %55 = tpu.matmul %6, %54, %cst_65 {dimension_numbers = #tpu.dot_dimension_numbers<[1], [0], [0], [1], [0, 0, 1, 1], [], []>} : vector<16x32xf32>, vector<32x64xf32>, vector<16x64xf32> -> vector<16x64xf32>
    %c0_66 = arith.constant 0 : index
    %c1_67 = arith.constant 1 : index
    %c0_68 = arith.constant 0 : index
    %c0_69 = arith.constant 0 : index
    %56 = vector.load %arg3[%c0_66, %c1_67, %c0_68, %c0_69] : memref<1x4x32x64xf32, #tpu.memory_space<vmem>>, vector<1x1x32x64xf32>
    %57 = vector.shape_cast %56 : vector<1x1x32x64xf32> to vector<32x64xf32>
    %cst_70 = arith.constant dense<0.000000e+00> : vector<16x64xf32>
    %58 = tpu.matmul %6, %57, %cst_70 {dimension_numbers = #tpu.dot_dimension_numbers<[1], [0], [0], [1], [0, 0, 1, 1], [], []>} : vector<16x32xf32>, vector<32x64xf32>, vector<16x64xf32> -> vector<16x64xf32>
    %59 = arith.maximumf %55, %58 : vector<16x64xf32>
    %c0_71 = arith.constant 0 : index
    %c2_72 = arith.constant 2 : index
    %c0_73 = arith.constant 0 : index
    %c0_74 = arith.constant 0 : index
    %60 = vector.load %arg3[%c0_71, %c2_72, %c0_73, %c0_74] : memref<1x4x32x64xf32, #tpu.memory_space<vmem>>, vector<1x1x32x64xf32>
    %61 = vector.shape_cast %60 : vector<1x1x32x64xf32> to vector<32x64xf32>
    %cst_75 = arith.constant dense<0.000000e+00> : vector<16x64xf32>
    %62 = tpu.matmul %6, %61, %cst_75 {dimension_numbers = #tpu.dot_dimension_numbers<[1], [0], [0], [1], [0, 0, 1, 1], [], []>} : vector<16x32xf32>, vector<32x64xf32>, vector<16x64xf32> -> vector<16x64xf32>
    %63 = arith.maximumf %59, %62 : vector<16x64xf32>
    %c0_76 = arith.constant 0 : index
    %c3_77 = arith.constant 3 : index
    %c0_78 = arith.constant 0 : index
    %c0_79 = arith.constant 0 : index
    %64 = vector.load %arg3[%c0_76, %c3_77, %c0_78, %c0_79] : memref<1x4x32x64xf32, #tpu.memory_space<vmem>>, vector<1x1x32x64xf32>
    %65 = vector.shape_cast %64 : vector<1x1x32x64xf32> to vector<32x64xf32>
    %cst_80 = arith.constant dense<0.000000e+00> : vector<16x64xf32>
    %66 = tpu.matmul %6, %65, %cst_80 {dimension_numbers = #tpu.dot_dimension_numbers<[1], [0], [0], [1], [0, 0, 1, 1], [], []>} : vector<16x32xf32>, vector<32x64xf32>, vector<16x64xf32> -> vector<16x64xf32>
    %67 = arith.maximumf %63, %66 : vector<16x64xf32>
    %68 = vector.broadcast %52 : vector<16x1xf32> to vector<16x64xf32>
    %69 = arith.addf %67, %68 : vector<16x64xf32>
    %c0_81 = arith.constant 0 : index
    %c0_82 = arith.constant 0 : index
    %70 = vector.load %arg10[%c0_81, %c0_82] : memref<16x1xf32, #tpu.memory_space<vmem>>, vector<16x1xf32>
    %c0_83 = arith.constant 0 : index
    %c0_84 = arith.constant 0 : index
    %c0_85 = arith.constant 0 : index
    %c0_86 = arith.constant 0 : index
    %71 = vector.load %arg4[%c0_83, %c0_84, %c0_85, %c0_86] : memref<1x4x32x64xf32, #tpu.memory_space<vmem>>, vector<1x1x32x64xf32>
    %72 = vector.shape_cast %71 : vector<1x1x32x64xf32> to vector<32x64xf32>
    %cst_87 = arith.constant dense<0.000000e+00> : vector<16x64xf32>
    %73 = tpu.matmul %6, %72, %cst_87 {dimension_numbers = #tpu.dot_dimension_numbers<[1], [0], [0], [1], [0, 0, 1, 1], [], []>} : vector<16x32xf32>, vector<32x64xf32>, vector<16x64xf32> -> vector<16x64xf32>
    %c0_88 = arith.constant 0 : index
    %c1_89 = arith.constant 1 : index
    %c0_90 = arith.constant 0 : index
    %c0_91 = arith.constant 0 : index
    %74 = vector.load %arg4[%c0_88, %c1_89, %c0_90, %c0_91] : memref<1x4x32x64xf32, #tpu.memory_space<vmem>>, vector<1x1x32x64xf32>
    %75 = vector.shape_cast %74 : vector<1x1x32x64xf32> to vector<32x64xf32>
    %cst_92 = arith.constant dense<0.000000e+00> : vector<16x64xf32>
    %76 = tpu.matmul %6, %75, %cst_92 {dimension_numbers = #tpu.dot_dimension_numbers<[1], [0], [0], [1], [0, 0, 1, 1], [], []>} : vector<16x32xf32>, vector<32x64xf32>, vector<16x64xf32> -> vector<16x64xf32>
    %77 = arith.maximumf %73, %76 : vector<16x64xf32>
    %c0_93 = arith.constant 0 : index
    %c2_94 = arith.constant 2 : index
    %c0_95 = arith.constant 0 : index
    %c0_96 = arith.constant 0 : index
    %78 = vector.load %arg4[%c0_93, %c2_94, %c0_95, %c0_96] : memref<1x4x32x64xf32, #tpu.memory_space<vmem>>, vector<1x1x32x64xf32>
    %79 = vector.shape_cast %78 : vector<1x1x32x64xf32> to vector<32x64xf32>
    %cst_97 = arith.constant dense<0.000000e+00> : vector<16x64xf32>
    %80 = tpu.matmul %6, %79, %cst_97 {dimension_numbers = #tpu.dot_dimension_numbers<[1], [0], [0], [1], [0, 0, 1, 1], [], []>} : vector<16x32xf32>, vector<32x64xf32>, vector<16x64xf32> -> vector<16x64xf32>
    %81 = arith.maximumf %77, %80 : vector<16x64xf32>
    %c0_98 = arith.constant 0 : index
    %c3_99 = arith.constant 3 : index
    %c0_100 = arith.constant 0 : index
    %c0_101 = arith.constant 0 : index
    %82 = vector.load %arg4[%c0_98, %c3_99, %c0_100, %c0_101] : memref<1x4x32x64xf32, #tpu.memory_space<vmem>>, vector<1x1x32x64xf32>
    %83 = vector.shape_cast %82 : vector<1x1x32x64xf32> to vector<32x64xf32>
    %cst_102 = arith.constant dense<0.000000e+00> : vector<16x64xf32>
    %84 = tpu.matmul %6, %83, %cst_102 {dimension_numbers = #tpu.dot_dimension_numbers<[1], [0], [0], [1], [0, 0, 1, 1], [], []>} : vector<16x32xf32>, vector<32x64xf32>, vector<16x64xf32> -> vector<16x64xf32>
    %85 = arith.maximumf %81, %84 : vector<16x64xf32>
    %86 = vector.broadcast %70 : vector<16x1xf32> to vector<16x64xf32>
    %87 = arith.addf %85, %86 : vector<16x64xf32>
    %cst_103 = arith.constant dense<0.000000e+00> : vector<256x64xf32>
    %88 = tpu.matmul %11, %51, %cst_103 {dimension_numbers = #tpu.dot_dimension_numbers<[0], [0], [1], [1], [0, 1, 1, 1], [], []>} : vector<16x256xf32>, vector<16x64xf32>, vector<256x64xf32> -> vector<256x64xf32>
    %cst_104 = arith.constant dense<0xFF800000> : vector<256xf32>
    %89 = vector.multi_reduction <maximumf>, %88, %cst_104 [1] : vector<256x64xf32> to vector<256xf32>
    %90 = vector.shape_cast %89 : vector<256xf32> to vector<256x1xf32>
    %91 = vector.broadcast %90 : vector<256x1xf32> to vector<256x64xf32>
    %92 = arith.subf %88, %91 : vector<256x64xf32>
    %93 = math.exp %92 : vector<256x64xf32>
    %cst_105 = arith.constant dense<0.000000e+00> : vector<256xf32>
    %94 = vector.multi_reduction <add>, %93, %cst_105 [1] : vector<256x64xf32> to vector<256xf32>
    %95 = vector.shape_cast %94 : vector<256xf32> to vector<256x1xf32>
    %96 = vector.broadcast %95 : vector<256x1xf32> to vector<256x64xf32>
    %97 = arith.divf %93, %96 : vector<256x64xf32>
    %cst_106 = arith.constant dense<0.000000e+00> : vector<16x256xf32>
    %98 = tpu.matmul %87, %97, %cst_106 {dimension_numbers = #tpu.dot_dimension_numbers<[1], [1], [0], [0], [0, 0, 1, 0], [], []>} : vector<16x64xf32>, vector<256x64xf32>, vector<16x256xf32> -> vector<16x256xf32>
    %cst_107 = arith.constant dense<0.000000e+00> : vector<32x256xf32>
    %99 = tpu.matmul %7, %98, %cst_107 {dimension_numbers = #tpu.dot_dimension_numbers<[1], [0], [0], [1], [0, 0, 1, 1], [], []>} : vector<32x16xf32>, vector<16x256xf32>, vector<32x256xf32> -> vector<32x256xf32>
    %c0_108 = arith.constant 0 : index
    %c0_109 = arith.constant 0 : index
    %100 = vector.load %arg12[%c0_108, %c0_109] : memref<32x1xf32, #tpu.memory_space<vmem>>, vector<32x1xf32>
    %101 = vector.broadcast %100 : vector<32x1xf32> to vector<32x256xf32>
    %102 = arith.addf %99, %101 : vector<32x256xf32>
    %103 = arith.addf %102, %3 : vector<32x256xf32>
    %cst_110 = arith.constant dense<0.000000e+00> : vector<256x64xf32>
    %104 = tpu.matmul %15, %33, %cst_110 {dimension_numbers = #tpu.dot_dimension_numbers<[0], [0], [1], [1], [0, 1, 1, 1], [], []>} : vector<16x256xf32>, vector<16x64xf32>, vector<256x64xf32> -> vector<256x64xf32>
    %cst_111 = arith.constant dense<0xFF800000> : vector<256xf32>
    %105 = vector.multi_reduction <maximumf>, %104, %cst_111 [1] : vector<256x64xf32> to vector<256xf32>
    %106 = vector.shape_cast %105 : vector<256xf32> to vector<256x1xf32>
    %107 = vector.broadcast %106 : vector<256x1xf32> to vector<256x64xf32>
    %108 = arith.subf %104, %107 : vector<256x64xf32>
    %109 = math.exp %108 : vector<256x64xf32>
    %cst_112 = arith.constant dense<0.000000e+00> : vector<256xf32>
    %110 = vector.multi_reduction <add>, %109, %cst_112 [1] : vector<256x64xf32> to vector<256xf32>
    %111 = vector.shape_cast %110 : vector<256xf32> to vector<256x1xf32>
    %112 = vector.broadcast %111 : vector<256x1xf32> to vector<256x64xf32>
    %113 = arith.divf %109, %112 : vector<256x64xf32>
    %cst_113 = arith.constant dense<0.000000e+00> : vector<16x256xf32>
    %114 = tpu.matmul %69, %113, %cst_113 {dimension_numbers = #tpu.dot_dimension_numbers<[1], [1], [0], [0], [0, 0, 1, 0], [], []>} : vector<16x64xf32>, vector<256x64xf32>, vector<16x256xf32> -> vector<16x256xf32>
    %cst_114 = arith.constant dense<0.000000e+00> : vector<32x256xf32>
    %115 = tpu.matmul %7, %114, %cst_114 {dimension_numbers = #tpu.dot_dimension_numbers<[1], [0], [0], [1], [0, 0, 1, 1], [], []>} : vector<32x16xf32>, vector<16x256xf32>, vector<32x256xf32> -> vector<32x256xf32>
    %c0_115 = arith.constant 0 : index
    %c0_116 = arith.constant 0 : index
    %116 = vector.load %arg12[%c0_115, %c0_116] : memref<32x1xf32, #tpu.memory_space<vmem>>, vector<32x1xf32>
    %117 = vector.broadcast %116 : vector<32x1xf32> to vector<32x256xf32>
    %118 = arith.addf %115, %117 : vector<32x256xf32>
    %119 = arith.addf %118, %1 : vector<32x256xf32>
    %c0_117 = arith.constant 0 : index
    %c0_118 = arith.constant 0 : index
    %c0_119 = arith.constant 0 : index
    %120 = vector.load %arg13[%c0_117, %c0_118, %c0_119] : memref<1x32x256xf32, #tpu.memory_space<vmem>>, vector<1x32x256xf32>
    %121 = vector.shape_cast %120 : vector<1x32x256xf32> to vector<32x256xf32>
    %122 = vector.shape_cast %119 : vector<32x256xf32> to vector<1x32x256xf32>
    tpu.vector_store %arg13[%c0_117, %c0_118, %c0_119], %122 {strides = array<i32>} : memref<1x32x256xf32, #tpu.memory_space<vmem>>, vector<1x32x256xf32>,
    %c0_120 = arith.constant 0 : index
    %c0_121 = arith.constant 0 : index
    %c0_122 = arith.constant 0 : index
    %123 = vector.load %arg14[%c0_120, %c0_121, %c0_122] : memref<1x32x256xf32, #tpu.memory_space<vmem>>, vector<1x32x256xf32>
    %124 = vector.shape_cast %123 : vector<1x32x256xf32> to vector<32x256xf32>
    %125 = vector.shape_cast %103 : vector<32x256xf32> to vector<1x32x256xf32>
    tpu.vector_store %arg14[%c0_120, %c0_121, %c0_122], %125 {strides = array<i32>} : memref<1x32x256xf32, #tpu.memory_space<vmem>>, vector<1x32x256xf32>,
    return
  }
  func.func @transform_0(%arg0: i32) -> (i32, i32, i32) {
    %c0_i32 = arith.constant 0 : i32
    %c0_i32_0 = arith.constant 0 : i32
    %c0_i32_1 = arith.constant 0 : i32
    return %arg0, %c0_i32, %c0_i32_0 : i32, i32, i32
  }
  func.func @transform_1(%arg0: i32) -> (i32, i32, i32) {
    %c0_i32 = arith.constant 0 : i32
    %c0_i32_0 = arith.constant 0 : i32
    %c0_i32_1 = arith.constant 0 : i32
    return %arg0, %c0_i32, %c0_i32_0 : i32, i32, i32
  }
  func.func @transform_2(%arg0: i32) -> (i32, i32, i32, i32) {
    %c0_i32 = arith.constant 0 : i32
    %c0_i32_0 = arith.constant 0 : i32
    %c0_i32_1 = arith.constant 0 : i32
    %c0_i32_2 = arith.constant 0 : i32
    return %arg0, %c0_i32, %c0_i32_0, %c0_i32_1 : i32, i32, i32, i32
  }
  func.func @transform_3(%arg0: i32) -> (i32, i32, i32, i32) {
    %c0_i32 = arith.constant 0 : i32
    %c0_i32_0 = arith.constant 0 : i32
    %c0_i32_1 = arith.constant 0 : i32
    %c0_i32_2 = arith.constant 0 : i32
    return %arg0, %c0_i32, %c0_i32_0, %c0_i32_1 : i32, i32, i32, i32
  }
  func.func @transform_4(%arg0: i32) -> (i32, i32) {
    %c0_i32 = arith.constant 0 : i32
    %c0_i32_0 = arith.constant 0 : i32
    %c0_i32_1 = arith.constant 0 : i32
    return %c0_i32, %c0_i32_0 : i32, i32
  }
  func.func @transform_5(%arg0: i32) -> (i32, i32) {
    %c0_i32 = arith.constant 0 : i32
    %c0_i32_0 = arith.constant 0 : i32
    %c0_i32_1 = arith.constant 0 : i32
    return %c0_i32, %c0_i32_0 : i32, i32
  }
  func.func @transform_6(%arg0: i32) -> (i32, i32) {
    %c0_i32 = arith.constant 0 : i32
    %c0_i32_0 = arith.constant 0 : i32
    %c0_i32_1 = arith.constant 0 : i32
    return %c0_i32, %c0_i32_0 : i32, i32
  }
  func.func @transform_7(%arg0: i32) -> (i32, i32) {
    %c0_i32 = arith.constant 0 : i32
    %c0_i32_0 = arith.constant 0 : i32
    %c0_i32_1 = arith.constant 0 : i32
    return %c0_i32, %c0_i32_0 : i32, i32
  }
  func.func @transform_8(%arg0: i32) -> (i32, i32) {
    %c0_i32 = arith.constant 0 : i32
    %c0_i32_0 = arith.constant 0 : i32
    %c0_i32_1 = arith.constant 0 : i32
    return %c0_i32, %c0_i32_0 : i32, i32
  }
  func.func @transform_9(%arg0: i32) -> (i32, i32) {
    %c0_i32 = arith.constant 0 : i32
    %c0_i32_0 = arith.constant 0 : i32
    %c0_i32_1 = arith.constant 0 : i32
    return %c0_i32, %c0_i32_0 : i32, i32
  }
  func.func @transform_10(%arg0: i32) -> (i32, i32) {
    %c0_i32 = arith.constant 0 : i32
    %c0_i32_0 = arith.constant 0 : i32
    %c0_i32_1 = arith.constant 0 : i32
    return %c0_i32, %c0_i32_0 : i32, i32
  }
  func.func @transform_11(%arg0: i32) -> (i32, i32) {
    %c0_i32 = arith.constant 0 : i32
    %c0_i32_0 = arith.constant 0 : i32
    %c0_i32_1 = arith.constant 0 : i32
    return %c0_i32, %c0_i32_0 : i32, i32
  }
  func.func @transform_12(%arg0: i32) -> (i32, i32, i32) {
    %c0_i32 = arith.constant 0 : i32
    %c0_i32_0 = arith.constant 0 : i32
    %c0_i32_1 = arith.constant 0 : i32
    return %arg0, %c0_i32, %c0_i32_0 : i32, i32, i32
  }
  func.func @transform_13(%arg0: i32) -> (i32, i32, i32) {
    %c0_i32 = arith.constant 0 : i32
    %c0_i32_0 = arith.constant 0 : i32
    %c0_i32_1 = arith.constant 0 : i32
    return %arg0, %c0_i32, %c0_i32_0 : i32, i32, i32
  }
}

</mosaic_0001>

<bundles_post_ra>
// kernel: tpu_custom_call.1
= control target key start
LH: loop header
LB: loop body
LE: loop exit
PB: predicated region body
PF: predicated region fallthrough
CT: control target
= control target key end

     0   :  { %s7739_s0 = inlined_call_operand.vmem [shape: f32[2,32,256], index: 0, kind: input, shape index: {}]   ;;  %s7740_s1 = inlined_call_operand.hbm [shape: f32[2,32,256], index: 1, kind: input, shape index: {}]   ;;  %s7741_s2 = inlined_call_operand.hbm [shape: f32[2,4,32,64], index: 2, kind: input, shape index: {}]   ;;  %s7742_s3 = inlined_call_operand.hbm [shape: f32[2,4,32,64], index: 3, kind: input, shape index: {}]   ;;  %s7743_s4 = inlined_call_operand.hbm [shape: f32[16,32], index: 4, kind: input, shape index: {}]   ;;  %s7744_s5 = inlined_call_operand.vmem [shape: f32[16,1], index: 5, kind: input, shape index: {}]   ;;  %s7745_s6 = inlined_call_operand.hbm [shape: f32[16,32], index: 6, kind: input, shape index: {}]   ;;  %s7746_s7 = inlined_call_operand.vmem [shape: f32[16,1], index: 7, kind: input, shape index: {}]   ;;  %s7747_s8 = inlined_call_operand.vmem [shape: f32[16,32], index: 8, kind: input, shape index: {}]   ;;  %s7748_s9 = inlined_call_operand.vmem [shape: f32[16,1], index: 9, kind: input, shape index: {}]   ;;  %s7749_s10 = inlined_call_operand.vmem [shape: f32[32,16], index: 10, kind: input, shape index: {}]   ;;  %s7750_s11 = inlined_call_operand.vmem [shape: f32[32,1], index: 11, kind: input, shape index: {}]   ;;  %s7751_s12 = inlined_call_operand.hbm [shape: f32[2,32,256], index: 12, kind: output, shape index: {0}]   ;;  %s7752_s13 = inlined_call_operand.hbm [shape: f32[2,32,256], index: 13, kind: output, shape index: {1}]  }
   0x1   :  { %7785 = sst [smem:[#allocation25_spill]] %s7741_s2 }
   0x2   :  { %7786 = sst [smem:[#allocation26_spill]] %s7743_s4 }
   0x3   :  { %7787 = sst [smem:[#allocation27_spill]] %s7744_s5 }
   0x4   :  { %7788 = sst [smem:[#allocation28_spill]] %s7746_s7 }
   0x5   :  { %7789 = sst [smem:[#allocation29_spill]] %s7747_s8 }
   0x6   :  { %7790 = sst [smem:[#allocation30_spill]] %s7748_s9 }
   0x7   :  { %7791 = sst [smem:[#allocation31_spill]] %s7749_s10 }
   0x8   :  { %7792 = sst [smem:[#allocation32_spill]] %s7750_s11 }
   0x9   :  { %7793 = sst [smem:[#allocation33_spill]] %s7751_s12 }
   0xa   :  { %7794 = sst [smem:[#allocation34_spill]] %s7752_s13 }
   0xb   :  { %19 = vsyncpa [#allocation3], 0 }
   0xc   :  { %21 = vsyncpa [#allocation3 + $0x1], 0 }
   0xd   :  { %22 = vsyncpa [#allocation6], 0 }
   0xe   :  { %24 = vsyncpa [#allocation6 + $0x1], 0 }
   0xf   :  { %25 = vsyncpa [#allocation9], 0 }
  0x10   :  { %26 = vsyncpa [#allocation4], 0 }
  0x11   :  { %28 = vsyncpa [#allocation4 + $0x1], 0 }
  0x12   :  { %29 = vsyncpa [#allocation13], 0 }
  0x13   :  { %31 = vsyncpa [#allocation13 + $0x1], 0  ;;  %s6112_s25 = smov 0   ;;  %s6114_s26 = smov 0  }
  0x14   :  { %s6116_s27 = smov 0   ;;  %s6118_s28 = smov 0  }
  0x15 LB: > { %7795 = sst [smem:[#allocation19_spill]] %s6013_s25  ;;  %s6133_s29 = sadd.s32 4294967295, %s6025_s28   ;;  %s6025_s28 = sphi %s6118_s28, %s7846_s28   ;;  %s6021_s27 = sphi %s6116_s27, %s7848_s27   ;;  %s6017_s26 = sphi %s6114_s26, %s7850_s26   ;;  %s6013_s25 = sphi %s6112_s25, %s7849_s25  }
  0x16   : > { %7796 = sst [smem:[#allocation20_spill]] %s6021_s27  ;;  %s4395_s30 = sadd.s32 4294967294, %s6025_s28  }
  0x17   : > { %s6137_s14 = sadd.s32 1, %s6025_s28   ;;  %s70_s15 = sadd.s32 1, %s6021_s27 }
  0x18   : > { %7797 = sst [smem:[#allocation21_spill]] %s6137_s14  ;;  %s67_s16 = ssub.s32 %s6025_s28, %s6137_s14 }
  0x19   : > { %p77_p0 = scmp.ne.s32.totalorder %s6021_s27, %s6017_s26  ;;  %p68_p1 = scmp.eq.s32.totalorder %s67_s16, 0 }
  0x1a   : > { %p78_p2 = scmp.eq.s32.totalorder %s6025_s28, 0  ;;  %p83_p3 = scmp.ne.s32.totalorder %s6017_s26, %s6013_s25 }
  0x1b   : > { %p7760_p4 = scmp.eq.s32.totalorder %s6133_s29, 0  ;;  %p327_p7 = scmp.eq.s32.totalorder %s6133_s29, 1 }
  0x1c   : > { %s6149_s17 = scalar_select %p68_p1, %s6021_s27, %s70_s15  }
  0x1d   : > { %p6151_p5 = por %p78_p2, %p77_p0  ;;  %p6157_p6 = por %p7760_p4, %p83_p3 }
  0x1e   : > { %7798 = sst [smem:[#allocation22_spill]] %s6149_s17  ;;  %p333_p8 = scmp.eq.s32.totalorder %s4395_s30, 1 }
  0x1f   : > { %s7799_s18 = scalar_select %p6151_p5, 1, 0 }
  0x20   : > { %s7800_s19 = scalar_select %p6157_p6, 1, 0 }
  0x21   : > { %p4396_p9 = scmp.ge.s32.totalorder %s6025_s28, 1  ;;  %p366_p10 = scmp.lt.s32.totalorder %s6025_s28, 3 }
  0x22   : > { %p6164_p11 = por %p327_p7, %p77_p0  ;;  %p6168_p12 = por %p333_p8, %p83_p3 }
  0x23   : > { %p6172_p13 = pnand %p4396_p9, %p366_p10  ;;  %s6027_s23 = smov [#allocation8]  }
  0x24   : > { %s7801_s20 = scalar_select %p6164_p11, 1, 0 }
  0x25   : > { %s7803_s21 = scalar_select %p6168_p12, 1, 0 }
  0x26   : > { %7802 = sst [smem:[#allocation23_spill]] %s7801_s20  ;;  %p5423_p1 = pneg %p6172_p13 }
  0x27   : > { %7804 = sst [smem:[#allocation24_spill]] %s7803_s21  ;;  %s378_s24 = sshll.u32 %s6027_s23, 4  ;;  %s379_s24 = int_to_ptr.vmem [resolvable:$true] %s378_s24 }
  0x28   : > { %s7805_s22 = scalar_select %p6172_p13, 1, 0 }
  0x29   : > { %p6180_p2 = pnand %p5423_p1, %p7760_p4  ;;  %s6187_s15 = sand.u32 1, %s6021_s27  }
  0x2a   : > { %s452_s16 = sand.u32 1, %s6025_s28   ;;  %s7807_s4 = sld [smem:[#allocation26_spill]] }
  0x2b   : > { %s7806_s30 = scalar_select %p6180_p2, 1, 0 }
  0x2c   : > { %p7771_p8 = pneg %p6180_p2 }
  0x30   : > { %s5773_s21 = scalar_lea.hbm %s7807_s4, 256 }
  0x31   : > { %p5774_p7 = scmp.ne.s32.totalorder %s7807_s4, %s5773_s21  ;;  %p5780_p1 = scmp.lt.u32.totalorder %s5773_s21, %s7807_s4 }
  0x33   : > { %p5776_p9 = pnand %p7771_p8, %p5774_p7 }
  0x35   : > { %p5777_p10 = pneg %p5776_p9 }
  0x37   : > { %p5782_p0 = pnand %p5780_p1, %p5777_p10 }
  0x39   : > { %5785 = shalt.err (!%p5782_p0)
}
  0x3a   : > { %s5786_s27 = scalar_lea.vmem %s379_s24, 256  ;;  %p5794_p11 = scmp.lt.s32.totalorder %s379_s24, %s379_s24 }
  0x3b   : > { %p5787_p4 = scmp.ne.s32.totalorder %s379_s24, %s5786_s27  ;;  %p5795_p6 = scmp.lt.s32.totalorder %s5786_s27, %s5786_s27 }
  0x3d   : > { %p5789_p3 = pnand %p5787_p4, %p7771_p8  ;;  %p5796_p13 = por %p5795_p6, %p5794_p11 }
  0x3f   : > { %p5790_p12 = pneg %p5789_p3 }
  0x41   : > { %p5797_p5 = pnand %p5796_p13, %p5790_p12 }
  0x43   : > { %5800 = shalt.err (!%p5797_p5)
}
  0x44   : > { %s7767_s12 = smov 128   ;;  %s6029_s13 = smov 8  }
  0x45   : > { %5426 = dma.hbm_to_vmem [thread:$0]  (!%p6180_p2), %s7807_s4, 256, %s379_s24, [#allocation9], %s7767_s12, %s7767_s12, %s6029_s13  }
  0x46   : > { %p7808_p4 = scmp.ne.s32.totalorder %s7799_s18, 0  ;;  %p7809_p6 = scmp.lt.s32.totalorder %s6025_s28, 2 }
  0x47   : > { %s7769_s17 = sshll.u32 %s6187_s15, 7  ;;  %s7770_s21 = sshll.u32 %s6025_s28, 11 }
  0x48   : > { %p6219_p5 = pnand %p7809_p6, %p7808_p4  ;;  %s7811_s2 = sld [smem:[#allocation25_spill]] }
  0x49   : > { %s456_s18 = scalar_lea.vmem [#allocation5], %s7769_s17  ;;  %s6236_s25 = scalar_lea.sflag [#allocation6], %s452_s16 }
  0x4a   : > { %s7810_s27 = scalar_select %p6219_p5, 1, 0 }
  0x4b   : > { %s463_s24 = sshll.u32 %s456_s18, 4  ;;  %p6242_p12 = pneg %p6219_p5  ;;  %s6234_s24 = int_to_ptr.vmem [resolvable:$true] %s463_s24 }
  0x4d   : > { %s7812_s12 = scalar_select %p6242_p12, 1, 0 }
  0x4e   : > { %s6230_s11 = scalar_lea.hbm %s7811_s2, %s7770_s21  ;;  %s5806_s17 = scalar_lea.hbm %s7811_s2, 4096 }
  0x4f   : > { %s5801_s14 = scalar_lea.hbm %s6230_s11, 2048  ;;  %p5807_p3 = scmp.lt.u32.totalorder %s6230_s11, %s7811_s2 }
  0x50   : > { %p5802_p11 = scmp.ne.s32.totalorder %s6230_s11, %s5801_s14  ;;  %p5808_p7 = scmp.lt.u32.totalorder %s5806_s17, %s5801_s14 }
  0x51   : > { %p5810_p10 = scmp.lt.u32.totalorder %s5801_s14, %s6230_s11 }
  0x52   : > { %p5804_p13 = pnand %p6242_p12, %p5802_p11  ;;  %p5809_p9 = por %p5808_p7, %p5807_p3 }
  0x54   : > { %p5805_p0 = pneg %p5804_p13  ;;  %p5811_p1 = por %p5810_p10, %p5809_p9 }
  0x56   : > { %p5812_p4 = pnand %p5811_p1, %p5805_p0 }
  0x58   : > { %5815 = shalt.err (!%p5812_p4)
}
  0x59   : > { %s5816_s16 = scalar_lea.vmem %s6234_s24, 2048  ;;  %s6030_s20 = smov [#allocation5]  }
  0x5a   : > { %p5817_p6 = scmp.ne.s32.totalorder %s6234_s24, %s5816_s16  ;;  %s5821_s23 = sshll.u32 %s6030_s20, 4  ;;  %s5822_s23 = int_to_ptr.vmem [resolvable:$false] %s5821_s23 }
  0x5b   : > { %s5823_s21 = scalar_lea.vmem %s5822_s23, 4096  ;;  %p5824_p8 = scmp.lt.s32.totalorder %s6234_s24, %s5822_s23 }
  0x5c   : > { %p5819_p11 = pnand %p5817_p6, %p6242_p12  ;;  %p5825_p2 = scmp.lt.s32.totalorder %s5823_s21, %s5816_s16 }
  0x5e   : > { %p5820_p13 = pneg %p5819_p11  ;;  %p5826_p3 = por %p5825_p2, %p5824_p8 }
  0x60   : > { %p5827_p7 = pnand %p5826_p3, %p5820_p13 }
  0x62   : > { %5830 = shalt.err (!%p5827_p7)
}
  0x63   : > { %s7813_s17 = smov 128   ;;  %s7814_s14 = sshll.u32 %s6025_s28, 11 }
  0x64   : > { %5436 = dma.hbm_to_vmem [thread:$0]  (!%p6219_p5), %s6230_s11, 2048, %s6234_s24, %s6236_s25, %s7813_s17, %s7813_s17, %s6029_s13  }
  0x65   : > { %s6274_s16 = scalar_lea.hbm %s7742_s3, %s7814_s14  ;;  %s7815_s23 = sshll.u32 %s6187_s15, 7 }
  0x66   : > { %s477_s21 = scalar_lea.vmem [#allocation7], %s7815_s23  ;;  %s6031_s4 = smov [#allocation10]  }
  0x67   : > { %s484_s2 = sshll.u32 %s477_s21, 4  ;;  %s394_s10 = sshll.u32 %s6031_s4, 4  ;;  %s6278_s2 = int_to_ptr.vmem [resolvable:$true] %s484_s2  ;;  %s395_s10 = int_to_ptr.vmem [resolvable:$true] %s394_s10 }
  0x68   : > { %s4400_s9 = sshll.u32 %s6187_s15, 6  ;;  %s5831_s5 = scalar_lea.hbm %s7745_s6, 256 }
  0x69   : > { %p5832_p2 = scmp.ne.s32.totalorder %s7745_s6, %s5831_s5  ;;  %p7816_p8 = scmp.ne.s32.totalorder %s7806_s30, 0 }
  0x6a   : > { %p5838_p1 = scmp.lt.u32.totalorder %s5831_s5, %s7745_s6 }
  0x6b   : > { %p7817_p0 = pneg %p7816_p8 }
  0x6d   : > { %p5834_p9 = pnand %p5832_p2, %p7817_p0 }
  0x6f   : > { %p5835_p10 = pneg %p5834_p9 }
  0x71   : > { %p5840_p4 = pnand %p5838_p1, %p5835_p10 }
  0x73   : > { %5843 = shalt.err (!%p5840_p4)
}
  0x74   : > { %s5844_s4 = scalar_lea.vmem %s395_s10, 256  ;;  %p7818_p11 = pmov %p7817_p0 }
  0x75   : > { %p5845_p6 = scmp.ne.s32.totalorder %s395_s10, %s5844_s4  ;;  %p5852_p7 = scmp.lt.s32.totalorder %s395_s10, %s395_s10 }
  0x76   : > { %p5853_p5 = scmp.lt.s32.totalorder %s5844_s4, %s5844_s4 }
  0x77   : > { %p5847_p13 = pnand %p5845_p6, %p7818_p11 }
  0x78   : > { %p5854_p12 = por %p5853_p5, %p5852_p7 }
  0x79   : > { %p5848_p3 = pneg %p5847_p13 }
  0x7b   : > { %p5855_p0 = pnand %p5854_p12, %p5848_p3 }
  0x7d   : > { %5858 = shalt.err (!%p5855_p0)
}
  0x7e   : > { %5429 = dma.hbm_to_vmem [thread:$0]  (!%p7816_p8), %s7745_s6, 256, %s395_s10, [#allocation9], %s7813_s17, %s7813_s17, %s6029_s13  }
  0x7f   : > { %s4627_s8 = sshll.u32 %s6025_s28, 10  ;;  %s435_s30 = scalar_lea.vmem [#allocation2], %s4400_s9 }
  0x80   : > { %s6308_s21 = scalar_lea.hbm %s7740_s1, %s4627_s8  ;;  %s442_s11 = sshll.u32 %s435_s30, 4  ;;  %s6310_s11 = int_to_ptr.vmem [resolvable:$true] %s442_s11 }
  0x81   : > { %s432_s24 = scalar_lea.sflag [#allocation3], %s6187_s15  ;;  %s5859_s14 = scalar_lea.hbm %s6308_s21, 1024 }
  0x82   : > { %p5860_p5 = scmp.ne.s32.totalorder %s6308_s21, %s5859_s14  ;;  %p7819_p12 = scmp.ne.s32.totalorder %s7812_s12, 0 }
  0x83   : > { %s5864_s4 = scalar_lea.hbm %s7740_s1, 2048  ;;  %p5865_p9 = scmp.lt.u32.totalorder %s6308_s21, %s7740_s1 }
  0x84   : > { %p5862_p2 = pnand %p5860_p5, %p7819_p12  ;;  %p5866_p10 = scmp.lt.u32.totalorder %s5864_s4, %s5859_s14 }
  0x85   : > { %p5868_p4 = scmp.lt.u32.totalorder %s5859_s14, %s6308_s21 }
  0x86   : > { %p5863_p8 = pneg %p5862_p2  ;;  %p5867_p1 = por %p5866_p10, %p5865_p9 }
  0x88   : > { %p5869_p6 = por %p5868_p4, %p5867_p1 }
  0x8a   : > { %p5870_p11 = pnand %p5869_p6, %p5863_p8 }
  0x8c   : > { %5873 = shalt.err (!%p5870_p11)
}
  0x8d   : > { %s5874_s9 = scalar_lea.vmem %s6310_s11, 1024  ;;  %s6032_s8 = smov [#allocation2]  }
  0x8e   : > { %p5875_p13 = scmp.ne.s32.totalorder %s6310_s11, %s5874_s9  ;;  %s5879_s20 = sshll.u32 %s6032_s8, 4  ;;  %s5880_s20 = int_to_ptr.vmem [resolvable:$false] %s5879_s20 }
  0x8f   : > { %s5881_s23 = scalar_lea.vmem %s5880_s20, 2048  ;;  %p5882_p0 = scmp.lt.s32.totalorder %s6310_s11, %s5880_s20 }
  0x90   : > { %p5877_p3 = pnand %p5875_p13, %p7819_p12  ;;  %p5883_p5 = scmp.lt.s32.totalorder %s5881_s23, %s5874_s9 }
  0x92   : > { %p5878_p7 = pneg %p5877_p3  ;;  %p5884_p2 = por %p5883_p5, %p5882_p0 }
  0x94   : > { %p5885_p9 = pnand %p5884_p2, %p5878_p7 }
  0x96   : > { %5888 = shalt.err (!%p5885_p9)
}
  0x97   : > { %s6033_s30 = smov 256   ;;  %s6034_s14 = smov 16  }
  0x98   : > { %p7820_p8 = scmp.ne.s32.totalorder %s7810_s27, 0  ;;  %s5889_s10 = scalar_lea.hbm %s6274_s16, 2048 }
  0x99   : > { %p5890_p10 = scmp.ne.s32.totalorder %s6274_s16, %s5889_s10  ;;  %s5894_s5 = scalar_lea.hbm %s7742_s3, 4096 }
  0x9a   : > { %5433 = dma.hbm_to_vmem [thread:$0]  (!%p7820_p8), %s6308_s21, 1024, %s6310_s11, %s432_s24, %s6033_s30, %s6033_s30, %s6034_s14  }
  0x9b   : > { %p5892_p1 = pnand %p5890_p10, %p7819_p12  ;;  %p5895_p6 = scmp.lt.u32.totalorder %s6274_s16, %s7742_s3 }
  0x9c   : > { %p5896_p11 = scmp.lt.u32.totalorder %s5894_s5, %s5889_s10  ;;  %p5898_p3 = scmp.lt.u32.totalorder %s5889_s10, %s6274_s16 }
  0x9d   : > { %p5893_p4 = pneg %p5892_p1 }
  0x9e   : > { %p5897_p13 = por %p5896_p11, %p5895_p6 }
  0xa0   : > { %p5899_p7 = por %p5898_p3, %p5897_p13 }
  0xa2   : > { %p5900_p0 = pnand %p5899_p7, %p5893_p4 }
  0xa4   : > { %5903 = shalt.err (!%p5900_p0)
}
  0xa5   : > { %s5904_s15 = scalar_lea.vmem %s6278_s2, 2048  ;;  %s6035_s21 = smov [#allocation7]  }
  0xa6   : > { %p5905_p5 = scmp.ne.s32.totalorder %s6278_s2, %s5904_s15  ;;  %s5909_s11 = sshll.u32 %s6035_s21, 4  ;;  %s5910_s11 = int_to_ptr.vmem [resolvable:$false] %s5909_s11 }
  0xa7   : > { %s5911_s24 = scalar_lea.vmem %s5910_s11, 4096  ;;  %p5912_p10 = scmp.lt.s32.totalorder %s6278_s2, %s5910_s11 }
  0xa8   : > { %p5907_p2 = pnand %p5905_p5, %p7819_p12  ;;  %p5913_p1 = scmp.lt.s32.totalorder %s5911_s24, %s5904_s15 }
  0xaa   : > { %p5908_p9 = pneg %p5907_p2  ;;  %p5914_p6 = por %p5913_p1, %p5912_p10 }
  0xac   : > { %p5915_p11 = pnand %p5914_p6, %p5908_p9 }
  0xae   : > { %5918 = shalt.err (!%p5915_p11)
}
  0xaf   : > { %5439 = dma.hbm_to_vmem [thread:$0]  (!%p7820_p8), %s6274_s16, 2048, %s6278_s2, %s6236_s25, %s7813_s17, %s7813_s17, %s6029_s13  }
  0xb0   : > { %p7821_p12 = scmp.ne.s32.totalorder %s7805_s22, 0 }
  0xb1   : > { %s6364_s12 = sand.u32 (!%p7821_p12), 1, %s6017_s26   ;;  %p7822_p4 = scmp.ne.s32.totalorder (!%p7821_p12), %s7800_s19, 0 }
  0xb2   : > { %496 = sbr.rel (%p7821_p12) target bundleno = 2370 (0x942), region = 68  ;;  %s6367_s8 = sshll.u32 (!%p7821_p12), %s6364_s12, 6 }
  0xb3   : > { %s499_s27 = scalar_lea.sflag (!%p7821_p12), [#allocation3], %s6364_s12  ;;  %s6371_s20 = scalar_lea.vmem (!%p7821_p12), [#allocation2], %s6367_s8 }
  0xb9   : > { %5992 = dma.done.wait (%p7822_p4), %s499_s27, 1024  }
  0xba   : > { %5994 = vsyncadd (%p7822_p4), %s499_s27, 4294966272  ;;  %s507_s2 = sand.u32 1, %s6133_s29   ;;  %s4411_s22 = sshll.u32 %s6364_s12, 7 }
  0xbb   : > { %s508_s13 = scalar_lea.sflag [#allocation6], %s507_s2  ;;  %s6379_s25 = scalar_lea.vmem [#allocation5], %s4411_s22 }
  0xbc   : > { %5996 = dma.done.wait (%p7822_p4), %s508_s13, 4096  }
  0xbd   : > { %5998 = vsyncadd (%p7822_p4), %s508_s13, 4294963200  ;;  %s6385_s17 = scalar_lea.vmem [#allocation7], %s4411_s22  ;;  %p7823_p8 = scmp.eq.s32.totalorder %s6133_s29, 0 }
  0xbf   : > { %6000 = dma.done.wait (%p7823_p8), [#allocation9], 512   ;;  %p7824_p13 = pmov %p7823_p8 }
  0xc0   : > { %p591_p3 = scmp.lt.s32.totalorder %s6133_s29, 1  ;;  %v7783_v0 = vmov 0.0   ;;  %v6037_v1 = vmov 0   ;;  %v605_v13 = vld [vmem:[%s6371_s20 + $0x8] sm:$0xff]  ;;  %v607_v14 = vld [vmem:[%s6371_s20 + $0x18] sm:$0xff]  ;;  %v604_v17 = vld [vmem:[%s6371_s20] sm:$0xff] }
  0xc1   : > { %6002 = vsyncadd (%p7824_p13), [#allocation9], 4294966784  ;;  %705 = vmatprep.mubr.f32.mxu0 %v7783_v0  ;;  %5495 = vset.pattern.permute.xlu0 %v6037_v1  ;;  %v5157_v16 = vpack.c.bf16 %v607_v14, %v605_v13  ;;  %v606_v18 = vld [vmem:[%s6371_s20 + $0x10] sm:$0xff]  ;;  %v609_v19 = vld [vmem:[%s6371_s20 + $0x28] sm:$0xff]  ;;  %s7825_s4 = sld [smem:[#allocation27_spill]]  ;;  %vm634_vm0 = vcmask 261120  }
  0xc2   : > { %s592_s16 = scalar_select %p591_p3, %s6133_s29, 1  ;;  %5496 = vset.pattern.permute.xlu1 %v6037_v1  ;;  %v611_v20 = vld [vmem:[%s6371_s20 + $0x38] sm:$0xff]  ;;  %v612_v22 = vld [vmem:[#allocation8] sm:$0xff]  ;;  %v4426_v24 = vld [vmem:[%s6379_s25 + $0x28] sm:$0xff]  ;;  %v5159_v25 = vpack.c.bf16 %v606_v18, %v604_v17  ;;  %vm2165_vm1 = vcmask 130048   ;;  %vm2487_vm2 = vcmask 523264  }
  0xc3   : > { %v4425_v23 = vld [vmem:[%s6379_s25 + $0x20] sm:$0xff]  ;;  %v4427_v29 = vld [vmem:[%s6379_s25 + $0x30] sm:$0xff]  ;;  %v5161_v30 = vpack.c.bf16 %v611_v20, %v609_v19  ;;  %v4428_v32 = vld [vmem:[%s6379_s25 + $0x38] sm:$0xff]  ;;  %s7826_s21 = sld [smem:[#allocation28_spill]]  ;;  %s7827_s22 = sld [smem:[#allocation29_spill]] }
  0xc4   : > { %s4630_s19 = sshll.u32 %s592_s16, 6  ;;  %v608_v26 = vld [vmem:[%s6371_s20 + $0x20] sm:$0xff]  ;;  %v6422_v28 = vpack.c.bf16 %v4426_v24, %v4425_v23  ;;  %v610_v31 = vld [vmem:[%s6371_s20 + $0x30] sm:$0xff]  ;;  %v798_v35 = vld [vmem:[%s6379_s25 + $0x8] sm:$0xff]  ;;  %v6432_v36 = vpack.c.bf16 %v4428_v32, %v4427_v29  ;;  %s7833_s5 = sld [smem:[#allocation31_spill]] }
  0xc5   : > { %s6397_s14 = scalar_lea.vmem %s7739_s0, %s4630_s19  ;;  %v6427_v33 = vld [vmem:[#allocation10] sm:$0xff]  ;;  %v797_v34 = vld [vmem:[%s6379_s25] sm:$0xff]  ;;  %v4438_v38 = vld [vmem:[%s6379_s25 + $0x68] sm:$0xff]  ;;  %v5163_v40 = vpack.c.bf16 %v610_v31, %v608_v26  ;;  %s7828_s19 = sld [smem:[#allocation30_spill]] }
  0xc6   : > { %v597_v2 = vld [vmem:[%s6397_s14 + $0x8] sm:$0xff]  ;;  %v599_v3 = vld [vmem:[%s6397_s14 + $0x18] sm:$0xff]  ;;  %v596_v4 = vld [vmem:[%s6397_s14] sm:$0xff]  ;;  %5174 = vmatprep.subr.bf16.mxu1 %v6422_v28  ;;  %4888 = vmatprep.mubr.msk.f32.mxu1 %vm634_vm0, %v6427_v33  ;;  %v6440_v41 = vpack.c.bf16 %v798_v35, %v797_v34  ;;  %s7553_s9 = scalar_lea.vmem [#allocation12], %s6367_s8  ;;  %s7838_s27 = sld [smem:[#allocation23_spill]] }
  0xc7   : > { %v5149_v5 = vpack.c.bf16 %v599_v3, %v597_v2  ;;  %v598_v6 = vld [vmem:[%s6397_s14 + $0x10] sm:$0xff]  ;;  %v601_v7 = vld [vmem:[%s6397_s14 + $0x28] sm:$0xff]  ;;  %v603_v8 = vld [vmem:[%s6397_s14 + $0x38] sm:$0xff]  ;;  %5176 = vmatpush3.bf16.msra.mxu1 %v6422_v28  ;;  %s4631_s23 = sshll.u32 %s6133_s29, 10  ;;  %s7839_s18 = sld [smem:[#allocation34_spill]] }
  0xc8   : > { %v5151_v9 = vpack.c.bf16 %v598_v6, %v596_v4  ;;  %v5153_v10 = vpack.c.bf16 %v603_v8, %v601_v7  ;;  %v600_v11 = vld [vmem:[%s6397_s14 + $0x20] sm:$0xff]  ;;  %v602_v12 = vld [vmem:[%s6397_s14 + $0x30] sm:$0xff]  ;;  %v623_v27 = vld [vmem:[%s7825_s4 + $0x8] sm:$0xff]  ;;  %5178 = vmatprep.subr.bf16.mxu1 %v6432_v36  ;;  %s4187_s15 = scalar_lea.sflag [#allocation13], %s6364_s12  ;;  %s6038_s24 = smov [#allocation12]  }
  0xc9   : > { %5150 = vmatprep.subr.bf16.mxu0 %v5149_v5  ;;  %v5155_v15 = vpack.c.bf16 %v602_v12, %v600_v11  ;;  %v622_v21 = vld [vmem:[%s7825_s4] sm:$0xff]  ;;  %v613_v39 = vld [vmem:[#allocation8 + $0x8] sm:$0xff]  ;;  %v799_v42 = vld [vmem:[%s6379_s25 + $0x10] sm:$0xff]  ;;  %s5923_s2 = sshll.u32 %s6038_s24, 4  ;;  %s5924_s2 = int_to_ptr.vmem [resolvable:$false] %s5923_s2 }
  0xca   : > { %5152 = vmatpush1.bf16.msra.mxu0 %v5151_v9  ;;  %626 = vperm.xlu0 %5495, %v622_v21   ;;  %v4437_v37 = vld [vmem:[%s6379_s25 + $0x60] sm:$0xff]  ;;  %v800_v43 = vld [vmem:[%s6379_s25 + $0x18] sm:$0xff]  ;;  %v4439_v45 = vld [vmem:[%s6379_s25 + $0x70] sm:$0xff]  ;;  %s5925_s13 = scalar_lea.vmem %s5924_s2, 2048 }
  0xcb   : > { %5154 = vmatprep.subr.bf16.mxu0 %v5153_v10  ;;  %v6446_v44 = vpack.c.bf16 %v4438_v38, %v4437_v37  ;;  %v4440_v46 = vld [vmem:[%s6379_s25 + $0x78] sm:$0xff]  ;;  %v6453_v47 = vpack.c.bf16 %v800_v43, %v799_v42  ;;  %5180 = vmatpush3.bf16.msra.mxu1 %v6432_v36  ;;  %v4431_v48 = vld [vmem:[%s6379_s25 + $0x40] sm:$0xff]  ;;  %v4432_v49 = vld [vmem:[%s6379_s25 + $0x48] sm:$0xff] }
  0xcc   : > { %v795_v50 = vld [vmem:[%s7826_s21] sm:$0xff]  ;;  %v6463_v51 = vpack.c.bf16 %v4440_v46, %v4439_v45  ;;  %v6467_v52 = vld [vmem:[#allocation10 + $0x8] sm:$0xff]  ;;  %v4446_v54 = vld [vmem:[%s6385_s17 + $0x28] sm:$0xff]  ;;  %v6472_v55 = vpack.c.bf16 %v4432_v49, %v4431_v48  ;;  %p7840_p0 = scmp.ne.s32.totalorder %s7838_s27, 0 }
  0xcd   : > { %5190 = vmatprep.subr.bf16.mxu1 %v6446_v44  ;;  %1130 = vperm.xlu1 %5496, %v795_v50   ;;  %v4445_v53 = vld [vmem:[%s6385_s17 + $0x20] sm:$0xff]  ;;  %v4433_v56 = vld [vmem:[%s6379_s25 + $0x50] sm:$0xff]  ;;  %v4434_v57 = vld [vmem:[%s6379_s25 + $0x58] sm:$0xff]  ;;  %s7835_s25 = sld [smem:[#allocation32_spill]]  ;;  %s7625_s7 = scalar_lea.hbm %s7839_s18, %s4631_s23 }
  0xce   : > { %5156 = vmatpush1.bf16.msra.mxu0 %v5155_v15  ;;  %631 = vperm.xlu0 %5495, %v623_v27   ;;  %v796_v58 = vld [vmem:[%s7826_s21 + $0x8] sm:$0xff]  ;;  %v6486_v59 = vpack.c.bf16 %v4446_v54, %v4445_v53  ;;  %v4447_v60 = vld [vmem:[%s6385_s17 + $0x30] sm:$0xff]  ;;  %v4448_v61 = vld [vmem:[%s6385_s17 + $0x38] sm:$0xff]  ;;  %v6494_v62 = vpack.c.bf16 %v4434_v57, %v4433_v56 }
  0xcf   : > { %5158 = vmatprep.subr.bf16.mxu0 %v5157_v16  ;;  %4889 = vmatmul.mubr.msk.f32.vlgmr.msra.gmra.mrb[0].mxu1 %vm634_vm0, %v6467_v52  ;;  %v1140_v63 = vld [vmem:[%s6385_s17] sm:$0xff]  ;;  %v1141_v1 = vld [vmem:[%s6385_s17 + $0x8] sm:$0xff]  ;;  %v6502_v2 = vpack.c.bf16 %v4448_v61, %v4447_v60  ;;  %v1142_v6 = vld [vmem:[%s6385_s17 + $0x10] sm:$0xff] }
  0xd0   : > { %5192 = vmatpush3.bf16.msra.mxu1 %v6446_v44  ;;  %4910 = vmatprep.mubr.msk.f32.mxu1 %vm634_vm0, %v6427_v33  ;;  %v4457_v3 = vld [vmem:[%s6385_s17 + $0x60] sm:$0xff]  ;;  %v4458_v4 = vld [vmem:[%s6385_s17 + $0x68] sm:$0xff]  ;;  %v6510_v5 = vpack.c.bf16 %v1141_v1, %v1140_v63  ;;  %v1143_v7 = vld [vmem:[%s6385_s17 + $0x18] sm:$0xff] }
  0xd1   : > { %4419 = vmatmul.mubr.msk.f32.vlgmr.msra.gmra.mrb[0].mxu0 %vm634_vm0, %v612_v22  ;;  %5194 = vmatprep.subr.bf16.mxu1 %v6463_v51  ;;  %v6520_v8 = vpack.c.bf16 %v4458_v4, %v4457_v3  ;;  %v4459_v9 = vld [vmem:[%s6385_s17 + $0x70] sm:$0xff]  ;;  %v4460_v10 = vld [vmem:[%s6385_s17 + $0x78] sm:$0xff]  ;;  %v5201_v11 = vpack.c.bf16 %v1143_v7, %v1142_v6  ;;  %v4451_v12 = vld [vmem:[%s6385_s17 + $0x40] sm:$0xff] }
  0xd2   : > { %5160 = vmatpush1.bf16.msra.mxu0 %v5159_v25  ;;  %711 = vmatprep.mubr.f32.mxu0 %v7783_v0  ;;  %v4452_v13 = vld [vmem:[%s6385_s17 + $0x48] sm:$0xff]  ;;  %v6532_v14 = vpack.c.bf16 %v4460_v10, %v4459_v9  ;;  %v4453_v16 = vld [vmem:[%s6385_s17 + $0x50] sm:$0xff]  ;;  %v4454_v17 = vld [vmem:[%s6385_s17 + $0x58] sm:$0xff] }
  0xd3   : > { %5162 = vmatprep.subr.bf16.mxu0 %v5161_v30  ;;  %1135 = vperm.xlu1 %5496, %v796_v58   ;;  %v5213_v15 = vpack.c.bf16 %v4452_v13, %v4451_v12  ;;  %v5217_v18 = vpack.c.bf16 %v4454_v17, %v4453_v16  ;;  %v616_v19 = vld [vmem:[%s7827_s22] sm:$0xff]  ;;  %v617_v20 = vld [vmem:[%s7827_s22 + $0x8] sm:$0xff]  ;;  %vm7027_vm3 = vmpackc.low %vm2487_vm2, %vm2487_vm2  ;;  %s7836_s17 = smov %s7835_s25 }
  0xd4   : > { %5196 = vmatpush3.bf16.msra.mxu1 %v6463_v51 }
  0xd5   : > { %4420 = vmatmul.mubr.msk.f32.gmra.mrb[2].mxu0 %vm634_vm0, %v613_v39  ;;  %5206 = vmatprep.subr.bf16.mxu1 %v6486_v59 }
  0xd6   : > { %5164 = vmatpush1.bf16.msra.mxu0 %v5163_v40  ;;  %782 = vmatprep.mubr.f32.mxu0 %v7783_v0 }
  0xd7   : > { %5166 = vmatprep.subr.bf16.mxu0 %v6440_v41  ;;  %4911 = vmatmul.mubr.msk.f32.vlgmr.msra.gmra.mrb[2].mxu1 %vm634_vm0, %v6467_v52 }
  0xd8   : > { %5208 = vmatpush3.bf16.msra.mxu1 %v6486_v59  ;;  %4932 = vmatprep.mubr.msk.f32.mxu1 %vm634_vm0, %v6427_v33 }
  0xd9   : > { %4421 = vmatmul.mubr.msk.f32.vlgmr.msra.gmra.mrb[4].mxu0 %vm634_vm0, %v612_v22  ;;  %5210 = vmatprep.subr.bf16.mxu1 %v6502_v2 }
  0xda   : > { %788 = vmatprep.mubr.f32.mxu0 %v7783_v0  ;;  %5168 = vmatpush3.bf16.msra.mxu0 %v6440_v41 }
  0xdb   : > { %5170 = vmatprep.subr.bf16.mxu0 %v6453_v47 }
  0xdc   : > { %5212 = vmatpush3.bf16.msra.mxu1 %v6502_v2 }
  0xdd   : > { %4422 = vmatmul.mubr.msk.f32.gmra.mrb[6].mxu0 %vm634_vm0, %v613_v39  ;;  %5222 = vmatprep.subr.bf16.mxu1 %v6520_v8 }
  0xde   : > { %5172 = vmatpush3.bf16.msra.mxu0 %v6453_v47  ;;  %4877 = vmatprep.mubr.msk.f32.mxu0 %vm634_vm0, %v6427_v33 }
  0xdf   : > { %5182 = vmatprep.subr.bf16.mxu0 %v6472_v55  ;;  %4933 = vmatmul.mubr.msk.f32.vlgmr.msra.gmra.mrb[4].mxu1 %vm634_vm0, %v6467_v52 }
  0xe0   : > { %5224 = vmatpush3.bf16.msra.mxu1 %v6520_v8  ;;  %4954 = vmatprep.mubr.msk.f32.mxu1 %vm634_vm0, %v6427_v33 }
  0xe1   : > { %4878 = vmatmul.mubr.msk.f32.vlgmr.msra.gmra.mrb[8].mxu0 %vm634_vm0, %v6467_v52  ;;  %5226 = vmatprep.subr.bf16.mxu1 %v6532_v14 }
  0xe2   : > { %5184 = vmatpush3.bf16.msra.mxu0 %v6472_v55  ;;  %4899 = vmatprep.mubr.msk.f32.mxu0 %vm634_vm0, %v6427_v33 }
  0xe3   : > { %5186 = vmatprep.subr.bf16.mxu0 %v6494_v62 }
  0xe4   : > { %5228 = vmatpush3.bf16.msra.mxu1 %v6532_v14 }
  0xe5   : > { %5238 = vmatprep.subr.bf16.mxu1 %v6422_v28 }
  0xe6   : > { %5188 = vmatpush3.bf16.msra.mxu0 %v6494_v62 }
  0xe7   : > { %5198 = vmatprep.subr.bf16.mxu0 %v6510_v5  ;;  %4955 = vmatmul.mubr.msk.f32.vlgmr.msra.gmra.mrb[6].mxu1 %vm634_vm0, %v6467_v52 }
  0xe8   : > { %5240 = vmatpush3.bf16.msra.mxu1 %v6422_v28  ;;  %4976 = vmatprep.mubr.msk.f32.mxu1 %vm634_vm0, %v616_v19 }
  0xe9   : > { %4900 = vmatmul.mubr.msk.f32.vlgmr.msra.gmra.mrb[10].mxu0 %vm634_vm0, %v6467_v52  ;;  %5242 = vmatprep.subr.bf16.mxu1 %v6432_v36 }
  0xea   : > { %5200 = vmatpush3.bf16.msra.mxu0 %v6510_v5  ;;  %4921 = vmatprep.mubr.msk.f32.mxu0 %vm634_vm0, %v6427_v33 }
  0xeb   : > { %5202 = vmatprep.subr.bf16.mxu0 %v5201_v11 }
  0xec   : > { %5244 = vmatpush3.bf16.msra.mxu1 %v6432_v36 }
  0xed   : > { %5254 = vmatprep.subr.bf16.mxu1 %v6446_v44 }
  0xee   : > { %5204 = vmatpush3.bf16.msra.mxu0 %v5201_v11 }
  0xef   : > { %5214 = vmatprep.subr.bf16.mxu0 %v5213_v15  ;;  %4977 = vmatmul.mubr.msk.f32.vlgmr.msra.gmra.mrb[8].mxu1 %vm634_vm0, %v617_v20 }
  0xf0   : > { %5256 = vmatpush3.bf16.msra.mxu1 %v6446_v44  ;;  %4998 = vmatprep.mubr.msk.f32.mxu1 %vm634_vm0, %v616_v19 }
  0xf1   : > { %4922 = vmatmul.mubr.msk.f32.vlgmr.msra.gmra.mrb[12].mxu0 %vm634_vm0, %v6467_v52  ;;  %5258 = vmatprep.subr.bf16.mxu1 %v6463_v51 }
  0xf2   : > { %5216 = vmatpush3.bf16.msra.mxu0 %v5213_v15  ;;  %4943 = vmatprep.mubr.msk.f32.mxu0 %vm634_vm0, %v6427_v33 }
  0xf3   : > { %5218 = vmatprep.subr.bf16.mxu0 %v5217_v18 }
  0xf4   : > { %5260 = vmatpush3.bf16.msra.mxu1 %v6463_v51 }
  0xf5   : > { %5270 = vmatprep.subr.bf16.mxu1 %v6486_v59 }
  0xf6   : > { %5220 = vmatpush3.bf16.msra.mxu0 %v5217_v18 }
  0xf7   : > { %5230 = vmatprep.subr.bf16.mxu0 %v6440_v41  ;;  %4999 = vmatmul.mubr.msk.f32.vlgmr.msra.gmra.mrb[10].mxu1 %vm634_vm0, %v617_v20 }
  0xf8   : > { %5272 = vmatpush3.bf16.msra.mxu1 %v6486_v59  ;;  %5020 = vmatprep.mubr.msk.f32.mxu1 %vm634_vm0, %v616_v19 }
  0xf9   : > { %4944 = vmatmul.mubr.msk.f32.vlgmr.msra.gmra.mrb[14].mxu0 %vm634_vm0, %v6467_v52  ;;  %5274 = vmatprep.subr.bf16.mxu1 %v6502_v2 }
  0xfa   : > { %5232 = vmatpush3.bf16.msra.mxu0 %v6440_v41  ;;  %4965 = vmatprep.mubr.msk.f32.mxu0 %vm634_vm0, %v616_v19 }
  0xfb   : > { %5234 = vmatprep.subr.bf16.mxu0 %v6453_v47 }
  0xfc   : > { %5276 = vmatpush3.bf16.msra.mxu1 %v6502_v2 }
  0xfd   : > { %5286 = vmatprep.subr.bf16.mxu1 %v6520_v8 }
  0xfe   : > { %5236 = vmatpush3.bf16.msra.mxu0 %v6453_v47 }
  0xff   : > { %5246 = vmatprep.subr.bf16.mxu0 %v6472_v55  ;;  %5021 = vmatmul.mubr.msk.f32.vlgmr.msra.gmra.mrb[12].mxu1 %vm634_vm0, %v617_v20 }
 0x100   : > { %5288 = vmatpush3.bf16.msra.mxu1 %v6520_v8  ;;  %5042 = vmatprep.mubr.msk.f32.mxu1 %vm634_vm0, %v616_v19 }
 0x101   : > { %4966 = vmatmul.mubr.msk.f32.vlgmr.msra.gmra.mrb[16].mxu0 %vm634_vm0, %v617_v20  ;;  %5290 = vmatprep.subr.bf16.mxu1 %v6532_v14 }
 0x102   : > { %5248 = vmatpush3.bf16.msra.mxu0 %v6472_v55  ;;  %4987 = vmatprep.mubr.msk.f32.mxu0 %vm634_vm0, %v616_v19 }
 0x103   : > { %5250 = vmatprep.subr.bf16.mxu0 %v6494_v62 }
 0x104   : > { %5292 = vmatpush3.bf16.msra.mxu1 %v6532_v14 }
 0x106   : > { %5252 = vmatpush3.bf16.msra.mxu0 %v6494_v62 }
 0x107   : > { %5262 = vmatprep.subr.bf16.mxu0 %v6510_v5  ;;  %5043 = vmatmul.mubr.msk.f32.vlgmr.msra.gmra.mrb[14].mxu1 %vm634_vm0, %v617_v20 }
 0x109   : > { %4988 = vmatmul.mubr.msk.f32.vlgmr.msra.gmra.mrb[18].mxu0 %vm634_vm0, %v617_v20 }
 0x10a   : > { %5264 = vmatpush3.bf16.msra.mxu0 %v6510_v5  ;;  %5009 = vmatprep.mubr.msk.f32.mxu0 %vm634_vm0, %v616_v19 }
 0x10b   : > { %5266 = vmatprep.subr.bf16.mxu0 %v5201_v11 }
 0x10e   : > { %5268 = vmatpush3.bf16.msra.mxu0 %v5201_v11 }
 0x10f   : > { %5278 = vmatprep.subr.bf16.mxu0 %v5213_v15 }
 0x111   : > { %5010 = vmatmul.mubr.msk.f32.vlgmr.msra.gmra.mrb[20].mxu0 %vm634_vm0, %v617_v20 }
 0x112   : > { %5280 = vmatpush3.bf16.msra.mxu0 %v5213_v15  ;;  %5031 = vmatprep.mubr.msk.f32.mxu0 %vm634_vm0, %v616_v19 }
 0x113   : > { %5282 = vmatprep.subr.bf16.mxu0 %v5217_v18 }
 0x116   : > { %5284 = vmatpush3.bf16.msra.mxu0 %v5217_v18 }
 0x119   : > { %5032 = vmatmul.mubr.msk.f32.vlgmr.msra.gmra.mrb[22].mxu0 %vm634_vm0, %v617_v20 }
 0x149   : > { %v6602_v21 = vpop.permute.xlu0 %626 }
 0x14c   : > { %v1131_v43 = vpop.permute.xlu1 %1130 }
 0x14d   : > { %v6606_v26 = vpop.permute.xlu0 %631 }
 0x152   : > { %v1136_v52 = vpop.permute.xlu1 %1135 }
 0x1a2   : > { %v4890_v33 = vpop.f32.mrb[0].mxu1 }
 0x1a3   : > { %v953_v34 = vpop.f32.mrb[1].mxu1 }
 0x1a4   : > { %v707_v22 = vpop.f32.mrb[0].mxu0 }
 0x1a5   : > { %v708_v23 = vadd.f32 %v707_v22, %v6602_v21  ;;  %v709_v24 = vpop.f32.mrb[1].mxu0 }
 0x1a6   : > { %v710_v25 = vadd.f32 %v709_v24, %v6602_v21 }
 0x1a7   : > { %2101 = vxpose.xlu0.b32.start [1/2] (short) %v708_v23, 128 }
 0x1a8   : > { %v713_v27 = vpop.f32.mrb[2].mxu0  ;;  %2133 = vxpose.xlu1.b32.start [1/2] (short) %v710_v25, 128 }
 0x1a9   : > { %v714_v28 = vadd.f32 %v713_v27, %v6606_v26  ;;  %v715_v29 = vpop.f32.mrb[3].mxu0 }
 0x1aa   : > { %v716_v30 = vadd.f32 %v715_v29, %v6606_v26  ;;  %v4912_v41 = vpop.f32.mrb[2].mxu1 }
 0x1ab   : > { %2102 = vxpose.xlu0.b32.end [2/2] (short) %v714_v28, 128  ;;  %v1117_v42 = vpop.f32.mrb[3].mxu1 }
 0x1ac   : > { %v6610_v31 = vpop.f32.mrb[4].mxu0  ;;  %2134 = vxpose.xlu1.b32.end [2/2] (short) %v716_v30, 128 }
 0x1ad   : > { %v6612_v32 = vpop.f32.mrb[5].mxu0 }
 0x1b0   : > { %v6614_v35 = vpop.f32.mrb[6].mxu0 }
 0x1b1   : > { %v6616_v36 = vpop.f32.mrb[7].mxu0 }
 0x1b2   : > { %v4934_v48 = vpop.f32.mrb[4].mxu1 }
 0x1b3   : > { %v1290_v50 = vpop.f32.mrb[5].mxu1 }
 0x1b4   : > { %v4879_v37 = vpop.f32.mrb[8].mxu0 }
 0x1b5   : > { %v963_v38 = vmax.f32 %v4879_v37, %v4890_v33  ;;  %v873_v39 = vpop.f32.mrb[9].mxu0 }
 0x1b6   : > { %v962_v40 = vmax.f32 %v873_v39, %v953_v34 }
 0x1ba   : > { %v4956_v60 = vpop.f32.mrb[6].mxu1 }
 0x1bb   : > { %v1454_v61 = vpop.f32.mrb[7].mxu1 }
 0x1bc   : > { %v4901_v44 = vpop.f32.mrb[10].mxu0 }
 0x1bd   : > { %v1045_v45 = vmax.f32 %v963_v38, %v4901_v44  ;;  %v1035_v46 = vpop.f32.mrb[11].mxu0 }
 0x1be   : > { %v1044_v47 = vmax.f32 %v962_v40, %v1035_v46 }
 0x1bf   : > { %v1127_v49 = vmax.f32 %v1045_v45, %v4912_v41 }
 0x1c0   : > { %v1126_v51 = vmax.f32 %v1044_v47, %v1117_v42 }
 0x1c1   : > { %v1139_v53 = vadd.f32 %v1136_v52, %v1127_v49 }
 0x1c2   : > { %v1138_v54 = vadd.f32 %v1131_v43, %v1126_v51  ;;  %v6622_v9 = vpop.f32.mrb[8].mxu1 }
 0x1c4   : > { %v4923_v55 = vpop.f32.mrb[12].mxu0  ;;  %v6618_v56 = vpack.c.bf16 %v1139_v53, %v1138_v54 }
 0x1c5   : > { %v1300_v57 = vmax.f32 %v4923_v55, %v4934_v48  ;;  %v1210_v58 = vpop.f32.mrb[13].mxu0  ;;  %v1616_v55 = vpop.f32.mrb[9].mxu1 }
 0x1c6   : > { %v1299_v59 = vmax.f32 %v1210_v58, %v1290_v50 }
 0x1cc   : > { %v4945_v62 = vpop.f32.mrb[14].mxu0 }
 0x1cd   : > { %v1382_v63 = vmax.f32 %v1300_v57, %v4945_v62  ;;  %v1372_v1 = vpop.f32.mrb[15].mxu0 }
 0x1ce   : > { %v1381_v2 = vmax.f32 %v1299_v59, %v1372_v1 }
 0x1cf   : > { %v1464_v3 = vmax.f32 %v1382_v63, %v4956_v60  ;;  %v6678_v60 = vpop.f32.mrb[10].mxu1 }
 0x1d0   : > { %v1463_v4 = vmax.f32 %v1381_v2, %v1454_v61  ;;  %v6683_v62 = vpop.f32.mrb[11].mxu1 }
 0x1d1   : > { %v1466_v5 = vadd.f32 %v1464_v3, %v1136_v52 }
 0x1d2   : > { %v1465_v6 = vadd.f32 %v1463_v4, %v1131_v43  ;;  %v5022_v2 = vpop.f32.mrb[12].mxu1 }
 0x1d3   : > { %v1934_v4 = vpop.f32.mrb[13].mxu1 }
 0x1d4   : > { %v5293_v7 = vpack.c.bf16 %v1466_v5, %v1465_v6  ;;  %v6620_v8 = vpop.f32.mrb[16].mxu0 }
 0x1d5   : > { %v6624_v10 = vpop.f32.mrb[17].mxu0  ;;  %v1626_v11 = vmax.f32 %v6620_v8, %v6622_v9 }
 0x1d6   : > { %5294 = vmatprep.subr.bf16.mxu0 %v5293_v7  ;;  %v1625_v57 = vmax.f32 %v6624_v10, %v1616_v55 }
 0x1d7   : > { %5296 = vmatpush3.bf16.msra.mxu0 %v5293_v7 }
 0x1da   : > { %v6696_v7 = vpop.f32.mrb[14].mxu1 }
 0x1db   : > { %v6698_v8 = vpop.f32.mrb[15].mxu1 }
 0x1dc   : > { %v6628_v12 = vpop.f32.mrb[18].mxu0 }
 0x1dd   : > { %v6630_v13 = vpop.f32.mrb[19].mxu0  ;;  %v6676_v59 = vmax.f32 %v1626_v11, %v6628_v12 }
 0x1de   : > { %v6681_v61 = vmax.f32 %v1625_v57, %v6630_v13 }
 0x1e4   : > { %v6632_v14 = vpop.f32.mrb[20].mxu0 }
 0x1e5   : > { %v6634_v15 = vpop.f32.mrb[21].mxu0  ;;  %v1944_v3 = vmax.f32 %v6632_v14, %v5022_v2 }
 0x1e6   : > { %v1943_v5 = vmax.f32 %v6634_v15, %v1934_v4 }
 0x1ec   : > { %v6636_v16 = vpop.f32.mrb[22].mxu0 }
 0x1ed   : > { %v6638_v17 = vpop.f32.mrb[23].mxu0  ;;  %v6694_v6 = vmax.f32 %v1944_v3, %v6636_v16 }
 0x1ee   : > { %v6703_v10 = vmax.f32 %v1943_v5, %v6638_v17 }
 0x1f0   : > { %v2097_v11 = vmax.f32 %v6703_v10, %v6698_v8 }
 0x227   : > { %v2117_v18 = vpop.trf.xlu0 }
 0x228   : > { %5049 = vmatprep.mubr.msk.f32.mxu0 %vm2165_vm1, %v2117_v18  ;;  %v2149_v19 = vpop.trf.xlu1 }
 0x22b   : > { %v2118_v20 = vpop.trf.xlu0 }
 0x22c   : > { %5050 = vmatmul.mubr.msk.f32.vlgmr.msra.gmra.mrb[24].mxu0 %vm2165_vm1, %v2118_v20  ;;  %v2150_v22 = vpop.trf.xlu1 }
 0x22f   : > { %v2119_v23 = vpop.trf.xlu0 }
 0x230   : > { %5052 = vmatprep.mubr.msk.f32.mxu0 %vm2165_vm1, %v2119_v23  ;;  %v2151_v25 = vpop.trf.xlu1 }
 0x233   : > { %v2120_v24 = vpop.trf.xlu0 }
 0x234   : > { %5053 = vmatmul.mubr.msk.f32.gmra.mrb[26].mxu0 %vm2165_vm1, %v2120_v24  ;;  %v2152_v28 = vpop.trf.xlu1 }
 0x237   : > { %v2121_v27 = vpop.trf.xlu0 }
 0x238   : > { %5055 = vmatprep.mubr.msk.f32.mxu0 %vm2165_vm1, %v2121_v27  ;;  %v2153_v33 = vpop.trf.xlu1 }
 0x23b   : > { %v2122_v29 = vpop.trf.xlu0 }
 0x23c   : > { %5056 = vmatmul.mubr.msk.f32.gmra.mrb[28].mxu0 %vm2165_vm1, %v2122_v29  ;;  %v2154_v37 = vpop.trf.xlu1 }
 0x23f   : > { %v2123_v30 = vpop.trf.xlu0 }
 0x240   : > { %5058 = vmatprep.mubr.msk.f32.mxu0 %vm2165_vm1, %v2123_v30  ;;  %v2155_v40 = vpop.trf.xlu1 }
 0x243   : > { %v2124_v34 = vpop.trf.xlu0 }
 0x244   : > { %5059 = vmatmul.mubr.msk.f32.gmra.mrb[30].mxu0 %vm2165_vm1, %v2124_v34  ;;  %v2156_v42 = vpop.trf.xlu1 }
 0x247   : > { %v2125_v38 = vpop.trf.xlu0 }
 0x248   : > { %5061 = vmatprep.mubr.msk.f32.mxu0 %vm2165_vm1, %v2125_v38  ;;  %v2157_v45 = vpop.trf.xlu1 }
 0x24b   : > { %v2126_v39 = vpop.trf.xlu0 }
 0x24c   : > { %5062 = vmatmul.mubr.msk.f32.gmra.mrb[32].mxu0 %vm2165_vm1, %v2126_v39  ;;  %v2158_v47 = vpop.trf.xlu1 }
 0x24f   : > { %v2127_v41 = vpop.trf.xlu0 }
 0x250   : > { %5064 = vmatprep.mubr.msk.f32.mxu0 %vm2165_vm1, %v2127_v41  ;;  %v2159_v50 = vpop.trf.xlu1 }
 0x253   : > { %v2128_v43 = vpop.trf.xlu0 }
 0x254   : > { %5065 = vmatmul.mubr.msk.f32.gmra.mrb[34].mxu0 %vm2165_vm1, %v2128_v43  ;;  %v2160_v51 = vpop.trf.xlu1 }
 0x257   : > { %v2129_v44 = vpop.trf.xlu0 }
 0x258   : > { %5067 = vmatprep.mubr.msk.f32.mxu0 %vm2165_vm1, %v2129_v44  ;;  %v2161_v52 = vpop.trf.xlu1 }
 0x25b   : > { %v2130_v46 = vpop.trf.xlu0 }
 0x25c   : > { %5068 = vmatmul.mubr.msk.f32.gmra.mrb[36].mxu0 %vm2165_vm1, %v2130_v46  ;;  %v2162_v53 = vpop.trf.xlu1 }
 0x25f   : > { %v2131_v48 = vpop.trf.xlu0 }
 0x260   : > { %5070 = vmatprep.mubr.msk.f32.mxu0 %vm2165_vm1, %v2131_v48  ;;  %v2163_v54 = vpop.trf.xlu1 }
 0x263   : > { %v2132_v49 = vpop.trf.xlu0 }
 0x264   : > { %5071 = vmatmul.mubr.msk.f32.gmra.mrb[38].mxu0 %vm2165_vm1, %v2132_v49  ;;  %v2164_v58 = vpop.trf.xlu1 }
 0x265   : > { %5073 = vmatprep.mubr.msk.f32.mxu0 %vm2165_vm1, %v2149_v19 }
 0x268   : > { %5074 = vmatmul.mubr.msk.f32.gmra.mrb[40].mxu0 %vm2165_vm1, %v2150_v22 }
 0x269   : > { %5076 = vmatprep.mubr.msk.f32.mxu0 %vm2165_vm1, %v2151_v25 }
 0x26c   : > { %5077 = vmatmul.mubr.msk.f32.gmra.mrb[42].mxu0 %vm2165_vm1, %v2152_v28 }
 0x26d   : > { %5079 = vmatprep.mubr.msk.f32.mxu0 %vm2165_vm1, %v2153_v33 }
 0x270   : > { %5080 = vmatmul.mubr.msk.f32.gmra.mrb[44].mxu0 %vm2165_vm1, %v2154_v37 }
 0x271   : > { %5082 = vmatprep.mubr.msk.f32.mxu0 %vm2165_vm1, %v2155_v40 }
 0x274   : > { %5083 = vmatmul.mubr.msk.f32.gmra.mrb[46].mxu0 %vm2165_vm1, %v2156_v42 }
 0x275   : > { %5085 = vmatprep.mubr.msk.f32.mxu0 %vm2165_vm1, %v2157_v45 }
 0x278   : > { %5086 = vmatmul.mubr.msk.f32.gmra.mrb[48].mxu0 %vm2165_vm1, %v2158_v47 }
 0x279   : > { %5088 = vmatprep.mubr.msk.f32.mxu0 %vm2165_vm1, %v2159_v50 }
 0x27c   : > { %5089 = vmatmul.mubr.msk.f32.gmra.mrb[50].mxu0 %vm2165_vm1, %v2160_v51 }
 0x27d   : > { %5091 = vmatprep.mubr.msk.f32.mxu0 %vm2165_vm1, %v2161_v52 }
 0x280   : > { %5092 = vmatmul.mubr.msk.f32.gmra.mrb[52].mxu0 %vm2165_vm1, %v2162_v53 }
 0x281   : > { %5094 = vmatprep.mubr.msk.f32.mxu0 %vm2165_vm1, %v2163_v54 }
 0x284   : > { %5095 = vmatmul.mubr.msk.f32.gmra.mrb[54].mxu0 %vm2165_vm1, %v2164_v58 }
 0x285   : > { %3119 = vmatprep.mubr.f32.mxu0 %v7783_v0 }
 0x2ff   : > { %v6707_v12 = vpop.f32.mrb[24].mxu0 }
 0x300   : > { %v6709_v13 = vpop.f32.mrb[25].mxu0  ;;  %v2491_v41 = vsel %vm2487_vm2, %v6707_v12, -inf }
 0x301   : > { %v2488_v14 = vsel %vm2487_vm2, %v6709_v13, -inf }
 0x302   : > { %2489 = vmax.xlane.f32.xlu0 %v2488_v14 }
 0x307   : > { %v6713_v15 = vpop.f32.mrb[26].mxu0 }
 0x308   : > { %v6715_v16 = vpop.f32.mrb[27].mxu0  ;;  %v2497_v50 = vsel %vm2487_vm2, %v6713_v15, -inf }
 0x309   : > { %v2494_v46 = vsel %vm2487_vm2, %v6715_v16, -inf }
 0x30f   : > { %v6717_v18 = vpop.f32.mrb[28].mxu0 }
 0x310   : > { %v6719_v17 = vpop.f32.mrb[29].mxu0  ;;  %v2503_v2 = vsel %vm2487_vm2, %v6717_v18, -inf }
 0x311   : > { %v2500_v54 = vsel %vm2487_vm2, %v6719_v17, -inf }
 0x317   : > { %v6721_v19 = vpop.f32.mrb[30].mxu0 }
 0x318   : > { %v6723_v20 = vpop.f32.mrb[31].mxu0 }
 0x319   : > { %v2506_v14 = vsel %vm2487_vm2, %v6723_v20, -inf }
 0x31f   : > { %v6725_v22 = vpop.f32.mrb[32].mxu0 }
 0x320   : > { %v6727_v23 = vpop.f32.mrb[33].mxu0 }
 0x327   : > { %v6729_v24 = vpop.f32.mrb[34].mxu0 }
 0x328   : > { %v6731_v25 = vpop.f32.mrb[35].mxu0 }
 0x32f   : > { %v6733_v27 = vpop.f32.mrb[36].mxu0 }
 0x330   : > { %v6735_v28 = vpop.f32.mrb[37].mxu0 }
 0x337   : > { %v6737_v29 = vpop.f32.mrb[38].mxu0 }
 0x338   : > { %v6739_v30 = vpop.f32.mrb[39].mxu0 }
 0x33b   : > { %v6741_v33 = vpop.f32.mrb[40].mxu0 }
 0x33c   : > { %v6743_v34 = vpop.f32.mrb[41].mxu0  ;;  %v2539_v37 = vsel %vm2487_vm2, %v6741_v33, -inf }
 0x33d   : > { %2540 = vmax.xlane.f32.xlu1 %v2539_v37  ;;  %v2536_v38 = vsel %vm2487_vm2, %v6743_v34, -inf }
 0x33e   : > { %2537 = vmax.xlane.f32.xlu0 %v2536_v38 }
 0x33f   : > { %v6749_v39 = vpop.f32.mrb[42].mxu0 }
 0x340   : > { %v6751_v40 = vpop.f32.mrb[43].mxu0  ;;  %v2545_v45 = vsel %vm2487_vm2, %v6749_v39, -inf }
 0x341   : > { %v2542_v42 = vsel %vm2487_vm2, %v6751_v40, -inf }
 0x342   : > { %2492 = vmax.xlane.f32.xlu0 %v2491_v41  ;;  %2543 = vmax.xlane.f32.xlu1 %v2542_v42  ;;  %v2509_v42 = vsel %vm2487_vm2, %v6721_v19, -inf }
 0x343   : > { %v6757_v43 = vpop.f32.mrb[44].mxu0 }
 0x344   : > { %v6759_v44 = vpop.f32.mrb[45].mxu0  ;;  %v2551_v53 = vsel %vm2487_vm2, %v6757_v43, -inf }
 0x345   : > { %v2548_v47 = vsel %vm2487_vm2, %v6759_v44, -inf }
 0x346   : > { %2546 = vmax.xlane.f32.xlu0 %v2545_v45  ;;  %2495 = vmax.xlane.f32.xlu1 %v2494_v46  ;;  %v2512_v46 = vsel %vm2487_vm2, %v6727_v23, -inf }
 0x347   : > { %v6767_v48 = vpop.f32.mrb[46].mxu0 }
 0x348   : > { %v6769_v49 = vpop.f32.mrb[47].mxu0  ;;  %v2557_v5 = vsel %vm2487_vm2, %v6767_v48, -inf }
 0x349   : > { %v2554_v55 = vsel %vm2487_vm2, %v6769_v49, -inf }
 0x34a   : > { %2498 = vmax.xlane.f32.xlu0 %v2497_v50  ;;  %2549 = vmax.xlane.f32.xlu1 %v2548_v47  ;;  %v2515_v50 = vsel %vm2487_vm2, %v6725_v22, -inf }
 0x34b   : > { %v6773_v51 = vpop.f32.mrb[48].mxu0 }
 0x34c   : > { %v6775_v52 = vpop.f32.mrb[49].mxu0  ;;  %v2563_v45 = vsel %vm2487_vm2, %v6773_v51, -inf }
 0x34d   : > { %v2560_v37 = vsel %vm2487_vm2, %v6775_v52, -inf }
 0x34e   : > { %2552 = vmax.xlane.f32.xlu0 %v2551_v53  ;;  %2501 = vmax.xlane.f32.xlu1 %v2500_v54  ;;  %v2518_v54 = vsel %vm2487_vm2, %v6731_v25, -inf }
 0x34f   : > { %v6783_v57 = vpop.f32.mrb[50].mxu0 }
 0x350   : > { %v6785_v58 = vpop.f32.mrb[51].mxu0  ;;  %v2569_v53 = vsel %vm2487_vm2, %v6783_v57, -inf }
 0x351   : > { %v2566_v47 = vsel %vm2487_vm2, %v6785_v58, -inf }
 0x352   : > { %2504 = vmax.xlane.f32.xlu0 %v2503_v2  ;;  %2555 = vmax.xlane.f32.xlu1 %v2554_v55  ;;  %v2521_v2 = vsel %vm2487_vm2, %v6729_v24, -inf }
 0x353   : > { %v6789_v3 = vpop.f32.mrb[52].mxu0 }
 0x354   : > { %v6791_v4 = vpop.f32.mrb[53].mxu0 }
 0x355   : > { %v2572_v55 = vsel %vm2487_vm2, %v6791_v4, -inf }
 0x356   : > { %2558 = vmax.xlane.f32.xlu0 %v2557_v5  ;;  %2507 = vmax.xlane.f32.xlu1 %v2506_v14  ;;  %v2575_v5 = vsel %vm2487_vm2, %v6789_v3, -inf  ;;  %v2524_v14 = vsel %vm2487_vm2, %v6735_v28, -inf }
 0x357   : > { %v6799_v38 = vpop.f32.mrb[54].mxu0 }
 0x358   : > { %v6801_v41 = vpop.f32.mrb[55].mxu0 }
 0x35a   : > { %2510 = vmax.xlane.f32.xlu0 %v2509_v42  ;;  %2561 = vmax.xlane.f32.xlu1 %v2560_v37  ;;  %v2578_v37 = vsel %vm2487_vm2, %v6801_v41, -inf  ;;  %v2527_v42 = vsel %vm2487_vm2, %v6733_v27, -inf }
 0x35e   : > { %2564 = vmax.xlane.f32.xlu0 %v2563_v45  ;;  %2513 = vmax.xlane.f32.xlu1 %v2512_v46  ;;  %v2581_v45 = vsel %vm2487_vm2, %v6799_v38, -inf  ;;  %v2530_v46 = vsel %vm2487_vm2, %v6739_v30, -inf }
 0x362   : > { %2516 = vmax.xlane.f32.xlu0 %v2515_v50  ;;  %2567 = vmax.xlane.f32.xlu1 %v2566_v47  ;;  %v2533_v47 = vsel %vm2487_vm2, %v6737_v29, -inf }
 0x366   : > { %2570 = vmax.xlane.f32.xlu0 %v2569_v53  ;;  %2519 = vmax.xlane.f32.xlu1 %v2518_v54 }
 0x36a   : > { %2522 = vmax.xlane.f32.xlu0 %v2521_v2  ;;  %2573 = vmax.xlane.f32.xlu1 %v2572_v55 }
 0x36e   : > { %2576 = vmax.xlane.f32.xlu0 %v2575_v5  ;;  %2525 = vmax.xlane.f32.xlu1 %v2524_v14 }
 0x372   : > { %2528 = vmax.xlane.f32.xlu0 %v2527_v42  ;;  %2579 = vmax.xlane.f32.xlu1 %v2578_v37 }
 0x376   : > { %2582 = vmax.xlane.f32.xlu0 %v2581_v45  ;;  %2531 = vmax.xlane.f32.xlu1 %v2530_v46 }
 0x37a   : > { %2534 = vmax.xlane.f32.xlu0 %v2533_v47 }
 0x38f   : > { %v2490_v50 = vpop.xlane.xlu0 %2489 }
 0x390   : > { %v2584_v53 = vsub.f32 %v6709_v13, %v2490_v50 }
 0x392   : > { %v2616_v54 = vmul.f32 1.442695, %v2584_v53 }
 0x394   : > { %5497 = vpow2.f32 %v2616_v54 }
 0x39e   : > { %v6836_v55 = vpop.eup %5497 }
 0x39f   : > { %v2680_v2 = vsel %vm2487_vm2, %v6836_v55, 0.0 }
 0x3a0   : > { %2681 = vadd.xlane.f32.xlu1 %v2680_v2 }
 0x3ca   : > { %v2541_v5 = vpop.xlane.xlu1 %2540 }
 0x3cb   : > { %v2538_v14 = vpop.xlane.xlu0 %2537  ;;  %v2601_v37 = vsub.f32 %v6741_v33, %v2541_v5 }
 0x3cc   : > { %v2600_v5 = vsub.f32 %v6743_v34, %v2538_v14 }
 0x3cd   : > { %v2650_v63 = vmul.f32 1.442695, %v2601_v37 }
 0x3cf   : > { %v2544_v42 = vpop.xlane.xlu1 %2543  ;;  %v2493_v45 = vpop.xlane.xlu0 %2492 }
 0x3d0   : > { %v2585_v46 = vsub.f32 %v6707_v12, %v2493_v45 }
 0x3d2   : > { %v2618_v47 = vmul.f32 1.442695, %v2585_v46 }
 0x3d3   : > { %v2496_v1 = vpop.xlane.xlu1 %2495  ;;  %v2547_v13 = vpop.xlane.xlu0 %2546 }
 0x3d4   : > { %v2586_v50 = vsub.f32 %v6715_v16, %v2496_v1  ;;  %5499 = vpow2.f32 %v2618_v47  ;;  %v2603_v54 = vsub.f32 %v6749_v39, %v2547_v13  ;;  %v2648_v1 = vmul.f32 1.442695, %v2600_v5 }
 0x3d5   : > { %5501 = vpow2.f32 %v2650_v63 }
 0x3d6   : > { %v2620_v53 = vmul.f32 1.442695, %v2586_v50  ;;  %v2654_v12 = vmul.f32 1.442695, %v2603_v54 }
 0x3d7   : > { %v2550_v2 = vpop.xlane.xlu1 %2549  ;;  %v2499_v0 = vpop.xlane.xlu0 %2498 }
 0x3d8   : > { %5503 = vpow2.f32 %v2620_v53  ;;  %v2587_v33 = vsub.f32 %v6713_v15, %v2499_v0 }
 0x3da   : > { %v2622_v9 = vmul.f32 1.442695, %v2587_v33 }
 0x3db   : > { %v2502_v45 = vpop.xlane.xlu1 %2501  ;;  %v2553_v37 = vpop.xlane.xlu0 %2552 }
 0x3dc   : > { %v2588_v46 = vsub.f32 %v6719_v17, %v2502_v45  ;;  %5505 = vpow2.f32 %v2622_v9  ;;  %v2605_v63 = vsub.f32 %v6757_v43, %v2553_v37  ;;  %v2602_v17 = vsub.f32 %v6751_v40, %v2544_v42 }
 0x3dd   : > { %5507 = vpow2.f32 %v2654_v12 }
 0x3de   : > { %v2624_v16 = vmul.f32 1.442695, %v2588_v46  ;;  %v6847_v47 = vpop.eup %5499  ;;  %v2658_v50 = vmul.f32 1.442695, %v2605_v63  ;;  %v2652_v5 = vmul.f32 1.442695, %v2602_v17  ;;  %v2604_v63 = vsub.f32 %v6759_v44, %v2550_v2 }
 0x3df   : > { %v6850_v39 = vpop.xlane.xlu1 %2555  ;;  %v2505_v13 = vpop.xlane.xlu0 %2504  ;;  %v2683_v15 = vsel %vm2487_vm2, %v6847_v47, 0.0 }
 0x3e0   : > { %5509 = vpow2.f32 %v2624_v16  ;;  %v2589_v0 = vsub.f32 %v6717_v18, %v2505_v13  ;;  %v6855_v34 = vpop.eup %5501  ;;  %2684 = vadd.xlane.f32.xlu0 %v2683_v15 }
 0x3e1   : > { %5511 = vpow2.f32 %v2648_v1  ;;  %v2731_v33 = vsel %vm2487_vm2, %v6855_v34, 0.0 }
 0x3e2   : > { %v6857_v9 = vpop.eup %5503  ;;  %v2626_v14 = vmul.f32 1.442695, %v2589_v0 }
 0x3e3   : > { %v2508_v43 = vpop.xlane.xlu1 %2507  ;;  %v2559_v53 = vpop.xlane.xlu0 %2558  ;;  %v2686_v54 = vsel %vm2487_vm2, %v6857_v9, 0.0 }
 0x3e4   : > { %v2590_v18 = vsub.f32 %v6723_v20, %v2508_v43  ;;  %2687 = vadd.xlane.f32.xlu1 %v2686_v54  ;;  %5513 = vpow2.f32 %v2626_v14  ;;  %2732 = vadd.xlane.f32.xlu0 %v2731_v33  ;;  %v2607_v40 = vsub.f32 %v6767_v48, %v2559_v53  ;;  %v2656_v43 = vmul.f32 1.442695, %v2604_v63 }
 0x3e5   : > { %5515 = vpow2.f32 %v2658_v50 }
 0x3e6   : > { %v2628_v12 = vmul.f32 1.442695, %v2590_v18  ;;  %v6865_v45 = vpop.eup %5505  ;;  %v2662_v0 = vmul.f32 1.442695, %v2607_v40 }
 0x3e7   : > { %v6868_v42 = vpop.xlane.xlu1 %2561  ;;  %v2511_v37 = vpop.xlane.xlu0 %2510  ;;  %v2689_v20 = vsel %vm2487_vm2, %v6865_v45, 0.0 }
 0x3e8   : > { %5517 = vpow2.f32 %v2628_v12  ;;  %v2591_v46 = vsub.f32 %v6721_v19, %v2511_v37  ;;  %v6873_v1 = vpop.eup %5507  ;;  %2690 = vadd.xlane.f32.xlu0 %v2689_v20 }
 0x3e9   : > { %5519 = vpow2.f32 %v2652_v5  ;;  %v2737_v50 = vsel %vm2487_vm2, %v6873_v1, 0.0 }
 0x3ea   : > { %v6875_v16 = vpop.eup %5509  ;;  %v2630_v13 = vmul.f32 1.442695, %v2591_v46 }
 0x3eb   : > { %v2514_v48 = vpop.xlane.xlu1 %2513  ;;  %v2565_v15 = vpop.xlane.xlu0 %2564  ;;  %v2692_v17 = vsel %vm2487_vm2, %v6875_v16, 0.0 }
 0x3ec   : > { %v6880_v14 = vpop.eup %5511  ;;  %v2592_v19 = vsub.f32 %v6727_v23, %v2514_v48  ;;  %2693 = vadd.xlane.f32.xlu1 %v2692_v17  ;;  %5521 = vpow2.f32 %v2630_v13  ;;  %2738 = vadd.xlane.f32.xlu0 %v2737_v50  ;;  %v2609_v2 = vsub.f32 %v6773_v51, %v2565_v15  ;;  %v2606_v51 = vsub.f32 %v6769_v49, %v6850_v39 }
 0x3ed   : > { %5523 = vpow2.f32 %v2662_v0  ;;  %v2728_v33 = vsel %vm2487_vm2, %v6880_v14, 0.0 }
 0x3ee   : > { %v2632_v53 = vmul.f32 1.442695, %v2592_v19  ;;  %v6885_v44 = vpop.eup %5513  ;;  %v2666_v46 = vmul.f32 1.442695, %v2609_v2  ;;  %v2660_v15 = vmul.f32 1.442695, %v2606_v51 }
 0x3ef   : > { %v6888_v54 = vpop.xlane.xlu1 %2567  ;;  %v2517_v18 = vpop.xlane.xlu0 %2516  ;;  %v2695_v5 = vsel %vm2487_vm2, %v6885_v44, 0.0 }
 0x3f0   : > { %5525 = vpow2.f32 %v2632_v53  ;;  %v2593_v23 = vsub.f32 %v6725_v22, %v2517_v18  ;;  %2729 = vadd.xlane.f32.xlu1 %v2728_v33  ;;  %v6895_v12 = vpop.eup %5515  ;;  %2696 = vadd.xlane.f32.xlu0 %v2695_v5 }
 0x3f1   : > { %5527 = vpow2.f32 %v2656_v43  ;;  %v2743_v48 = vsel %vm2487_vm2, %v6895_v12, 0.0 }
 0x3f2   : > { %v6897_v40 = vpop.eup %5517  ;;  %v2634_v37 = vmul.f32 1.442695, %v2593_v23 }
 0x3f3   : > { %v2520_v20 = vpop.xlane.xlu1 %2519  ;;  %v2571_v63 = vpop.xlane.xlu0 %2570  ;;  %v2698_v22 = vsel %vm2487_vm2, %v6897_v40, 0.0 }
 0x3f4   : > { %v6903_v13 = vpop.eup %5519  ;;  %v2594_v0 = vsub.f32 %v6731_v25, %v2520_v20  ;;  %2699 = vadd.xlane.f32.xlu1 %v2698_v22  ;;  %5529 = vpow2.f32 %v2634_v37  ;;  %2744 = vadd.xlane.f32.xlu0 %v2743_v48  ;;  %v2611_v39 = vsub.f32 %v6783_v57, %v2571_v63  ;;  %v2608_v57 = vsub.f32 %v6775_v52, %v6868_v42 }
 0x3f5   : > { %5531 = vpow2.f32 %v2666_v46  ;;  %v2734_v43 = vsel %vm2487_vm2, %v6903_v13, 0.0 }
 0x3f6   : > { %v2636_v17 = vmul.f32 1.442695, %v2594_v0  ;;  %v6908_v49 = vpop.eup %5521  ;;  %v2670_v23 = vmul.f32 1.442695, %v2611_v39  ;;  %v2664_v63 = vmul.f32 1.442695, %v2608_v57 }
 0x3f7   : > { %v6911_v19 = vpop.xlane.xlu1 %2573  ;;  %v2523_v50 = vpop.xlane.xlu0 %2522  ;;  %v2701_v53 = vsel %vm2487_vm2, %v6908_v49, 0.0 }
 0x3f8   : > { %5533 = vpow2.f32 %v2636_v17  ;;  %v2595_v25 = vsub.f32 %v6729_v24, %v2523_v50  ;;  %2735 = vadd.xlane.f32.xlu1 %v2734_v43  ;;  %v6918_v2 = vpop.eup %5523  ;;  %2702 = vadd.xlane.f32.xlu0 %v2701_v53 }
 0x3f9   : > { %5535 = vpow2.f32 %v2660_v15  ;;  %v2749_v20 = vsel %vm2487_vm2, %v6918_v2, 0.0 }
 0x3fa   : > { %v6920_v18 = vpop.eup %5525  ;;  %v2638_v33 = vmul.f32 1.442695, %v2595_v25 }
 0x3fb   : > { %v2526_v5 = vpop.xlane.xlu1 %2525  ;;  %v2577_v51 = vpop.xlane.xlu0 %2576  ;;  %v2704_v24 = vsel %vm2487_vm2, %v6920_v18, 0.0 }
 0x3fc   : > { %v6926_v37 = vpop.eup %5527  ;;  %v2596_v46 = vsub.f32 %v6735_v28, %v2526_v5  ;;  %2705 = vadd.xlane.f32.xlu1 %v2704_v24  ;;  %5537 = vpow2.f32 %v2638_v33  ;;  %2750 = vadd.xlane.f32.xlu0 %v2749_v20  ;;  %v2613_v42 = vsub.f32 %v6789_v3, %v2577_v51  ;;  %v2610_v3 = vsub.f32 %v6785_v58, %v6888_v54 }
 0x3fd   : > { %5539 = vpow2.f32 %v2670_v23  ;;  %v2740_v15 = vsel %vm2487_vm2, %v6926_v37, 0.0  ;;  %v2612_v58 = vsub.f32 %v6791_v4, %v6911_v19 }
 0x3fe   : > { %v2640_v22 = vmul.f32 1.442695, %v2596_v46  ;;  %v6931_v52 = vpop.eup %5529  ;;  %v2674_v25 = vmul.f32 1.442695, %v2613_v42  ;;  %v2668_v51 = vmul.f32 1.442695, %v2610_v3 }
 0x3ff   : > { %v2580_v0 = vpop.xlane.xlu1 %2579  ;;  %v2529_v48 = vpop.xlane.xlu0 %2528  ;;  %v2707_v17 = vsel %vm2487_vm2, %v6931_v52, 0.0  ;;  %v2672_v19 = vmul.f32 1.442695, %v2612_v58 }
 0x400   : > { %5541 = vpow2.f32 %v2640_v22  ;;  %v2597_v28 = vsub.f32 %v6733_v27, %v2529_v48  ;;  %2741 = vadd.xlane.f32.xlu1 %v2740_v15  ;;  %v6939_v39 = vpop.eup %5531  ;;  %2708 = vadd.xlane.f32.xlu0 %v2707_v17 }
 0x401   : > { %5543 = vpow2.f32 %v2664_v63  ;;  %v2755_v5 = vsel %vm2487_vm2, %v6939_v39, 0.0 }
 0x402   : > { %v6941_v50 = vpop.eup %5533  ;;  %v2642_v43 = vmul.f32 1.442695, %v2597_v28 }
 0x403   : > { %v2532_v53 = vpop.xlane.xlu1 %2531  ;;  %v2583_v57 = vpop.xlane.xlu0 %2582  ;;  %v2710_v27 = vsel %vm2487_vm2, %v6941_v50, 0.0 }
 0x404   : > { %v6947_v33 = vpop.eup %5535  ;;  %v2598_v23 = vsub.f32 %v6739_v30, %v2532_v53  ;;  %2711 = vadd.xlane.f32.xlu1 %v2710_v27  ;;  %5545 = vpow2.f32 %v2642_v43  ;;  %2756 = vadd.xlane.f32.xlu0 %v2755_v5  ;;  %v2615_v46 = vsub.f32 %v6799_v38, %v2583_v57  ;;  %v2614_v38 = vsub.f32 %v6801_v41, %v2580_v0 }
 0x405   : > { %5547 = vpow2.f32 %v2674_v25  ;;  %v2746_v30 = vsel %vm2487_vm2, %v6947_v33, 0.0 }
 0x406   : > { %v2644_v54 = vmul.f32 1.442695, %v2598_v23  ;;  %v6954_v24 = vpop.eup %5537  ;;  %v2678_v15 = vmul.f32 1.442695, %v2615_v46  ;;  %v2676_v3 = vmul.f32 1.442695, %v2614_v38 }
 0x407   : > { %v2535_v20 = vpop.xlane.xlu0 %2534  ;;  %v2713_v22 = vsel %vm2487_vm2, %v6954_v24, 0.0  ;;  %v6962_v42 = vpop.eup %5539  ;;  %v1468_v38 = vld [vmem:[%s7828_s19 + $0x8] sm:$0xff] }
 0x408   : > { %5549 = vpow2.f32 %v2644_v54  ;;  %v2599_v63 = vsub.f32 %v6737_v29, %v2535_v20  ;;  %2747 = vadd.xlane.f32.xlu1 %v2746_v30  ;;  %2714 = vadd.xlane.f32.xlu0 %v2713_v22  ;;  %v2761_v29 = vsel %vm2487_vm2, %v6962_v42, 0.0 }
 0x409   : > { %5551 = vpow2.f32 %v2668_v51 }
 0x40a   : > { %v6964_v4 = vpop.eup %5541  ;;  %v2646_v48 = vmul.f32 1.442695, %v2599_v63 }
 0x40b   : > { %v2716_v28 = vsel %vm2487_vm2, %v6964_v4, 0.0  ;;  %v6969_v17 = vpop.eup %5543 }
 0x40c   : > { %5553 = vpow2.f32 %v2646_v48  ;;  %2717 = vadd.xlane.f32.xlu1 %v2716_v28  ;;  %2762 = vadd.xlane.f32.xlu0 %v2761_v29  ;;  %v2752_v41 = vsel %vm2487_vm2, %v6969_v17, 0.0  ;;  %v787_v48 = vadd.f32 %v6612_v32, %v6602_v21  ;;  %v785_v28 = vadd.f32 %v6610_v31, %v6602_v21 }
 0x40d   : > { %5555 = vpow2.f32 %v2672_v19  ;;  %v1467_v19 = vld [vmem:[%s7828_s19] sm:$0xff]  ;;  %v791_v29 = vadd.f32 %v6614_v35, %v6606_v26 }
 0x40e   : > { %v6973_v43 = vpop.eup %5545  ;;  %5557 = vpow2.f32 %v2678_v15  ;;  %v793_v15 = vadd.f32 %v6616_v36, %v6606_v26 }
 0x40f   : > { %v2719_v0 = vsel %vm2487_vm2, %v6973_v43, 0.0  ;;  %v6979_v25 = vpop.eup %5547  ;;  %5559 = vpow2.f32 %v2676_v3 }
 0x410   : > { %2753 = vadd.xlane.f32.xlu1 %v2752_v41  ;;  %2720 = vadd.xlane.f32.xlu0 %v2719_v0  ;;  %v2767_v23 = vsel %vm2487_vm2, %v6979_v25, 0.0 }
 0x412   : > { %v6981_v53 = vpop.eup %5549 }
 0x413   : > { %v2722_v57 = vsel %vm2487_vm2, %v6981_v53, 0.0  ;;  %v6985_v27 = vpop.eup %5551 }
 0x414   : > { %2723 = vadd.xlane.f32.xlu1 %v2722_v57  ;;  %2768 = vadd.xlane.f32.xlu0 %v2767_v23  ;;  %v2758_v51 = vsel %vm2487_vm2, %v6985_v27, 0.0 }
 0x416   : > { %v6989_v5 = vpop.eup %5553 }
 0x417   : > { %v2725_v58 = vsel %vm2487_vm2, %v6989_v5, 0.0  ;;  %v6995_v54 = vpop.eup %5555 }
 0x418   : > { %2759 = vadd.xlane.f32.xlu1 %v2758_v51  ;;  %v6997_v46 = vpop.eup %5557  ;;  %2726 = vadd.xlane.f32.xlu0 %v2725_v58  ;;  %v2764_v20 = vsel %vm2487_vm2, %v6995_v54, 0.0 }
 0x419   : > { %v7001_v30 = vpop.eup %5559  ;;  %v2773_v63 = vsel %vm2487_vm2, %v6997_v46, 0.0 }
 0x41a   : > { %v2770_v22 = vsel %vm2487_vm2, %v7001_v30, 0.0 }
 0x41c   : > { %2765 = vadd.xlane.f32.xlu1 %v2764_v20  ;;  %2774 = vadd.xlane.f32.xlu0 %v2773_v63 }
 0x420   : > { %2771 = vadd.xlane.f32.xlu1 %v2770_v22 }
 0x42d   : > { %v2682_v41 = vpop.xlane.xlu1 %2681 }
 0x431   : > { %1783 = vperm.xlu1 %5496, %v1467_v19  }
 0x432   : > { %1788 = vperm.xlu0 %5495, %v1468_v38  }
 0x450   : > { %3184 = vxpose.xlu0.b32.start [1/2] (short) %v787_v48, 128 }
 0x454   : > { %3185 = vxpose.xlu0.b32.end [2/2] (short) %v793_v15, 128 }
 0x45a   : > { %3152 = vxpose.xlu1.b32.start [1/2] (short) %v785_v28, 128 }
 0x45e   : > { %3153 = vxpose.xlu1.b32.end [2/2] (short) %v791_v29, 128 }
 0x46d   : > { %v2685_v3 = vpop.xlane.xlu0 %2684 }
 0x46e   : > { %5561 = vrcp.f32 %v2685_v3 }
 0x471   : > { %v2733_v0 = vpop.xlane.xlu0 %2732  ;;  %v2688_v57 = vpop.xlane.xlu1 %2687 }
 0x472   : > { %5563 = vrcp.f32 %v2733_v0 }
 0x473   : > { %5565 = vrcp.f32 %v2682_v41 }
 0x475   : > { %v2691_v23 = vpop.xlane.xlu0 %2690 }
 0x478   : > { %v5562_v31 = vpop.eup %5561 }
 0x479   : > { %v2694_v51 = vpop.xlane.xlu1 %2693  ;;  %v2739_v32 = vpop.xlane.xlu0 %2738  ;;  %v2779_v38 = vmul.f32 %v5562_v31, %v6847_v47 }
 0x47c   : > { %v5564_v35 = vpop.eup %5563 }
 0x47d   : > { %v2730_v36 = vpop.xlane.xlu1 %2729  ;;  %v2697_v58 = vpop.xlane.xlu0 %2696  ;;  %v2811_v28 = vmul.f32 %v5564_v35, %v6855_v34 }
 0x47e   : > { %5567 = vrcp.f32 %v2730_v36  ;;  %v5566_v22 = vpop.eup %5565 }
 0x47f   : > { %5569 = vrcp.f32 %v2691_v23  ;;  %v2777_v29 = vmul.f32 %v5566_v22, %v6836_v55 }
 0x480   : > { %5571 = vrcp.f32 %v2739_v32 }
 0x481   : > { %v2700_v20 = vpop.xlane.xlu1 %2699  ;;  %v2745_v21 = vpop.xlane.xlu0 %2744  ;;  %5573 = vrcp.f32 %v2688_v57  ;;  %v5300_v57 = vpack.c.bf16 %v2779_v38, %v2777_v29 }
 0x485   : > { %v2736_v26 = vpop.xlane.xlu1 %2735  ;;  %v2703_v63 = vpop.xlane.xlu0 %2702 }
 0x486   : > { %5575 = vrcp.f32 %v2736_v26 }
 0x487   : > { %5577 = vrcp.f32 %v2697_v58 }
 0x488   : > { %v5568_v19 = vpop.eup %5567  ;;  %5579 = vrcp.f32 %v2745_v21 }
 0x489   : > { %v2706_v48 = vpop.xlane.xlu1 %2705  ;;  %v2809_v15 = vmul.f32 %v5568_v19, %v6880_v14  ;;  %v2751_v3 = vpop.xlane.xlu0 %2750  ;;  %5581 = vrcp.f32 %v2694_v51 }
 0x48a   : > { %v5570_v23 = vpop.eup %5569 }
 0x48b   : > { %v5297_v0 = vpack.c.bf16 %v2811_v28, %v2809_v15  ;;  %v5572_v34 = vpop.eup %5571  ;;  %v2783_v36 = vmul.f32 %v5570_v23, %v6865_v45 }
 0x48c   : > { %v5574_v14 = vpop.eup %5573  ;;  %v2815_v31 = vmul.f32 %v5572_v34, %v6873_v1 }
 0x48d   : > { %v2742_v47 = vpop.xlane.xlu1 %2741  ;;  %5299 = vmatprep.subr.msk.bf16.mxu1 %vm7027_vm3, %v5297_v0  ;;  %v2709_v55 = vpop.xlane.xlu0 %2708  ;;  %v2781_v51 = vmul.f32 %v5574_v14, %v6857_v9 }
 0x48e   : > { %5583 = vrcp.f32 %v2742_v47  ;;  %5302 = vmatpush3.bf16.xpose.msk.msra.mxu1 %vm7027_vm3, %v5300_v57 }
 0x48f   : > { %5585 = vrcp.f32 %v2703_v63  ;;  %v5306_v22 = vpack.c.bf16 %v2783_v36, %v2781_v51 }
 0x490   : > { %v5576_v32 = vpop.eup %5575  ;;  %5587 = vrcp.f32 %v2751_v3 }
 0x491   : > { %v2712_v58 = vpop.xlane.xlu1 %2711  ;;  %v2813_v21 = vmul.f32 %v5576_v32, %v6903_v13  ;;  %v2757_v26 = vpop.xlane.xlu0 %2756  ;;  %5589 = vrcp.f32 %v2700_v20 }
 0x492   : > { %v5578_v19 = vpop.eup %5577 }
 0x493   : > { %v5303_v35 = vpack.c.bf16 %v2815_v31, %v2813_v21  ;;  %v5580_v15 = vpop.eup %5579  ;;  %v2787_v9 = vmul.f32 %v5578_v19, %v6885_v44 }
 0x494   : > { %v5582_v1 = vpop.eup %5581  ;;  %v2819_v29 = vmul.f32 %v5580_v15, %v6895_v12 }
 0x495   : > { %v2748_v38 = vpop.xlane.xlu1 %2747  ;;  %5305 = vmatprep.subr.msk.bf16.mxu1 %vm7027_vm3, %v5303_v35  ;;  %v2715_v45 = vpop.xlane.xlu0 %2714  ;;  %v2785_v20 = vmul.f32 %v5582_v1, %v6875_v16 }
 0x496   : > { %5591 = vrcp.f32 %v2748_v38  ;;  %5308 = vmatpush3.bf16.xpose.msk.msra.mxu1 %vm7027_vm3, %v5306_v22 }
 0x497   : > { %5593 = vrcp.f32 %v2709_v55  ;;  %v5312_v57 = vpack.c.bf16 %v2787_v9, %v2785_v20 }
 0x498   : > { %v5584_v13 = vpop.eup %5583  ;;  %5595 = vrcp.f32 %v2757_v26 }
 0x499   : > { %v2718_v63 = vpop.xlane.xlu1 %2717  ;;  %v2817_v28 = vmul.f32 %v5584_v13, %v6926_v37  ;;  %v2763_v3 = vpop.xlane.xlu0 %2762  ;;  %5597 = vrcp.f32 %v2706_v48 }
 0x49a   : > { %v5586_v23 = vpop.eup %5585 }
 0x49b   : > { %v5309_v0 = vpack.c.bf16 %v2819_v29, %v2817_v28  ;;  %v5588_v34 = vpop.eup %5587  ;;  %v2791_v16 = vmul.f32 %v5586_v23, %v6908_v49 }
 0x49c   : > { %v5590_v12 = vpop.eup %5589  ;;  %v2823_v32 = vmul.f32 %v5588_v34, %v6918_v2 }
 0x49d   : > { %v2754_v47 = vpop.xlane.xlu1 %2753  ;;  %5311 = vmatprep.subr.msk.bf16.mxu1 %vm7027_vm3, %v5309_v0  ;;  %v2721_v44 = vpop.xlane.xlu0 %2720  ;;  %v2789_v48 = vmul.f32 %v5590_v12, %v6897_v40 }
 0x49e   : > { %5599 = vrcp.f32 %v2754_v47  ;;  %5314 = vmatpush3.bf16.xpose.msk.msra.mxu1 %vm7027_vm3, %v5312_v57 }
 0x49f   : > { %5601 = vrcp.f32 %v2715_v45  ;;  %v5318_v31 = vpack.c.bf16 %v2791_v16, %v2789_v48 }
 0x4a0   : > { %v5592_v37 = vpop.eup %5591  ;;  %5603 = vrcp.f32 %v2763_v3 }
 0x4a1   : > { %v2724_v55 = vpop.xlane.xlu1 %2723  ;;  %v2821_v14 = vmul.f32 %v5592_v37, %v6947_v33  ;;  %v2769_v36 = vpop.xlane.xlu0 %2768  ;;  %5605 = vrcp.f32 %v2712_v58 }
 0x4a2   : > { %v5594_v51 = vpop.eup %5593 }
 0x4a3   : > { %v5315_v21 = vpack.c.bf16 %v2823_v32, %v2821_v14  ;;  %v5596_v35 = vpop.eup %5595  ;;  %v2795_v40 = vmul.f32 %v5594_v51, %v6931_v52 }
 0x4a4   : > { %v5598_v2 = vpop.eup %5597  ;;  %v2827_v58 = vmul.f32 %v5596_v35, %v6939_v39 }
 0x4a5   : > { %v2760_v26 = vpop.xlane.xlu1 %2759  ;;  %5317 = vmatprep.subr.msk.bf16.mxu1 %vm7027_vm3, %v5315_v21  ;;  %v2727_v49 = vpop.xlane.xlu0 %2726  ;;  %v2793_v38 = vmul.f32 %v5598_v2, %v6920_v18 }
 0x4a6   : > { %5607 = vrcp.f32 %v2760_v26  ;;  %5320 = vmatpush3.bf16.xpose.msk.msra.mxu1 %vm7027_vm3, %v5318_v31 }
 0x4a7   : > { %5609 = vrcp.f32 %v2769_v36  ;;  %v5324_v1 = vpack.c.bf16 %v2795_v40, %v2793_v38 }
 0x4a8   : > { %v5600_v33 = vpop.eup %5599 }
 0x4a9   : > { %v2766_v22 = vpop.xlane.xlu1 %2765  ;;  %v2825_v19 = vmul.f32 %v5600_v33, %v6969_v17  ;;  %v2775_v15 = vpop.xlane.xlu0 %2774 }
 0x4aa   : > { %5611 = vrcp.f32 %v2766_v22  ;;  %v5602_v13 = vpop.eup %5601 }
 0x4ab   : > { %5613 = vrcp.f32 %v2721_v44  ;;  %v5321_v45 = vpack.c.bf16 %v2827_v58, %v2825_v19  ;;  %v5604_v52 = vpop.eup %5603  ;;  %v2799_v18 = vmul.f32 %v5602_v13, %v6954_v24 }
 0x4ac   : > { %5615 = vrcp.f32 %v2718_v63  ;;  %v5606_v39 = vpop.eup %5605  ;;  %v2831_v29 = vmul.f32 %v5604_v52, %v6962_v42 }
 0x4ad   : > { %5617 = vrcp.f32 %v2775_v15  ;;  %v2772_v9 = vpop.xlane.xlu1 %2771  ;;  %5323 = vmatprep.subr.msk.bf16.mxu1 %vm7027_vm3, %v5321_v45  ;;  %v2797_v3 = vmul.f32 %v5606_v39, %v6941_v50 }
 0x4ae   : > { %5619 = vrcp.f32 %v2772_v9  ;;  %5326 = vmatpush3.bf16.xpose.msk.msra.mxu1 %vm7027_vm3, %v5324_v1 }
 0x4af   : > { %5621 = vrcp.f32 %v2727_v49  ;;  %v5330_v24 = vpack.c.bf16 %v2799_v18, %v2797_v3  ;;  %v7832_v3 = vmov 0.0  }
 0x4b0   : > { %v5608_v17 = vpop.eup %5607  ;;  %5623 = vrcp.f32 %v2724_v55 }
 0x4b1   : > { %v7068_v28 = vpop.permute.xlu1 %1783  ;;  %v2829_v63 = vmul.f32 %v5608_v17, %v6985_v27  ;;  %v5610_v20 = vpop.eup %5609 }
 0x4b2   : > { %v2099_v0 = vadd.f32 %v2097_v11, %v7068_v28  ;;  %v2835_v50 = vmul.f32 %v5610_v20, %v6979_v25 }
 0x4b3   : > { %v5327_v57 = vpack.c.bf16 %v2831_v29, %v2829_v63 }
 0x4b4   : > { %v5612_v23 = vpop.eup %5611  ;;  %4795 = vmatprep.mubr.msk.f32.mxu1 %vm2487_vm2, %v2099_v0 }
 0x4b5   : > { %v5614_v47 = vpop.eup %5613  ;;  %5329 = vmatprep.subr.msk.bf16.mxu1 %vm7027_vm3, %v5327_v57  ;;  %v2833_v42 = vmul.f32 %v5612_v23, %v6995_v54 }
 0x4b6   : > { %v5616_v27 = vpop.eup %5615  ;;  %5332 = vmatpush3.bf16.xpose.msk.msra.mxu1 %vm7027_vm3, %v5330_v24  ;;  %v2803_v34 = vmul.f32 %v5614_v47, %v6973_v43 }
 0x4b7   : > { %v5618_v8 = vpop.eup %5617  ;;  %v5333_v10 = vpack.c.bf16 %v2835_v50, %v2833_v42  ;;  %v2801_v12 = vmul.f32 %v5616_v27, %v6964_v4  ;;  %v7099_v4 = vpop.permute.xlu0 %1788  ;;  %v618_v50 = vld [vmem:[%s7833_s5] sm:$0xff]  ;;  %v619_v27 = vld [vmem:[%s7833_s5 + $0x8] sm:$0xff] }
 0x4b8   : > { %v5620_v11 = vpop.eup %5619  ;;  %v2839_v54 = vmul.f32 %v5618_v8, %v6997_v46  ;;  %v7831_v46 = vmax.f32 %v6694_v6, %v6696_v7  ;;  %v620_v8 = vld [vmem:[%s7833_s5 + $0x10] sm:$0xff] }
 0x4b9   : > { %5335 = vmatprep.subr.msk.bf16.mxu1 %vm7027_vm3, %v5333_v10  ;;  %v2837_v44 = vmul.f32 %v5620_v11, %v7001_v30  ;;  %v5336_v37 = vpack.c.bf16 %v2803_v34, %v2801_v12  ;;  %v5622_v25 = vpop.eup %5621  ;;  %v621_v34 = vld [vmem:[%s7833_s5 + $0x18] sm:$0xff] }
 0x4ba   : > { %v5624_v55 = vpop.eup %5623  ;;  %v2807_v43 = vmul.f32 %v5622_v25, %v6989_v5  ;;  %v2100_v30 = vadd.f32 %v7831_v46, %v7099_v4 }
 0x4bb   : > { %v5339_v16 = vpack.c.bf16 %v2839_v54, %v2837_v44  ;;  %v2805_v14 = vmul.f32 %v5624_v55, %v6981_v53  ;;  %v7834_v44 = vmax.f32 %v6681_v61, %v6683_v62 }
 0x4bd   : > { %v5342_v32 = vpack.c.bf16 %v2807_v43, %v2805_v14  ;;  %v7168_v12 = vadd.f32 %v7068_v28, %v7834_v44 }
 0x4be   : > { %5338 = vmatpush3.bf16.xpose.msk.msra.mxu1 %vm7027_vm3, %v5336_v37 }
 0x4bf   : > { %5341 = vmatprep.subr.msk.bf16.mxu1 %vm7027_vm3, %v5339_v16 }
 0x4c6   : > { %5344 = vmatpush3.bf16.xpose.msk.msra.mxu1 %vm7027_vm3, %v5342_v32 }
 0x4c7   : > { %5350 = vmatprep.subr.bf16.mxu1 %v6618_v56 }
 0x4cd   : > { %4796 = vmatmul.mubr.msk.f32.vlgmr.msra.gmra.mrb[16].mxu1 %vm2487_vm2, %v2099_v0 }
 0x4ce   : > { %4797 = vmatprep.mubr.msk.f32.mxu1 %vm2487_vm2, %v2100_v30  ;;  %5352 = vmatpush3.bf16.msra.mxu1 %v6618_v56 }
 0x4d0   : > { %v3200_v5 = vpop.trf.xlu0 }
 0x4d1   : > { %4798 = vmatmul.mubr.msk.f32.gmra.mrb[18].mxu1 %vm2487_vm2, %v2100_v30 }
 0x4d4   : > { %v3201_v36 = vpop.trf.xlu0 }
 0x4d8   : > { %v3202_v7 = vpop.trf.xlu0 }
 0x4da   : > { %v3168_v53 = vpop.trf.xlu1 }
 0x4db   : > { %5101 = vmatprep.mubr.msk.f32.mxu1 %vm2165_vm1, %v3168_v53 }
 0x4dc   : > { %v3203_v56 = vpop.trf.xlu0 }
 0x4de   : > { %v3169_v48 = vpop.trf.xlu1 }
 0x4df   : > { %5102 = vmatmul.mubr.msk.f32.vlgmr.msra.gmra.mrb[20].mxu1 %vm2165_vm1, %v3169_v48 }
 0x4e0   : > { %v3204_v35 = vpop.trf.xlu0 }
 0x4e2   : > { %v3170_v21 = vpop.trf.xlu1 }
 0x4e3   : > { %5104 = vmatprep.mubr.msk.f32.mxu1 %vm2165_vm1, %v3170_v21 }
 0x4e4   : > { %v3205_v2 = vpop.trf.xlu0 }
 0x4e6   : > { %v3171_v6 = vpop.trf.xlu1 }
 0x4e7   : > { %5105 = vmatmul.mubr.msk.f32.gmra.mrb[22].mxu1 %vm2165_vm1, %v3171_v6 }
 0x4e8   : > { %v3206_v22 = vpop.trf.xlu0 }
 0x4ea   : > { %v3172_v31 = vpop.trf.xlu1 }
 0x4eb   : > { %5107 = vmatprep.mubr.msk.f32.mxu1 %vm2165_vm1, %v3172_v31 }
 0x4ec   : > { %v3207_v58 = vpop.trf.xlu0 }
 0x4ee   : > { %v3173_v51 = vpop.trf.xlu1 }
 0x4ef   : > { %5108 = vmatmul.mubr.msk.f32.gmra.mrb[24].mxu1 %vm2165_vm1, %v3173_v51 }
 0x4f0   : > { %v3208_v45 = vpop.trf.xlu0 }
 0x4f2   : > { %v3174_v26 = vpop.trf.xlu1 }
 0x4f3   : > { %5110 = vmatprep.mubr.msk.f32.mxu1 %vm2165_vm1, %v3174_v26 }
 0x4f4   : > { %v3209_v13 = vpop.trf.xlu0 }
 0x4f6   : > { %v3175_v49 = vpop.trf.xlu1 }
 0x4f7   : > { %5111 = vmatmul.mubr.msk.f32.gmra.mrb[26].mxu1 %vm2165_vm1, %v3175_v49 }
 0x4f8   : > { %v3210_v39 = vpop.trf.xlu0 }
 0x4fa   : > { %v3176_v33 = vpop.trf.xlu1 }
 0x4fb   : > { %5113 = vmatprep.mubr.msk.f32.mxu1 %vm2165_vm1, %v3176_v33 }
 0x4fc   : > { %v3211_v17 = vpop.trf.xlu0 }
 0x4fe   : > { %v3177_v40 = vpop.trf.xlu1 }
 0x4ff   : > { %5114 = vmatmul.mubr.msk.f32.gmra.mrb[28].mxu1 %vm2165_vm1, %v3177_v40 }
 0x500   : > { %v3212_v18 = vpop.trf.xlu0 }
 0x502   : > { %v3178_v19 = vpop.trf.xlu1 }
 0x503   : > { %5116 = vmatprep.mubr.msk.f32.mxu1 %vm2165_vm1, %v3178_v19 }
 0x504   : > { %v3213_v63 = vpop.trf.xlu0 }
 0x506   : > { %v3179_v38 = vpop.trf.xlu1 }
 0x507   : > { %5117 = vmatmul.mubr.msk.f32.gmra.mrb[30].mxu1 %vm2165_vm1, %v3179_v38 }
 0x508   : > { %v3214_v29 = vpop.trf.xlu0 }
 0x50a   : > { %v3180_v15 = vpop.trf.xlu1 }
 0x50b   : > { %5119 = vmatprep.mubr.msk.f32.mxu1 %vm2165_vm1, %v3180_v15 }
 0x50c   : > { %v3215_v20 = vpop.trf.xlu0 }
 0x50e   : > { %v3181_v1 = vpop.trf.xlu1 }
 0x50f   : > { %5120 = vmatmul.mubr.msk.f32.gmra.mrb[32].mxu1 %vm2165_vm1, %v3181_v1 }
 0x512   : > { %v3182_v9 = vpop.trf.xlu1 }
 0x513   : > { %5122 = vmatprep.mubr.msk.f32.mxu1 %vm2165_vm1, %v3182_v9 }
 0x516   : > { %v3183_v52 = vpop.trf.xlu1 }
 0x517   : > { %5123 = vmatmul.mubr.msk.f32.gmra.mrb[34].mxu1 %vm2165_vm1, %v3183_v52 }
 0x518   : > { %5125 = vmatprep.mubr.msk.f32.mxu1 %vm2165_vm1, %v3200_v5 }
 0x51b   : > { %5126 = vmatmul.mubr.msk.f32.gmra.mrb[36].mxu1 %vm2165_vm1, %v3201_v36 }
 0x51c   : > { %5128 = vmatprep.mubr.msk.f32.mxu1 %vm2165_vm1, %v3202_v7 }
 0x51f   : > { %5129 = vmatmul.mubr.msk.f32.gmra.mrb[38].mxu1 %vm2165_vm1, %v3203_v56 }
 0x520   : > { %5131 = vmatprep.mubr.msk.f32.mxu1 %vm2165_vm1, %v3204_v35 }
 0x523   : > { %5132 = vmatmul.mubr.msk.f32.gmra.mrb[40].mxu1 %vm2165_vm1, %v3205_v2 }
 0x524   : > { %5134 = vmatprep.mubr.msk.f32.mxu1 %vm2165_vm1, %v3206_v22 }
 0x527   : > { %5135 = vmatmul.mubr.msk.f32.gmra.mrb[42].mxu1 %vm2165_vm1, %v3207_v58 }
 0x528   : > { %5137 = vmatprep.mubr.msk.f32.mxu1 %vm2165_vm1, %v3208_v45 }
 0x52b   : > { %5138 = vmatmul.mubr.msk.f32.gmra.mrb[44].mxu1 %vm2165_vm1, %v3209_v13 }
 0x52c   : > { %5140 = vmatprep.mubr.msk.f32.mxu1 %vm2165_vm1, %v3210_v39 }
 0x52f   : > { %5141 = vmatmul.mubr.msk.f32.gmra.mrb[46].mxu1 %vm2165_vm1, %v3211_v17 }
 0x530   : > { %5143 = vmatprep.mubr.msk.f32.mxu1 %vm2165_vm1, %v3212_v18 }
 0x533   : > { %5144 = vmatmul.mubr.msk.f32.gmra.mrb[48].mxu1 %vm2165_vm1, %v3213_v63 }
 0x534   : > { %5146 = vmatprep.mubr.msk.f32.mxu1 %vm2165_vm1, %v3214_v29 }
 0x537   : > { %5147 = vmatmul.mubr.msk.f32.gmra.mrb[50].mxu1 %vm2165_vm1, %v3215_v20 }
 0x538   : > { %4132 = vmatprep.mubr.f32.mxu1 %v7832_v3 }
 0x5a0   : > { %v3008_v0 = vpop.f32.mrb[16].mxu1 }
 0x5a1   : > { %v3010_v57 = vpop.f32.mrb[17].mxu1 }
 0x5a4   : > { %v3014_v23 = vpop.f32.mrb[18].mxu1 }
 0x5a5   : > { %v5347_v24 = vpack.c.bf16 %v3014_v23, %v3008_v0  ;;  %v3016_v47 = vpop.f32.mrb[19].mxu1 }
 0x5a6   : > { %v5345_v42 = vpack.c.bf16 %v3016_v47, %v3010_v57 }
 0x5a8   : > { %5346 = vmatprep.subr.bf16.mxu0 %v5345_v42 }
 0x5a9   : > { %5348 = vmatpush1.bf16.msra.mxu0 %v5347_v24 }
 0x5ac   : > { %4545 = vmatmul.mubr.msk.f32.vlgmr.msra.gmra.mrb[56].mxu0 %vm2165_vm1, %v618_v50 }
 0x5ad   : > { %3125 = vmatprep.mubr.f32.mxu0 %v7832_v3 }
 0x5b0   : > { %4546 = vmatmul.mubr.msk.f32.gmra.mrb[58].mxu0 %vm2165_vm1, %v619_v27 }
 0x5b1   : > { %3131 = vmatprep.mubr.f32.mxu0 %v7832_v3 }
 0x5b2   : > { %v7155_v10 = vpop.f32.mrb[20].mxu1 }
 0x5b3   : > { %v7157_v11 = vpop.f32.mrb[21].mxu1  ;;  %v3540_v56 = vsel %vm2487_vm2, %v7155_v10, -inf }
 0x5b4   : > { %4547 = vmatmul.mubr.msk.f32.gmra.mrb[60].mxu0 %vm2165_vm1, %v620_v8  ;;  %v3537_v7 = vsel %vm2487_vm2, %v7157_v11, -inf }
 0x5b5   : > { %3137 = vmatprep.mubr.f32.mxu0 %v7832_v3 }
 0x5b8   : > { %4548 = vmatmul.mubr.msk.f32.gmra.mrb[62].mxu0 %vm2165_vm1, %v621_v34 }
 0x5b9   : > { %4865 = vmatprep.mubr.msk.f32.mxu0 %vm2487_vm2, %v7168_v12 }
 0x5ba   : > { %v7173_v54 = vpop.f32.mrb[22].mxu1 }
 0x5bb   : > { %v7175_v37 = vpop.f32.mrb[23].mxu1  ;;  %v3546_v22 = vsel %vm2487_vm2, %v7173_v54, -inf }
 0x5bc   : > { %v3543_v33 = vsel %vm2487_vm2, %v7175_v37, -inf }
 0x5c2   : > { %v7177_v25 = vpop.f32.mrb[24].mxu1 }
 0x5c3   : > { %v7179_v16 = vpop.f32.mrb[25].mxu1  ;;  %v3552_v9 = vsel %vm2487_vm2, %v7177_v25, -inf }
 0x5c4   : > { %v3549_v1 = vsel %vm2487_vm2, %v7179_v16, -inf }
 0x5ca   : > { %v7181_v55 = vpop.f32.mrb[26].mxu1 }
 0x5cb   : > { %v7183_v43 = vpop.f32.mrb[27].mxu1  ;;  %v3558_v0 = vsel %vm2487_vm2, %v7181_v55, -inf }
 0x5cc   : > { %v3555_v29 = vsel %vm2487_vm2, %v7183_v43, -inf }
 0x5d2   : > { %v7185_v61 = vpop.f32.mrb[28].mxu1 }
 0x5d3   : > { %v7187_v62 = vpop.f32.mrb[29].mxu1  ;;  %v3564_v47 = vsel %vm2487_vm2, %v7185_v61, -inf }
 0x5d4   : > { %v3561_v24 = vsel %vm2487_vm2, %v7187_v62, -inf }
 0x5da   : > { %v7189_v28 = vpop.f32.mrb[30].mxu1 }
 0x5db   : > { %v7191_v14 = vpop.f32.mrb[31].mxu1  ;;  %v3570_v8 = vsel %vm2487_vm2, %v7189_v28, -inf }
 0x5dc   : > { %v3567_v27 = vsel %vm2487_vm2, %v7191_v14, -inf }
 0x5e2   : > { %v7193_v32 = vpop.f32.mrb[32].mxu1 }
 0x5e3   : > { %v7195_v46 = vpop.f32.mrb[33].mxu1 }
 0x5ea   : > { %v7197_v30 = vpop.f32.mrb[34].mxu1 }
 0x5eb   : > { %v7199_v53 = vpop.f32.mrb[35].mxu1 }
 0x5ee   : > { %v7201_v5 = vpop.f32.mrb[36].mxu1 }
 0x5ef   : > { %v7203_v48 = vpop.f32.mrb[37].mxu1  ;;  %v3588_v36 = vsel %vm2487_vm2, %v7201_v5, -inf }
 0x5f0   : > { %3589 = vmax.xlane.f32.xlu1 %v3588_v36  ;;  %v3585_v21 = vsel %vm2487_vm2, %v7203_v48, -inf  ;;  %v3573_v36 = vsel %vm2487_vm2, %v7195_v46, -inf }
 0x5f1   : > { %3586 = vmax.xlane.f32.xlu0 %v3585_v21  ;;  %v3576_v21 = vsel %vm2487_vm2, %v7193_v32, -inf }
 0x5f2   : > { %v7209_v6 = vpop.f32.mrb[38].mxu1 }
 0x5f3   : > { %v7213_v31 = vpop.f32.mrb[39].mxu1  ;;  %v3594_v26 = vsel %vm2487_vm2, %v7209_v6, -inf }
 0x5f4   : > { %3538 = vmax.xlane.f32.xlu1 %v3537_v7  ;;  %v3591_v51 = vsel %vm2487_vm2, %v7213_v31, -inf }
 0x5f5   : > { %3541 = vmax.xlane.f32.xlu0 %v3540_v56 }
 0x5f6   : > { %v7221_v35 = vpop.f32.mrb[40].mxu1 }
 0x5f7   : > { %v7223_v49 = vpop.f32.mrb[41].mxu1  ;;  %v3600_v58 = vsel %vm2487_vm2, %v7221_v35, -inf }
 0x5f8   : > { %3592 = vmax.xlane.f32.xlu1 %v3591_v51  ;;  %v3597_v19 = vsel %vm2487_vm2, %v7223_v49, -inf  ;;  %v3579_v51 = vsel %vm2487_vm2, %v7199_v53, -inf }
 0x5f9   : > { %3595 = vmax.xlane.f32.xlu0 %v3594_v26  ;;  %v3582_v26 = vsel %vm2487_vm2, %v7197_v30, -inf }
 0x5fa   : > { %v7225_v2 = vpop.f32.mrb[42].mxu1 }
 0x5fb   : > { %v7229_v40 = vpop.f32.mrb[43].mxu1  ;;  %v3606_v39 = vsel %vm2487_vm2, %v7225_v2, -inf }
 0x5fc   : > { %3544 = vmax.xlane.f32.xlu1 %v3543_v33  ;;  %v3603_v52 = vsel %vm2487_vm2, %v7229_v40, -inf }
 0x5fd   : > { %3547 = vmax.xlane.f32.xlu0 %v3546_v22 }
 0x5fe   : > { %v7237_v38 = vpop.f32.mrb[44].mxu1 }
 0x5ff   : > { %v7239_v15 = vpop.f32.mrb[45].mxu1  ;;  %v3612_v23 = vsel %vm2487_vm2, %v7237_v38, -inf }
 0x600   : > { %3598 = vmax.xlane.f32.xlu1 %v3597_v19  ;;  %v3609_v57 = vsel %vm2487_vm2, %v7239_v15, -inf }
 0x601   : > { %3601 = vmax.xlane.f32.xlu0 %v3600_v58 }
 0x602   : > { %v7241_v45 = vpop.f32.mrb[46].mxu1 }
 0x603   : > { %v7245_v13 = vpop.f32.mrb[47].mxu1  ;;  %v3618_v50 = vsel %vm2487_vm2, %v7241_v45, -inf }
 0x604   : > { %3550 = vmax.xlane.f32.xlu1 %v3549_v1  ;;  %v3615_v42 = vsel %vm2487_vm2, %v7245_v13, -inf }
 0x605   : > { %3553 = vmax.xlane.f32.xlu0 %v3552_v9 }
 0x606   : > { %v7253_v17 = vpop.f32.mrb[48].mxu1 }
 0x607   : > { %v7255_v18 = vpop.f32.mrb[49].mxu1  ;;  %v3624_v44 = vsel %vm2487_vm2, %v7253_v17, -inf }
 0x608   : > { %3604 = vmax.xlane.f32.xlu1 %v3603_v52  ;;  %v3621_v34 = vsel %vm2487_vm2, %v7255_v18, -inf }
 0x609   : > { %3607 = vmax.xlane.f32.xlu0 %v3606_v39 }
 0x60a   : > { %v7257_v63 = vpop.f32.mrb[50].mxu1 }
 0x60b   : > { %v7261_v20 = vpop.f32.mrb[51].mxu1  ;;  %v3630_v56 = vsel %vm2487_vm2, %v7257_v63, -inf }
 0x60c   : > { %3556 = vmax.xlane.f32.xlu1 %v3555_v29  ;;  %v3627_v7 = vsel %vm2487_vm2, %v7261_v20, -inf }
 0x60d   : > { %3559 = vmax.xlane.f32.xlu0 %v3558_v0 }
 0x610   : > { %3610 = vmax.xlane.f32.xlu1 %v3609_v57 }
 0x611   : > { %3613 = vmax.xlane.f32.xlu0 %v3612_v23 }
 0x614   : > { %3562 = vmax.xlane.f32.xlu1 %v3561_v24 }
 0x615   : > { %3565 = vmax.xlane.f32.xlu0 %v3564_v47 }
 0x618   : > { %3616 = vmax.xlane.f32.xlu1 %v3615_v42 }
 0x619   : > { %3619 = vmax.xlane.f32.xlu0 %v3618_v50 }
 0x61c   : > { %3568 = vmax.xlane.f32.xlu1 %v3567_v27 }
 0x61d   : > { %3571 = vmax.xlane.f32.xlu0 %v3570_v8 }
 0x620   : > { %3622 = vmax.xlane.f32.xlu1 %v3621_v34 }
 0x621   : > { %3625 = vmax.xlane.f32.xlu0 %v3624_v44 }
 0x624   : > { %3574 = vmax.xlane.f32.xlu1 %v3573_v36 }
 0x625   : > { %3577 = vmax.xlane.f32.xlu0 %v3576_v21 }
 0x628   : > { %3628 = vmax.xlane.f32.xlu1 %v3627_v7 }
 0x629   : > { %3631 = vmax.xlane.f32.xlu0 %v3630_v56 }
 0x62c   : > { %3580 = vmax.xlane.f32.xlu1 %v3579_v51 }
 0x62d   : > { %3583 = vmax.xlane.f32.xlu0 %v3582_v26 }
 0x67d   : > { %v3590_v33 = vpop.xlane.xlu1 %3589 }
 0x67e   : > { %v3650_v22 = vsub.f32 %v7201_v5, %v3590_v33  ;;  %v3587_v19 = vpop.xlane.xlu0 %3586 }
 0x67f   : > { %v3649_v58 = vsub.f32 %v7203_v48, %v3587_v19 }
 0x680   : > { %v3699_v1 = vmul.f32 1.442695, %v3650_v22 }
 0x681   : > { %v3697_v9 = vmul.f32 1.442695, %v3649_v58  ;;  %v3539_v52 = vpop.xlane.xlu1 %3538 }
 0x682   : > { %5625 = vpow2.f32 %v3699_v1  ;;  %v3633_v39 = vsub.f32 %v7157_v11, %v3539_v52  ;;  %v3542_v29 = vpop.xlane.xlu0 %3541 }
 0x683   : > { %5627 = vpow2.f32 %v3697_v9  ;;  %v3634_v0 = vsub.f32 %v7155_v10, %v3542_v29 }
 0x684   : > { %v3665_v57 = vmul.f32 1.442695, %v3633_v39 }
 0x685   : > { %v3667_v23 = vmul.f32 1.442695, %v3634_v0  ;;  %v3593_v24 = vpop.xlane.xlu1 %3592 }
 0x686   : > { %5629 = vpow2.f32 %v3665_v57  ;;  %v3651_v47 = vsub.f32 %v7213_v31, %v3593_v24  ;;  %v3596_v5 = vpop.xlane.xlu0 %3595 }
 0x687   : > { %5631 = vpow2.f32 %v3667_v23  ;;  %v3652_v48 = vsub.f32 %v7209_v6, %v3596_v5 }
 0x688   : > { %v3701_v42 = vmul.f32 1.442695, %v3651_v47 }
 0x689   : > { %v3703_v50 = vmul.f32 1.442695, %v3652_v48  ;;  %v3545_v27 = vpop.xlane.xlu1 %3544 }
 0x68a   : > { %5633 = vpow2.f32 %v3701_v42  ;;  %v3635_v11 = vsub.f32 %v7175_v37, %v3545_v27  ;;  %v3548_v8 = vpop.xlane.xlu0 %3547 }
 0x68b   : > { %5635 = vpow2.f32 %v3703_v50  ;;  %v3636_v10 = vsub.f32 %v7173_v54, %v3548_v8 }
 0x68c   : > { %v7305_v34 = vpop.eup %5625  ;;  %v3669_v44 = vmul.f32 1.442695, %v3635_v11 }
 0x68d   : > { %v7307_v36 = vpop.eup %5627  ;;  %v3671_v31 = vmul.f32 1.442695, %v3636_v10  ;;  %v3599_v21 = vpop.xlane.xlu1 %3598  ;;  %v3780_v6 = vsel %vm2487_vm2, %v7305_v34, 0.0 }
 0x68e   : > { %5637 = vpow2.f32 %v3669_v44  ;;  %v3653_v7 = vsub.f32 %v7223_v49, %v3599_v21  ;;  %3781 = vadd.xlane.f32.xlu0 %v3780_v6  ;;  %v3602_v56 = vpop.xlane.xlu0 %3601  ;;  %v3777_v37 = vsel %vm2487_vm2, %v7307_v36, 0.0 }
 0x68f   : > { %5639 = vpow2.f32 %v3671_v31  ;;  %v3654_v54 = vsub.f32 %v7221_v35, %v3602_v56  ;;  %3778 = vadd.xlane.f32.xlu1 %v3777_v37 }
 0x690   : > { %v7315_v51 = vpop.eup %5629  ;;  %v3705_v26 = vmul.f32 1.442695, %v3653_v7 }
 0x691   : > { %v7317_v33 = vpop.eup %5631  ;;  %v3707_v22 = vmul.f32 1.442695, %v3654_v54  ;;  %v3551_v19 = vpop.xlane.xlu1 %3550  ;;  %v3729_v58 = vsel %vm2487_vm2, %v7315_v51, 0.0 }
 0x692   : > { %5641 = vpow2.f32 %v3705_v26  ;;  %v3637_v49 = vsub.f32 %v7179_v16, %v3551_v19  ;;  %v3554_v1 = vpop.xlane.xlu0 %3553  ;;  %v3732_v9 = vsel %vm2487_vm2, %v7317_v33, 0.0 }
 0x693   : > { %5643 = vpow2.f32 %v3707_v22  ;;  %v3638_v35 = vsub.f32 %v7177_v25, %v3554_v1  ;;  %3730 = vadd.xlane.f32.xlu1 %v3729_v58  ;;  %3733 = vadd.xlane.f32.xlu0 %v3732_v9 }
 0x694   : > { %v7325_v52 = vpop.eup %5633  ;;  %v3673_v39 = vmul.f32 1.442695, %v3637_v49 }
 0x695   : > { %v7327_v29 = vpop.eup %5635  ;;  %v3675_v0 = vmul.f32 1.442695, %v3638_v35  ;;  %v3605_v57 = vpop.xlane.xlu1 %3604  ;;  %v3783_v23 = vsel %vm2487_vm2, %v7325_v52, 0.0 }
 0x696   : > { %5645 = vpow2.f32 %v3673_v39  ;;  %v3655_v16 = vsub.f32 %v7229_v40, %v3605_v57  ;;  %v3608_v24 = vpop.xlane.xlu0 %3607  ;;  %v3786_v47 = vsel %vm2487_vm2, %v7327_v29, 0.0 }
 0x697   : > { %5647 = vpow2.f32 %v3675_v0  ;;  %v3656_v25 = vsub.f32 %v7225_v2, %v3608_v24  ;;  %3784 = vadd.xlane.f32.xlu1 %v3783_v23  ;;  %3787 = vadd.xlane.f32.xlu0 %v3786_v47 }
 0x698   : > { %v7335_v5 = vpop.eup %5637  ;;  %v3709_v48 = vmul.f32 1.442695, %v3655_v16 }
 0x699   : > { %v7337_v42 = vpop.eup %5639  ;;  %v3711_v50 = vmul.f32 1.442695, %v3656_v25  ;;  %v3557_v27 = vpop.xlane.xlu1 %3556  ;;  %v3735_v11 = vsel %vm2487_vm2, %v7335_v5, 0.0 }
 0x69a   : > { %5649 = vpow2.f32 %v3709_v48  ;;  %v3639_v40 = vsub.f32 %v7183_v43, %v3557_v27  ;;  %v3560_v8 = vpop.xlane.xlu0 %3559  ;;  %v3738_v10 = vsel %vm2487_vm2, %v7337_v42, 0.0 }
 0x69b   : > { %5651 = vpow2.f32 %v3711_v50  ;;  %v3640_v2 = vsub.f32 %v7181_v55, %v3560_v8  ;;  %3736 = vadd.xlane.f32.xlu1 %v3735_v11  ;;  %3739 = vadd.xlane.f32.xlu0 %v3738_v10 }
 0x69c   : > { %v7345_v44 = vpop.eup %5641  ;;  %v3677_v31 = vmul.f32 1.442695, %v3639_v40 }
 0x69d   : > { %v7347_v21 = vpop.eup %5643  ;;  %v3679_v6 = vmul.f32 1.442695, %v3640_v2  ;;  %v3611_v7 = vpop.xlane.xlu1 %3610  ;;  %v3789_v56 = vsel %vm2487_vm2, %v7345_v44, 0.0 }
 0x69e   : > { %5653 = vpow2.f32 %v3677_v31  ;;  %v3657_v43 = vsub.f32 %v7239_v15, %v3611_v7  ;;  %v3614_v37 = vpop.xlane.xlu0 %3613  ;;  %v3792_v54 = vsel %vm2487_vm2, %v7347_v21, 0.0 }
 0x69f   : > { %5655 = vpow2.f32 %v3679_v6  ;;  %v3658_v55 = vsub.f32 %v7237_v38, %v3614_v37  ;;  %3790 = vadd.xlane.f32.xlu1 %v3789_v56  ;;  %3793 = vadd.xlane.f32.xlu0 %v3792_v54 }
 0x6a0   : > { %v7355_v26 = vpop.eup %5645  ;;  %v3713_v22 = vmul.f32 1.442695, %v3657_v43 }
 0x6a1   : > { %v7357_v19 = vpop.eup %5647  ;;  %v3715_v58 = vmul.f32 1.442695, %v3658_v55  ;;  %v3563_v49 = vpop.xlane.xlu1 %3562  ;;  %v3741_v1 = vsel %vm2487_vm2, %v7355_v26, 0.0 }
 0x6a2   : > { %5657 = vpow2.f32 %v3713_v22  ;;  %v3641_v15 = vsub.f32 %v7187_v62, %v3563_v49  ;;  %v3566_v9 = vpop.xlane.xlu0 %3565  ;;  %v3744_v35 = vsel %vm2487_vm2, %v7357_v19, 0.0 }
 0x6a3   : > { %5659 = vpow2.f32 %v3715_v58  ;;  %v3642_v38 = vsub.f32 %v7185_v61, %v3566_v9  ;;  %3742 = vadd.xlane.f32.xlu1 %v3741_v1  ;;  %3745 = vadd.xlane.f32.xlu0 %v3744_v35 }
 0x6a4   : > { %v7365_v39 = vpop.eup %5649  ;;  %v3681_v0 = vmul.f32 1.442695, %v3641_v15 }
 0x6a5   : > { %v7367_v57 = vpop.eup %5651  ;;  %v3683_v23 = vmul.f32 1.442695, %v3642_v38  ;;  %v3617_v16 = vpop.xlane.xlu1 %3616  ;;  %v3795_v24 = vsel %vm2487_vm2, %v7365_v39, 0.0 }
 0x6a6   : > { %5661 = vpow2.f32 %v3681_v0  ;;  %v3659_v62 = vsub.f32 %v7245_v13, %v3617_v16  ;;  %v3620_v47 = vpop.xlane.xlu0 %3619  ;;  %v3798_v25 = vsel %vm2487_vm2, %v7367_v57, 0.0 }
 0x6a7   : > { %5663 = vpow2.f32 %v3683_v23  ;;  %v3660_v61 = vsub.f32 %v7241_v45, %v3620_v47  ;;  %3796 = vadd.xlane.f32.xlu1 %v3795_v24  ;;  %3799 = vadd.xlane.f32.xlu0 %v3798_v25 }
 0x6a8   : > { %v7375_v48 = vpop.eup %5653  ;;  %v3717_v50 = vmul.f32 1.442695, %v3659_v62 }
 0x6a9   : > { %v7377_v27 = vpop.eup %5655  ;;  %v3719_v11 = vmul.f32 1.442695, %v3660_v61  ;;  %v3569_v40 = vpop.xlane.xlu1 %3568  ;;  %v3747_v8 = vsel %vm2487_vm2, %v7375_v48, 0.0 }
 0x6aa   : > { %5665 = vpow2.f32 %v3717_v50  ;;  %v3643_v13 = vsub.f32 %v7191_v14, %v3569_v40  ;;  %v3572_v10 = vpop.xlane.xlu0 %3571  ;;  %v3750_v2 = vsel %vm2487_vm2, %v7377_v27, 0.0 }
 0x6ab   : > { %5667 = vpow2.f32 %v3719_v11  ;;  %v3644_v45 = vsub.f32 %v7189_v28, %v3572_v10  ;;  %3748 = vadd.xlane.f32.xlu1 %v3747_v8  ;;  %3751 = vadd.xlane.f32.xlu0 %v3750_v2 }
 0x6ac   : > { %v7385_v31 = vpop.eup %5657  ;;  %v3685_v6 = vmul.f32 1.442695, %v3643_v13 }
 0x6ad   : > { %v7387_v7 = vpop.eup %5659  ;;  %v3687_v56 = vmul.f32 1.442695, %v3644_v45  ;;  %v3623_v43 = vpop.xlane.xlu1 %3622  ;;  %v3801_v37 = vsel %vm2487_vm2, %v7385_v31, 0.0 }
 0x6ae   : > { %5669 = vpow2.f32 %v3685_v6  ;;  %v3661_v14 = vsub.f32 %v7255_v18, %v3623_v43  ;;  %v3626_v54 = vpop.xlane.xlu0 %3625  ;;  %v3804_v55 = vsel %vm2487_vm2, %v7387_v7, 0.0 }
 0x6af   : > { %5671 = vpow2.f32 %v3687_v56  ;;  %v3662_v28 = vsub.f32 %v7253_v17, %v3626_v54  ;;  %3802 = vadd.xlane.f32.xlu1 %v3801_v37  ;;  %3805 = vadd.xlane.f32.xlu0 %v3804_v55 }
 0x6b0   : > { %v7395_v22 = vpop.eup %5661  ;;  %v3721_v58 = vmul.f32 1.442695, %v3661_v14 }
 0x6b1   : > { %v7397_v49 = vpop.eup %5663  ;;  %v3723_v1 = vmul.f32 1.442695, %v3662_v28  ;;  %v3575_v15 = vpop.xlane.xlu1 %3574  ;;  %v3753_v9 = vsel %vm2487_vm2, %v7395_v22, 0.0 }
 0x6b2   : > { %5673 = vpow2.f32 %v3721_v58  ;;  %v3645_v18 = vsub.f32 %v7195_v46, %v3575_v15  ;;  %v3578_v35 = vpop.xlane.xlu0 %3577  ;;  %v3756_v38 = vsel %vm2487_vm2, %v7397_v49, 0.0 }
 0x6b3   : > { %5675 = vpow2.f32 %v3723_v1  ;;  %v3646_v17 = vsub.f32 %v7193_v32, %v3578_v35  ;;  %3754 = vadd.xlane.f32.xlu1 %v3753_v9  ;;  %3757 = vadd.xlane.f32.xlu0 %v3756_v38 }
 0x6b4   : > { %v7405_v0 = vpop.eup %5665  ;;  %v3689_v23 = vmul.f32 1.442695, %v3645_v18 }
 0x6b5   : > { %v7407_v16 = vpop.eup %5667  ;;  %v3691_v24 = vmul.f32 1.442695, %v3646_v17  ;;  %v3629_v62 = vpop.xlane.xlu1 %3628  ;;  %v3807_v47 = vsel %vm2487_vm2, %v7405_v0, 0.0 }
 0x6b6   : > { %5677 = vpow2.f32 %v3689_v23  ;;  %v3663_v46 = vsub.f32 %v7261_v20, %v3629_v62  ;;  %v3632_v25 = vpop.xlane.xlu0 %3631  ;;  %v3810_v61 = vsel %vm2487_vm2, %v7407_v16, 0.0  ;;  %v3019_v23 = vld [vmem:[%s7835_s25] sm:$0xff]  ;;  %v3021_v62 = vld [vmem:[%s7836_s17 + $0x10] sm:$0xff] }
 0x6b7   : > { %5679 = vpow2.f32 %v3691_v24  ;;  %v3664_v32 = vsub.f32 %v7257_v63, %v3632_v25  ;;  %3808 = vadd.xlane.f32.xlu1 %v3807_v47  ;;  %3811 = vadd.xlane.f32.xlu0 %v3810_v61  ;;  %v7460_v24 = vpop.f32.mrb[56].mxu0 }
 0x6b8   : > { %v7415_v50 = vpop.eup %5669  ;;  %v3725_v11 = vmul.f32 1.442695, %v3663_v46  ;;  %v7465_v47 = vpop.f32.mrb[57].mxu0  ;;  %v3020_v46 = vld [vmem:[%s7836_s17 + $0x8] sm:$0xff] }
 0x6b9   : > { %v7417_v40 = vpop.eup %5671  ;;  %v3727_v8 = vmul.f32 1.442695, %v3664_v32  ;;  %v3581_v13 = vpop.xlane.xlu1 %3580  ;;  %v3759_v10 = vsel %vm2487_vm2, %v7415_v50, 0.0 }
 0x6ba   : > { %5681 = vpow2.f32 %v3725_v11  ;;  %v3647_v20 = vsub.f32 %v7199_v53, %v3581_v13  ;;  %v3584_v2 = vpop.xlane.xlu0 %3583  ;;  %v3762_v45 = vsel %vm2487_vm2, %v7417_v40, 0.0  ;;  %v7470_v25 = vpop.f32.mrb[58].mxu0  ;;  %v3022_v11 = vld [vmem:[%s7836_s17 + $0x18] sm:$0xff] }
 0x6bb   : > { %5683 = vpow2.f32 %v3727_v8  ;;  %v3648_v63 = vsub.f32 %v7197_v30, %v3584_v2  ;;  %3760 = vadd.xlane.f32.xlu1 %v3759_v10  ;;  %3763 = vadd.xlane.f32.xlu0 %v3762_v45  ;;  %v7472_v61 = vpop.f32.mrb[59].mxu0 }
 0x6bc   : > { %v7425_v6 = vpop.eup %5673  ;;  %v3693_v56 = vmul.f32 1.442695, %v3647_v20  ;;  %v7474_v32 = vpop.f32.mrb[60].mxu0 }
 0x6bd   : > { %v7427_v43 = vpop.eup %5675  ;;  %v3695_v37 = vmul.f32 1.442695, %v3648_v63  ;;  %v3813_v14 = vsel %vm2487_vm2, %v7425_v6, 0.0  ;;  %v7479_v8 = vpop.f32.mrb[61].mxu0 }
 0x6be   : > { %5685 = vpow2.f32 %v3693_v56  ;;  %v3816_v53 = vsel %vm2487_vm2, %v7427_v43, 0.0  ;;  %v7481_v13 = vpop.f32.mrb[62].mxu0 }
 0x6bf   : > { %5687 = vpow2.f32 %v3695_v37  ;;  %3814 = vadd.xlane.f32.xlu1 %v3813_v14  ;;  %3817 = vadd.xlane.f32.xlu0 %v3816_v53  ;;  %v7483_v10 = vpop.f32.mrb[63].mxu0 }
 0x6c0   : > { %v7433_v54 = vpop.eup %5677 }
 0x6c1   : > { %v7435_v30 = vpop.eup %5679  ;;  %v3765_v55 = vsel %vm2487_vm2, %v7433_v54, 0.0 }
 0x6c2   : > { %v3768_v28 = vsel %vm2487_vm2, %v7435_v30, 0.0 }
 0x6c3   : > { %3766 = vadd.xlane.f32.xlu1 %v3765_v55  ;;  %3769 = vadd.xlane.f32.xlu0 %v3768_v28 }
 0x6c4   : > { %v7441_v58 = vpop.eup %5681 }
 0x6c5   : > { %v7443_v1 = vpop.eup %5683  ;;  %v3819_v15 = vsel %vm2487_vm2, %v7441_v58, 0.0 }
 0x6c6   : > { %v3822_v9 = vsel %vm2487_vm2, %v7443_v1, 0.0 }
 0x6c7   : > { %3820 = vadd.xlane.f32.xlu1 %v3819_v15  ;;  %3823 = vadd.xlane.f32.xlu0 %v3822_v9 }
 0x6c8   : > { %v7449_v18 = vpop.eup %5685 }
 0x6c9   : > { %v7451_v35 = vpop.eup %5687  ;;  %v3771_v38 = vsel %vm2487_vm2, %v7449_v18, 0.0 }
 0x6ca   : > { %v3774_v17 = vsel %vm2487_vm2, %v7451_v35, 0.0 }
 0x6cb   : > { %3772 = vadd.xlane.f32.xlu1 %v3771_v38  ;;  %3775 = vadd.xlane.f32.xlu0 %v3774_v17 }
 0x6dc   : > { %3025 = vperm.xlu1 %5496, %v3019_v23  }
 0x6e0   : > { %3035 = vperm.xlu1 %5496, %v3021_v62  }
 0x6e1   : > { %3030 = vperm.xlu0 %5495, %v3020_v46  }
 0x6e4   : > { %3040 = vperm.xlu1 %5496, %v3022_v11  }
 0x71b   : > { %v3782_v20 = vpop.xlane.xlu0 %3781 }
 0x71c   : > { %5689 = vrcp.f32 %v3782_v20  ;;  %v3779_v2 = vpop.xlane.xlu1 %3778 }
 0x71d   : > { %5691 = vrcp.f32 %v3779_v2 }
 0x720   : > { %v3731_v45 = vpop.xlane.xlu1 %3730  ;;  %v3734_v63 = vpop.xlane.xlu0 %3733 }
 0x721   : > { %5693 = vrcp.f32 %v3731_v45 }
 0x722   : > { %5695 = vrcp.f32 %v3734_v63 }
 0x724   : > { %v3785_v56 = vpop.xlane.xlu1 %3784  ;;  %v3788_v37 = vpop.xlane.xlu0 %3787 }
 0x725   : > { %5697 = vrcp.f32 %v3785_v56 }
 0x726   : > { %v5690_v14 = vpop.eup %5689  ;;  %5699 = vrcp.f32 %v3788_v37 }
 0x727   : > { %v5692_v53 = vpop.eup %5691  ;;  %v3860_v55 = vmul.f32 %v5690_v14, %v7305_v34 }
 0x728   : > { %v3737_v28 = vpop.xlane.xlu1 %3736  ;;  %v3740_v15 = vpop.xlane.xlu0 %3739  ;;  %v3858_v9 = vmul.f32 %v5692_v53, %v7307_v36 }
 0x729   : > { %5701 = vrcp.f32 %v3737_v28 }
 0x72a   : > { %5703 = vrcp.f32 %v3740_v15  ;;  %v5353_v38 = vpack.c.bf16 %v3860_v55, %v3858_v9 }
 0x72b   : > { %v5694_v17 = vpop.eup %5693 }
 0x72c   : > { %v5696_v23 = vpop.eup %5695  ;;  %v3826_v62 = vmul.f32 %v5694_v17, %v7315_v51  ;;  %v3791_v46 = vpop.xlane.xlu1 %3790  ;;  %5355 = vmatprep.subr.msk.bf16.mxu0 %vm7027_vm3, %v5353_v38 }
 0x72d   : > { %v3794_v11 = vpop.xlane.xlu0 %3793  ;;  %v3828_v20 = vmul.f32 %v5696_v23, %v7317_v33  ;;  %5705 = vrcp.f32 %v3791_v46 }
 0x72e   : > { %5707 = vrcp.f32 %v3794_v11 }
 0x72f   : > { %v5698_v34 = vpop.eup %5697  ;;  %v5356_v2 = vpack.c.bf16 %v3828_v20, %v3826_v62 }
 0x730   : > { %v5700_v45 = vpop.eup %5699  ;;  %v3743_v36 = vpop.xlane.xlu1 %3742  ;;  %v3862_v56 = vmul.f32 %v5698_v34, %v7325_v52 }
 0x731   : > { %v3746_v63 = vpop.xlane.xlu0 %3745  ;;  %5709 = vrcp.f32 %v3743_v36  ;;  %5358 = vmatpush3.bf16.xpose.msk.msra.mxu0 %vm7027_vm3, %v5356_v2  ;;  %v3864_v51 = vmul.f32 %v5700_v45, %v7327_v29 }
 0x732   : > { %5711 = vrcp.f32 %v3746_v63 }
 0x733   : > { %v5702_v37 = vpop.eup %5701  ;;  %v5359_v14 = vpack.c.bf16 %v3864_v51, %v3862_v56 }
 0x734   : > { %v5704_v53 = vpop.eup %5703  ;;  %v3830_v33 = vmul.f32 %v5702_v37, %v7335_v5  ;;  %v3797_v55 = vpop.xlane.xlu1 %3796 }
 0x735   : > { %v3800_v28 = vpop.xlane.xlu0 %3799  ;;  %v3832_v15 = vmul.f32 %v5704_v53, %v7337_v42  ;;  %5713 = vrcp.f32 %v3797_v55  ;;  %5361 = vmatprep.subr.msk.bf16.mxu0 %vm7027_vm3, %v5359_v14 }
 0x736   : > { %5715 = vrcp.f32 %v3800_v28 }
 0x737   : > { %v5706_v52 = vpop.eup %5705  ;;  %v5362_v9 = vpack.c.bf16 %v3832_v15, %v3830_v33 }
 0x738   : > { %v5708_v38 = vpop.eup %5707  ;;  %v3749_v17 = vpop.xlane.xlu1 %3748  ;;  %v3866_v23 = vmul.f32 %v5706_v52, %v7345_v44 }
 0x739   : > { %v3752_v29 = vpop.xlane.xlu0 %3751  ;;  %5717 = vrcp.f32 %v3749_v17  ;;  %5364 = vmatpush3.bf16.xpose.msk.msra.mxu0 %vm7027_vm3, %v5362_v9  ;;  %v3868_v5 = vmul.f32 %v5708_v38, %v7347_v21 }
 0x73a   : > { %5719 = vrcp.f32 %v3752_v29 }
 0x73b   : > { %v5710_v42 = vpop.eup %5709  ;;  %v5365_v62 = vpack.c.bf16 %v3868_v5, %v3866_v23 }
 0x73c   : > { %v5712_v46 = vpop.eup %5711  ;;  %v3834_v11 = vmul.f32 %v5710_v42, %v7355_v26  ;;  %v3803_v20 = vpop.xlane.xlu1 %3802 }
 0x73d   : > { %v3806_v34 = vpop.xlane.xlu0 %3805  ;;  %v3836_v2 = vmul.f32 %v5712_v46, %v7357_v19  ;;  %5721 = vrcp.f32 %v3803_v20  ;;  %5367 = vmatprep.subr.msk.bf16.mxu0 %vm7027_vm3, %v5365_v62 }
 0x73e   : > { %5723 = vrcp.f32 %v3806_v34 }
 0x73f   : > { %v5714_v44 = vpop.eup %5713  ;;  %v5368_v45 = vpack.c.bf16 %v3836_v2, %v3834_v11 }
 0x740   : > { %v5716_v36 = vpop.eup %5715  ;;  %v3755_v63 = vpop.xlane.xlu1 %3754  ;;  %v3870_v56 = vmul.f32 %v5714_v44, %v7365_v39 }
 0x741   : > { %v3758_v21 = vpop.xlane.xlu0 %3757  ;;  %5725 = vrcp.f32 %v3755_v63  ;;  %5370 = vmatpush3.bf16.xpose.msk.msra.mxu0 %vm7027_vm3, %v5368_v45  ;;  %v3872_v26 = vmul.f32 %v5716_v36, %v7367_v57 }
 0x742   : > { %5727 = vrcp.f32 %v3758_v21 }
 0x743   : > { %v5718_v19 = vpop.eup %5717  ;;  %v5371_v51 = vpack.c.bf16 %v3872_v26, %v3870_v56 }
 0x744   : > { %v5720_v37 = vpop.eup %5719  ;;  %v3838_v14 = vmul.f32 %v5718_v19, %v7375_v48  ;;  %v3809_v53 = vpop.xlane.xlu1 %3808 }
 0x745   : > { %v3812_v33 = vpop.xlane.xlu0 %3811  ;;  %v3840_v55 = vmul.f32 %v5720_v37, %v7377_v27  ;;  %5729 = vrcp.f32 %v3809_v53  ;;  %5373 = vmatprep.subr.msk.bf16.mxu0 %vm7027_vm3, %v5371_v51 }
 0x746   : > { %5731 = vrcp.f32 %v3812_v33 }
 0x747   : > { %v5722_v39 = vpop.eup %5721  ;;  %v5374_v28 = vpack.c.bf16 %v3840_v55, %v3838_v14 }
 0x748   : > { %v5724_v15 = vpop.eup %5723  ;;  %v3761_v52 = vpop.xlane.xlu1 %3760  ;;  %v3874_v9 = vmul.f32 %v5722_v39, %v7385_v31  ;;  %v5753_v39 = vld [vmem:[%s6371_s20] sm:$0xff] }
 0x749   : > { %v3764_v57 = vpop.xlane.xlu0 %3763  ;;  %5733 = vrcp.f32 %v3761_v52  ;;  %5376 = vmatpush3.bf16.xpose.msk.msra.mxu0 %vm7027_vm3, %v5374_v28  ;;  %v3876_v48 = vmul.f32 %v5724_v15, %v7387_v7  ;;  %v5754_v15 = vld [vmem:[%s6371_s20 + $0x8] sm:$0xff] }
 0x74a   : > { %5735 = vrcp.f32 %v3764_v57 }
 0x74b   : > { %v5726_v27 = vpop.eup %5725  ;;  %v5377_v38 = vpack.c.bf16 %v3876_v48, %v3874_v9 }
 0x74c   : > { %v5728_v17 = vpop.eup %5727  ;;  %v3842_v29 = vmul.f32 %v5726_v27, %v7395_v22  ;;  %v3815_v23 = vpop.xlane.xlu1 %3814 }
 0x74d   : > { %v3818_v5 = vpop.xlane.xlu0 %3817  ;;  %v3844_v42 = vmul.f32 %v5728_v17, %v7397_v49  ;;  %5737 = vrcp.f32 %v3815_v23  ;;  %5379 = vmatprep.subr.msk.bf16.mxu0 %vm7027_vm3, %v5377_v38  ;;  %v5756_v23 = vld [vmem:[%s6371_s20 + $0x28] sm:$0xff] }
 0x74e   : > { %5739 = vrcp.f32 %v3818_v5  ;;  %v5757_v5 = vld [vmem:[%s6371_s20 + $0x10] sm:$0xff] }
 0x74f   : > { %v5730_v31 = vpop.eup %5729  ;;  %v5380_v62 = vpack.c.bf16 %v3844_v42, %v3842_v29  ;;  %v5755_v29 = vld [vmem:[%s6371_s20 + $0x20] sm:$0xff] }
 0x750   : > { %v5732_v46 = vpop.eup %5731  ;;  %v3767_v11 = vpop.xlane.xlu1 %3766  ;;  %v3878_v20 = vmul.f32 %v5730_v31, %v7405_v0  ;;  %v5758_v31 = vld [vmem:[%s6371_s20 + $0x18] sm:$0xff] }
 0x751   : > { %v3770_v7 = vpop.xlane.xlu0 %3769  ;;  %5741 = vrcp.f32 %v3767_v11  ;;  %5382 = vmatpush3.bf16.xpose.msk.msra.mxu0 %vm7027_vm3, %v5380_v62  ;;  %v3880_v22 = vmul.f32 %v5732_v46, %v7407_v16 }
 0x752   : > { %5743 = vrcp.f32 %v3770_v7 }
 0x753   : > { %v5734_v49 = vpop.eup %5733  ;;  %v5383_v34 = vpack.c.bf16 %v3880_v22, %v3878_v20 }
 0x754   : > { %v5736_v2 = vpop.eup %5735  ;;  %v3846_v44 = vmul.f32 %v5734_v49, %v7415_v50  ;;  %v3821_v45 = vpop.xlane.xlu1 %3820  ;;  %v5760_v49 = vld [vmem:[%s6371_s20 + $0x38] sm:$0xff] }
 0x755   : > { %v3824_v36 = vpop.xlane.xlu0 %3823  ;;  %v3848_v63 = vmul.f32 %v5736_v2, %v7417_v40  ;;  %5745 = vrcp.f32 %v3821_v45  ;;  %5385 = vmatprep.subr.msk.bf16.mxu0 %vm7027_vm3, %v5383_v34 }
 0x756   : > { %5747 = vrcp.f32 %v3824_v36 }
 0x757   : > { %v5738_v0 = vpop.eup %5737  ;;  %v5386_v21 = vpack.c.bf16 %v3848_v63, %v3846_v44 }
 0x758   : > { %v5740_v56 = vpop.eup %5739  ;;  %v3773_v26 = vpop.xlane.xlu1 %3772  ;;  %v3882_v19 = vmul.f32 %v5738_v0, %v7425_v6 }
 0x759   : > { %v3776_v16 = vpop.xlane.xlu0 %3775  ;;  %5749 = vrcp.f32 %v3773_v26  ;;  %5388 = vmatpush3.bf16.xpose.msk.msra.mxu0 %vm7027_vm3, %v5386_v21  ;;  %v3884_v50 = vmul.f32 %v5740_v56, %v7427_v43 }
 0x75a   : > { %5751 = vrcp.f32 %v3776_v16 }
 0x75b   : > { %v5742_v40 = vpop.eup %5741  ;;  %v5389_v51 = vpack.c.bf16 %v3884_v50, %v3882_v19 }
 0x75c   : > { %v5744_v37 = vpop.eup %5743  ;;  %v3850_v14 = vmul.f32 %v5742_v40, %v7433_v54  ;;  %v7536_v53 = vpop.permute.xlu1 %3025 }
 0x75d   : > { %v3852_v33 = vmul.f32 %v5744_v37, %v7435_v30  ;;  %v3122_v6 = vadd.f32 %v7460_v24, %v7536_v53  ;;  %v3124_v55 = vadd.f32 %v7465_v47, %v7536_v53  ;;  %5391 = vmatprep.subr.msk.bf16.mxu0 %vm7027_vm3, %v5389_v51 }
 0x75f   : > { %v5746_v43 = vpop.eup %5745  ;;  %v3144_v28 = vadd.f32 %v5753_v39, %v3122_v6  ;;  %v3145_v52 = vadd.f32 %v5754_v15, %v3124_v55  ;;  %v5392_v54 = vpack.c.bf16 %v3852_v33, %v3850_v14 }
 0x760   : > { %v5748_v57 = vpop.eup %5747  ;;  %v7547_v9 = vpop.permute.xlu1 %3035  ;;  %v3886_v24 = vmul.f32 %v5746_v43, %v7441_v58 }
 0x761   : > { %v7549_v30 = vpop.permute.xlu0 %3030  ;;  %4173 = vst [vmem:[%s7553_s9] sm:$0xff] %v3144_v28  ;;  %4174 = vst [vmem:[%s7553_s9 + $0x8] sm:$0xff] %v3145_v52  ;;  %v3134_v47 = vadd.f32 %v7474_v32, %v7547_v9  ;;  %v3136_v48 = vadd.f32 %v7479_v8, %v7547_v9  ;;  %5394 = vmatpush3.bf16.xpose.msk.msra.mxu0 %vm7027_vm3, %v5392_v54  ;;  %v3888_v38 = vmul.f32 %v5748_v57, %v7443_v1 }
 0x762   : > { %v3128_v27 = vadd.f32 %v7470_v25, %v7549_v30  ;;  %v3130_v58 = vadd.f32 %v7472_v61, %v7549_v30 }
 0x763   : > { %v5750_v17 = vpop.eup %5749  ;;  %v3148_v32 = vadd.f32 %v5755_v29, %v3134_v47  ;;  %v3149_v8 = vadd.f32 %v5756_v23, %v3136_v48  ;;  %v5395_v1 = vpack.c.bf16 %v3888_v38, %v3886_v24 }
 0x764   : > { %v3146_v42 = vadd.f32 %v5757_v5, %v3128_v27  ;;  %v3147_v25 = vadd.f32 %v5758_v31, %v3130_v58  ;;  %v5752_v62 = vpop.eup %5751  ;;  %v3854_v61 = vmul.f32 %v5750_v17, %v7449_v18  ;;  %v7573_v46 = vpop.permute.xlu1 %3040  ;;  %v5759_v18 = vld [vmem:[%s6371_s20 + $0x30] sm:$0xff]  ;;  %s4216_s20 = sshll.u32 %s7553_s9, 4  ;;  %s7628_s20 = int_to_ptr.vmem [resolvable:$true] %s4216_s20 }
 0x765   : > { %v3856_v11 = vmul.f32 %v5752_v62, %v7451_v35  ;;  %4177 = vst [vmem:[%s7553_s9 + $0x20] sm:$0xff] %v3148_v32  ;;  %4178 = vst [vmem:[%s7553_s9 + $0x28] sm:$0xff] %v3149_v8  ;;  %v3140_v7 = vadd.f32 %v7481_v13, %v7573_v46  ;;  %v3142_v20 = vadd.f32 %v7483_v10, %v7573_v46  ;;  %5397 = vmatprep.subr.msk.bf16.mxu0 %vm7027_vm3, %v5395_v1  ;;  %s5919_s11 = scalar_lea.vmem %s7628_s20, 1024  ;;  %p5926_p9 = scmp.lt.s32.totalorder %s7628_s20, %s5924_s2 }
 0x766   : > { %4175 = vst [vmem:[%s7553_s9 + $0x10] sm:$0xff] %v3146_v42  ;;  %4176 = vst [vmem:[%s7553_s9 + $0x18] sm:$0xff] %v3147_v25  ;;  %v7837_v35 = vmax.f32 %v6676_v59, %v6678_v60  ;;  %v5761_v59 = vld [vmem:[%s7833_s5] sm:$0xff]  ;;  %v5762_v60 = vld [vmem:[%s7833_s5 + $0x8] sm:$0xff]  ;;  %p5920_p7 = scmp.ne.s32.totalorder %s7628_s20, %s5919_s11  ;;  %p5927_p10 = scmp.lt.s32.totalorder %s5925_s13, %s5919_s11 }
 0x767   : > { %v3150_v22 = vadd.f32 %v5759_v18, %v3140_v7  ;;  %v3151_v34 = vadd.f32 %v5760_v49, %v3142_v20  ;;  %v5398_v2 = vpack.c.bf16 %v3856_v11, %v3854_v61 }
 0x768   : > { %v1792_v13 = vadd.f32 %v7099_v4, %v7837_v35  ;;  %v5763_v4 = vld [vmem:[%s7833_s5 + $0x10] sm:$0xff]  ;;  %p5921_p5 = pnand %p5920_p7, %p7840_p0  ;;  %p5928_p1 = por %p5927_p10, %p5926_p9 }
 0x769   : > { %4179 = vst [vmem:[%s7553_s9 + $0x30] sm:$0xff] %v3150_v22  ;;  %4180 = vst [vmem:[%s7553_s9 + $0x38] sm:$0xff] %v3151_v34  ;;  %5400 = vmatpush3.bf16.xpose.msk.msra.mxu0 %vm7027_vm3, %v5398_v2 }
 0x76a   : > { %p5922_p2 = pneg %p5921_p5 }
 0x76c   : > { %p5929_p6 = pnand %p5928_p1, %p5922_p2 }
 0x770   : > { %4866 = vmatmul.mubr.msk.f32.vlgmr.msra.gmra.mrb[64].mxu0 %vm2487_vm2, %v7168_v12  ;;  %v5764_v12 = vld [vmem:[%s7833_s5 + $0x18] sm:$0xff] }
 0x771   : > { %4867 = vmatprep.mubr.msk.f32.mxu0 %vm2487_vm2, %v1792_v13 }
 0x774   : > { %4868 = vmatmul.mubr.msk.f32.gmra.mrb[66].mxu0 %vm2487_vm2, %v1792_v13 }
 0x843   : > { %v4057_v10 = vpop.f32.mrb[64].mxu0 }
 0x844   : > { %v4059_v44 = vpop.f32.mrb[65].mxu0 }
 0x847   : > { %v4063_v45 = vpop.f32.mrb[66].mxu0 }
 0x848   : > { %v5403_v36 = vpack.c.bf16 %v4063_v45, %v4057_v10  ;;  %v4065_v63 = vpop.f32.mrb[67].mxu0 }
 0x849   : > { %v5401_v41 = vpack.c.bf16 %v4065_v63, %v4059_v44 }
 0x84b   : > { %5402 = vmatprep.subr.bf16.mxu1 %v5401_v41 }
 0x84c   : > { %5404 = vmatpush1.bf16.msra.mxu1 %v5403_v36 }
 0x84f   : > { %4615 = vmatmul.mubr.msk.f32.vlgmr.msra.gmra.mrb[52].mxu1 %vm2165_vm1, %v5761_v59 }
 0x850   : > { %4138 = vmatprep.mubr.f32.mxu1 %v7832_v3 }
 0x853   : > { %4616 = vmatmul.mubr.msk.f32.gmra.mrb[54].mxu1 %vm2165_vm1, %v5762_v60 }
 0x854   : > { %4144 = vmatprep.mubr.f32.mxu1 %v7832_v3 }
 0x857   : > { %4617 = vmatmul.mubr.msk.f32.gmra.mrb[56].mxu1 %vm2165_vm1, %v5763_v4 }
 0x858   : > { %4150 = vmatprep.mubr.f32.mxu1 %v7832_v3 }
 0x85b   : > { %4618 = vmatmul.mubr.msk.f32.gmra.mrb[58].mxu1 %vm2165_vm1, %v5764_v12 }
 0x85c   : > { %5932 = shalt.err (!%p5929_p6)
}
 0x85d   : > { %s5933_s9 = scalar_lea.hbm %s7625_s7, 1024  ;;  %s5937_s30 = scalar_lea.hbm %s7839_s18, 2048 }
 0x85e   : > { %p5934_p11 = scmp.ne.s32.totalorder %s7625_s7, %s5933_s9  ;;  %p5938_p8 = scmp.lt.u32.totalorder %s7625_s7, %s7839_s18 }
 0x85f   : > { %p5939_p13 = scmp.lt.u32.totalorder %s5937_s30, %s5933_s9  ;;  %p5941_p7 = scmp.lt.u32.totalorder %s5933_s9, %s7625_s7 }
 0x860   : > { %p5935_p12 = pnand %p5934_p11, %p7840_p0 }
 0x861   : > { %p5940_p3 = por %p5939_p13, %p5938_p8 }
 0x862   : > { %p5936_p4 = pneg %p5935_p12 }
 0x863   : > { %p5942_p5 = por %p5941_p7, %p5940_p3 }
 0x865   : > { %p5943_p2 = pnand %p5942_p5, %p5936_p4 }
 0x867   : > { %5946 = shalt.err (!%p5943_p2)
}
 0x868   : > { %s6039_s11 = smov 256   ;;  %s6040_s2 = smov 16   ;;  %v5765_v26 = vld [vmem:[%s6397_s14] sm:$0xff]  ;;  %v5766_v19 = vld [vmem:[%s6397_s14 + $0x8] sm:$0xff]  ;;  %v5768_v6 = vld [vmem:[%s6397_s14 + $0x18] sm:$0xff] }
 0x869   : > { %5420 = dma.vmem_to_hbm [thread:$0]  (%p7840_p0), %s7628_s20, 1024, %s7625_s7, %s4187_s15, %s6039_s11, %s6039_s11, %s6040_s2  }
 0x86a   : > { %s7662_s13 = scalar_lea.vmem [#allocation11], %s6367_s8  ;;  %v5769_v52 = vld [vmem:[%s6397_s14 + $0x20] sm:$0xff]  ;;  %v5770_v57 = vld [vmem:[%s6397_s14 + $0x28] sm:$0xff]  ;;  %v5772_v38 = vld [vmem:[%s6397_s14 + $0x38] sm:$0xff]  ;;  %s7841_s15 = sld [smem:[#allocation33_spill]] }
 0x86b   : > { %s4200_s8 = sshll.u32 %s7662_s13, 4  ;;  %s4182_s25 = scalar_lea.sflag [#allocation4], %s6364_s12  ;;  %s7681_s8 = int_to_ptr.vmem [resolvable:$true] %s4200_s8 }
 0x86c   : > { %s5947_s16 = scalar_lea.vmem %s7681_s8, 1024  ;;  %s6041_s30 = smov [#allocation11]  }
 0x86d   : > { %p5948_p9 = scmp.ne.s32.totalorder %s7681_s8, %s5947_s16  ;;  %s5951_s10 = sshll.u32 %s6041_s30, 4  ;;  %s5952_s10 = int_to_ptr.vmem [resolvable:$false] %s5951_s10 }
 0x86e   : > { %s5953_s24 = scalar_lea.vmem %s5952_s10, 2048  ;;  %p5954_p6 = scmp.lt.s32.totalorder %s7681_s8, %s5952_s10 }
 0x86f   : > { %p5949_p10 = pnand %p5948_p9, %p7840_p0  ;;  %p5955_p11 = scmp.lt.s32.totalorder %s5953_s24, %s5947_s16 }
 0x870   : > { %s7690_s9 = scalar_lea.hbm %s7841_s15, %s4631_s23 }
 0x871   : > { %p5950_p1 = pneg %p5949_p10  ;;  %p5956_p12 = por %p5955_p11, %p5954_p6 }
 0x873   : > { %p5957_p4 = pnand %p5956_p12, %p5950_p1 }
 0x922   : > { %v4134_v3 = vpop.f32.mrb[52].mxu1 }
 0x923   : > { %v4135_v0 = vadd.f32 %v4134_v3, %v7536_v53  ;;  %v4136_v21 = vpop.f32.mrb[53].mxu1 }
 0x924   : > { %v4137_v56 = vadd.f32 %v4136_v21, %v7536_v53  ;;  %v5767_v53 = vld [vmem:[%s6397_s14 + $0x10] sm:$0xff] }
 0x925   : > { %v4157_v16 = vadd.f32 %v5765_v26, %v4135_v0 }
 0x926   : > { %v4158_v50 = vadd.f32 %v5766_v19, %v4137_v56  ;;  %v4140_v40 = vpop.f32.mrb[54].mxu1 }
 0x927   : > { %4165 = vst [vmem:[%s7662_s13] sm:$0xff] %v4157_v16  ;;  %v4141_v51 = vadd.f32 %v4140_v40, %v7549_v30  ;;  %v4142_v37 = vpop.f32.mrb[55].mxu1 }
 0x928   : > { %4166 = vst [vmem:[%s7662_s13 + $0x8] sm:$0xff] %v4158_v50  ;;  %v4143_v14 = vadd.f32 %v4142_v37, %v7549_v30 }
 0x929   : > { %v4159_v33 = vadd.f32 %v5767_v53, %v4141_v51 }
 0x92a   : > { %v4160_v55 = vadd.f32 %v5768_v6, %v4143_v14  ;;  %v4146_v43 = vpop.f32.mrb[56].mxu1 }
 0x92b   : > { %4167 = vst [vmem:[%s7662_s13 + $0x10] sm:$0xff] %v4159_v33  ;;  %v4147_v39 = vadd.f32 %v4146_v43, %v7547_v9  ;;  %v4148_v28 = vpop.f32.mrb[57].mxu1 }
 0x92c   : > { %4168 = vst [vmem:[%s7662_s13 + $0x18] sm:$0xff] %v4160_v55  ;;  %v4149_v15 = vadd.f32 %v4148_v28, %v7547_v9  ;;  %v5771_v9 = vld [vmem:[%s6397_s14 + $0x30] sm:$0xff] }
 0x92d   : > { %v4161_v54 = vadd.f32 %v5769_v52, %v4147_v39 }
 0x92e   : > { %v4162_v30 = vadd.f32 %v5770_v57, %v4149_v15  ;;  %v4152_v24 = vpop.f32.mrb[58].mxu1 }
 0x92f   : > { %4169 = vst [vmem:[%s7662_s13 + $0x20] sm:$0xff] %v4161_v54  ;;  %v4153_v47 = vadd.f32 %v4152_v24, %v7573_v46  ;;  %v4154_v48 = vpop.f32.mrb[59].mxu1 }
 0x930   : > { %4170 = vst [vmem:[%s7662_s13 + $0x28] sm:$0xff] %v4162_v30  ;;  %v4155_v27 = vadd.f32 %v4154_v48, %v7573_v46 }
 0x931   : > { %v4163_v58 = vadd.f32 %v5771_v9, %v4153_v47 }
 0x932   : > { %v4164_v17 = vadd.f32 %v5772_v38, %v4155_v27 }
 0x933   : > { %4171 = vst [vmem:[%s7662_s13 + $0x30] sm:$0xff] %v4163_v58 }
 0x934   : > { %4172 = vst [vmem:[%s7662_s13 + $0x38] sm:$0xff] %v4164_v17 }
 0x935   : > { %5960 = shalt.err (!%p5957_p4)
}
 0x936   : > { %s5961_s29 = scalar_lea.hbm %s7690_s9, 1024  ;;  %s5965_s13 = scalar_lea.hbm %s7841_s15, 2048 }
 0x937   : > { %p5962_p8 = scmp.ne.s32.totalorder %s7690_s9, %s5961_s29  ;;  %p5966_p7 = scmp.lt.u32.totalorder %s7690_s9, %s7841_s15 }
 0x938   : > { %p5967_p5 = scmp.lt.u32.totalorder %s5965_s13, %s5961_s29  ;;  %p5969_p9 = scmp.lt.u32.totalorder %s5961_s29, %s7690_s9 }
 0x939   : > { %p5963_p13 = pnand %p5962_p8, %p7840_p0 }
 0x93a   : > { %p5968_p2 = por %p5967_p5, %p5966_p7 }
 0x93b   : > { %p5964_p3 = pneg %p5963_p13 }
 0x93c   : > { %p5970_p10 = por %p5969_p9, %p5968_p2 }
 0x93e   : > { %p5971_p1 = pnand %p5970_p10, %p5964_p3 }
 0x940   : > { %5974 = shalt.err (!%p5971_p1)
}
 0x941   : > { %5419 = dma.vmem_to_hbm [thread:$0]  (%p7840_p0), %s7681_s8, 1024, %s7690_s9, %s4182_s25, %s6039_s11, %s6039_s11, %s6040_s2  }
 0x942 PF: > { %s7842_s16 = sld [smem:[#allocation19_spill]]  ;;  %s7843_s30 = sld [smem:[#allocation24_spill]] }
 0x943   : > { %p7845_p11 = scmp.ge.s32.totalorder %s6025_s28, 2 }
 0x948   : > { %s4231_s10 = sand.u32 1, %s7842_s16   ;;  %p7844_p6 = scmp.ne.s32.totalorder %s7843_s30, 0 }
 0x949   : > { %s4232_s24 = scalar_lea.sflag [#allocation4], %s4231_s10 }
 0x94a   : > { %p5441_p12 = pnand %p7845_p11, %p7844_p6 }
 0x94c   : > { %6004 = dma.done.wait (!%p5441_p12), %s4232_s24, 1024  }
 0x94d   : > { %6006 = vsyncadd (!%p5441_p12), %s4232_s24, 4294966272  ;;  %s4241_s27 = scalar_lea.sflag [#allocation13], %s4231_s10 }
 0x94e   : > { %6008 = dma.done.wait (!%p5441_p12), %s4241_s27, 1024  }
 0x94f   : > { %6010 = vsyncadd (!%p5441_p12), %s4241_s27, 4294966272  ;;  %s7846_s28 = sld [smem:[#allocation21_spill]]  ;;  %s7847_s12 = sld [smem:[#allocation20_spill]] }
 0x950   : > { %s7848_s27 = sld [smem:[#allocation22_spill]]  ;;  %s7849_s25 = smov %s6017_s26 }
 0x955   : > { %p34_p0 = scmp.ge.s32.totalorder %s7846_s28, 4   ;;  %s7850_s26 = smov %s7847_s12 }
 0x957   :  { %36 = sbr.rel (!%p34_p0) target bundleno = 21 (0x15), region = 171 }
 0x95e   :  { %4246 = vsyncpa [#allocation3], 1 }
 0x95f   :  { %4248 = vsyncpa [#allocation3 + $0x1], 1 }
 0x960   :  { %4249 = vsyncpa [#allocation6], 1 }
 0x961   :  { %4251 = vsyncpa [#allocation6 + $0x1], 1 }
 0x962   :  { %4252 = vsyncpa [#allocation9], 1 }
 0x963   :  { %4253 = vsyncpa [#allocation4], 1 }
 0x964   :  { %4255 = vsyncpa [#allocation4 + $0x1], 1 }
 0x965   :  { %4256 = vsyncpa [#allocation13], 1 }
 0x966   :  { %4258 = vsyncpa [#allocation13 + $0x1], 1 }

</bundles_post_ra>
